<compile_context>
chip_gen: v5e
topology: v5e:2x2
jax: 0.10.0
libtpu: 0.0.40
codegen_flags: <defaults>
</compile_context>

<pallas_src>
import functools

import jax
import jax.numpy as jnp
from jax.experimental import pallas as pl
from jax.experimental.pallas import tpu as pltpu

# ----------------------------- model config (tiny, synthetic) ------------------------------
PATCH = 16        # ViT patch size
D = 32            # hidden dim
HEADS = 4         # attention heads
DEPTH = 2         # transformer blocks
MLP_RATIO = 4
DECONV_C = 32     # head deconv channels
NKPTS = 17        # keypoints

VMEM_LIMIT = 32 * 1024 * 1024   # explicit, portable across v5e/v6e/v7x


# ------------------------------ fused ViT transformer block --------------------------------
def _ln(x, g, b, eps=1e-6):
    # TODO(synk): eps must match the checkpoint config (timm ViT uses 1e-6, nn.LayerNorm 1e-5).
    mu = jnp.mean(x, axis=-1, keepdims=True)
    var = jnp.mean(jnp.square(x - mu), axis=-1, keepdims=True)
    return (x - mu) * jax.lax.rsqrt(var + eps) * g + b


def _vit_block_kernel(*refs, heads, scale, embed, final_ln):
    """One pre-LN ViT block for ONE image (T tokens), fully VMEM resident.

    embed=True additionally performs patch-embed matmul + folded conv bias + pos embedding;
    final_ln=True applies the backbone's final LayerNorm.  No attention mask is needed since
    the grid iterates over images."""
    *ins, o_ref = refs
    if embed:
        p_ref, pw_ref, pb_ref, pos_ref = ins[:4]
        n = 4
        x = (jnp.dot(p_ref[...], pw_ref[...], preferred_element_type=jnp.float32)
             + pb_ref[...] + pos_ref[...])
    else:
        x = ins[0][...]
        n = 1
    (ln1g, ln1b, qkvw, qkvb, projw, projb,
     ln2g, ln2b, w1, b1, w2, b2) = ins[n:n + 12]

    dm = x.shape[-1]
    hd = dm // heads

    # ---- multi-head self-attention (per-image, exact softmax) ----
    h = _ln(x, ln1g[...], ln1b[...])
    qkv = jnp.dot(h, qkvw[...], preferred_element_type=jnp.float32) + qkvb[...]
    heads_out = []
    for hh in range(heads):                              # static unroll, all data in VMEM
        q = qkv[:, hh * hd:(hh + 1) * hd]
        k = qkv[:, dm + hh * hd: dm + (hh + 1) * hd]
        v = qkv[:, 2 * dm + hh * hd: 2 * dm + (hh + 1) * hd]
        s = jax.lax.dot_general(q, k, (((1,), (1,)), ((), ())),
                                preferred_element_type=jnp.float32) * scale
        s = s - jnp.max(s, axis=-1, keepdims=True)
        p = jnp.exp(s)
        p = p / jnp.sum(p, axis=-1, keepdims=True)       # exact reciprocal (parity w/ PyTorch)
        heads_out.append(jnp.dot(p, v, preferred_element_type=jnp.float32))
    o_all = jnp.concatenate(heads_out, axis=-1)          # (T, D): one fat output projection
    x = x + jnp.dot(o_all, projw[...], preferred_element_type=jnp.float32) + projb[...]

    # ---- MLP ----
    h2 = _ln(x, ln2g[...], ln2b[...])
    m = jnp.dot(h2, w1[...], preferred_element_type=jnp.float32) + b1[...]
    # TODO(synk): PyTorch nn.GELU() is exact (erf); tanh approximation used for robust
    #             Mosaic lowering (max abs deviation ~1e-3).
    m = jax.nn.gelu(m, approximate=True)
    m = jnp.dot(m, w2[...], preferred_element_type=jnp.float32) + b2[...]
    x = x + m

    if final_ln:
        lnfg, lnfb = ins[n + 12:n + 14]
        x = _ln(x, lnfg[...], lnfb[...])
    o_ref[...] = x


def vit_block(tok, blk, *, batch, tokens, embed_extras=None, lnf=None):
    """Run one transformer block, gridded over the batch (one image per grid step)."""
    embed = embed_extras is not None
    final_ln = lnf is not None
    d = D
    args, in_specs = [], []
    if embed:
        patches, pw, pb, pos = embed_extras
        cpp = patches.shape[-1]
        args += [patches, pw, pb, pos]
        in_specs += [
            pl.BlockSpec((None, tokens, cpp), lambda i: (i, 0, 0)),
            pl.BlockSpec((cpp, d), lambda i: (0, 0)),
            pl.BlockSpec((1, d), lambda i: (0, 0)),
            pl.BlockSpec((tokens, d), lambda i: (0, 0)),
        ]
    else:
        args.append(tok)
        in_specs.append(pl.BlockSpec((None, tokens, d), lambda i: (i, 0, 0)))

    r2 = lambda v: v if v.ndim == 2 else v.reshape(1, -1)
    for name in ('ln1_g', 'ln1_b', 'qkv_w', 'qkv_b', 'proj_w', 'proj_b',
                 'ln2_g', 'ln2_b', 'mlp_w1', 'mlp_b1', 'mlp_w2', 'mlp_b2'):
        v = r2(blk[name])
        args.append(v)
        in_specs.append(pl.BlockSpec(v.shape, lambda i: (0, 0)))
    if final_ln:
        for v in lnf:
            args.append(v.reshape(1, -1))
            in_specs.append(pl.BlockSpec((1, d), lambda i: (0, 0)))

    kern = functools.partial(_vit_block_kernel, heads=HEADS,
                             scale=1.0 / float(d // HEADS) ** 0.5,
                             embed=embed, final_ln=final_ln)
    return pl.pallas_call(
        kern,
        out_shape=jax.ShapeDtypeStruct((batch, tokens, d), jnp.float32),
        grid=(batch,),
        in_specs=in_specs,
        out_specs=pl.BlockSpec((None, tokens, d), lambda i: (i, 0, 0)),
        compiler_params=pltpu.CompilerParams(
            dimension_semantics=("parallel",),
            vmem_limit_bytes=VMEM_LIMIT),
    )(*args)


# ---------------- 4-phase sub-pixel deconv + BN(eval) + ReLU, in-kernel im2col -------------
def _build_subpixel_weight(w, bn):
    """ConvTranspose2d(k=4, s=2, p=1, no bias) weight (Cin, Cout, 4, 4) + eval-mode BatchNorm
    -> per-tap weights (9, Cin, 4*Cout) (tap = 3x3 input-neighborhood position, column block =
    output parity phase r*2+s) with BN scale folded in, plus the BN shift as a (1, 4*Cout) bias."""
    Cin, Cout = w.shape[0], w.shape[1]
    scale = bn['gamma'] * jax.lax.rsqrt(bn['var'] + 1e-5)
    shift = bn['beta'] - bn['mean'] * scale
    # output y[2m+r] uses input row m-1+di with kernel tap kh:
    #   r=0: {di=0: kh=3, di=1: kh=1};  r=1: {di=1: kh=2, di=2: kh=0}   (same along columns)
    tap = {0: {0: 3, 1: 1}, 1: {1: 2, 2: 0}}
    Wt = jnp.zeros((9, Cin, 4, Cout), jnp.float32)
    for r in (0, 1):
        for s in (0, 1):
            ph = 2 * r + s
            for di, kh in tap[r].items():
                for dj, kw_ in tap[s].items():
                    Wt = Wt.at[di * 3 + dj, :, ph, :].set(w[:, :, kh, kw_] * scale[None, :])
    return Wt.reshape(9, Cin, 4 * Cout), jnp.tile(shift, 4).reshape(1, 4 * Cout)


def _deconv_core(x_ref, w_ref, b_ref, xpad_ref, *, Hh, Ww):
    """In-kernel im2col: 9 shifted (H*W, Cin)@(Cin, 4*Cout) accumulating matmuls on a
    zero-padded VMEM scratch (flat padded layout, constant row shift per tap, column
    wrap-around handled with an iota mask).  BN bias + ReLU fused into the epilogue."""
    HW = Hh * Ww
    nout = w_ref.shape[-1]
    xpad_ref[...] = jnp.zeros_like(xpad_ref)
    xpad_ref[pl.ds(Ww + 1, HW), :] = x_ref[...]          # data at flat offset W+1
    wcol = jax.lax.broadcasted_iota(jnp.int32, (HW, 1), 0) % Ww
    acc = jnp.zeros((HW, nout), jnp.float32)
    for di in range(3):                                  # row shift  (di-1)
        for dj in range(3):                              # col shift  (dj-1)
            win = xpad_ref[pl.ds(di * Ww + dj, HW), :]   # shifted (H*W, Cin) window
            if dj == 0:                                  # col shift -1: mask w == 0
                win = jnp.where(wcol > 0, win, 0.0)
            elif dj == 2:                                # col shift +1: mask w == W-1
                win = jnp.where(wcol < Ww - 1, win, 0.0)
            acc = acc + jnp.dot(win, w_ref[di * 3 + dj],
                                preferred_element_type=jnp.float32)
    return jnp.maximum(acc + b_ref[...], 0.0)


def _deconv_bn_relu_kernel(x_ref, w_ref, b_ref, o_ref, xpad_ref, *, Hh, Ww):
    o_ref[...] = _deconv_core(x_ref, w_ref, b_ref, xpad_ref, Hh=Hh, Ww=Ww)


def _deconv_bn_relu_kp_kernel(x_ref, w_ref, b_ref, kw_ref, kb_ref, o_ref, xpad_ref, *, Hh, Ww):
    y = _deconv_core(x_ref, w_ref, b_ref, xpad_ref, Hh=Hh, Ww=Ww)
    # fused final 1x1 conv (block-diagonal per phase), lane-dense 128-wide output
    o_ref[...] = jnp.dot(y, kw_ref[...], preferred_element_type=jnp.float32) + kb_ref[...]


def deconv_stage(x_tok, w_taps, bias, Hh, Ww, kp=None):
    """x_tok: (B, H*W, Cin) channel-last token plane (row-major over h, w).
    Returns (B, H*W, 4*Cout) phase-stacked output (or (B, H*W, 128) if kp=(kw, kb) fuses
    the final 1x1 keypoint conv).  One grid step per image; im2col done in-kernel."""
    B, HW, cin = x_tok.shape
    nout = w_taps.shape[-1]
    pad_rows = (Hh + 2) * Ww + 2

    in_specs = [pl.BlockSpec((None, HW, cin), lambda i: (i, 0, 0)),
                pl.BlockSpec(w_taps.shape, lambda i: (0, 0, 0)),
                pl.BlockSpec((1, nout), lambda i: (0, 0))]
    if kp is None:
        kern = functools.partial(_deconv_bn_relu_kernel, Hh=Hh, Ww=Ww)
        out_n = nout
        args = (x_tok, w_taps, bias)
    else:
        kw, kb = kp
        kern = functools.partial(_deconv_bn_relu_kp_kernel, Hh=Hh, Ww=Ww)
        out_n = kw.shape[-1]
        in_specs += [pl.BlockSpec(kw.shape, lambda i: (0, 0)),
                     pl.BlockSpec((1, out_n), lambda i: (0, 0))]
        args = (x_tok, w_taps, bias, kw, kb)

    return pl.pallas_call(
        kern,
        out_shape=jax.ShapeDtypeStruct((B, HW, out_n), jnp.float32),
        grid=(B,),
        in_specs=in_specs,
        out_specs=pl.BlockSpec((None, HW, out_n), lambda i: (i, 0, 0)),
        scratch_shapes=[pltpu.VMEM((pad_rows, cin), jnp.float32)],
        compiler_params=pltpu.CompilerParams(
            dimension_semantics=("parallel",),
            vmem_limit_bytes=VMEM_LIMIT),
    )(*args)


# --------------------------------------- forward -------------------------------------------
def vitpose_wrapper_forward(params, x):
    """Equivalent of ViTPoseWrapper.forward: x (B, C, H, W) in [0,1] -> (B, 17, H//4, W//4)."""
    B, C, H, W = x.shape
    Hp, Wp = H // PATCH, W // PATCH
    T = Hp * Wp

    # Fold (x*255 - mean)/std into the patch-embed weights (affine feeding a linear layer).
    # NOTE: assumes patch_w rows are ordered (c, ph, pw) -- must match the checkpoint flatten.
    a_ch = 255.0 / params['std']
    c_ch = -params['mean'] / params['std']
    a_col = jnp.repeat(a_ch, PATCH * PATCH)
    c_col = jnp.repeat(c_ch, PATCH * PATCH)
    pw_fold = params['patch_w'] * a_col[:, None]
    pb_fold = (params['patch_b'] + c_col @ params['patch_w']).reshape(1, -1)

    # patch extraction (im2col for the stride-16 conv); column order (c, ph, pw)
    patches = x.reshape(B, C, Hp, PATCH, Wp, PATCH).transpose(0, 2, 4, 1, 3, 5)
    patches = patches.reshape(B, T, C * PATCH * PATCH)
    pos = params['pos'].reshape(T, D)

    # transformer blocks: block 0 fuses the patch embed, last block fuses the final LN
    tok = None
    nblk = len(params['blocks'])
    for bi, blk in enumerate(params['blocks']):
        tok = vit_block(
            tok, blk, batch=B, tokens=T,
            embed_extras=(patches, pw_fold, pb_fold, pos) if bi == 0 else None,
            lnf=(params['lnf_g'], params['lnf_b']) if bi == nblk - 1 else None)
    # tok: (B, T, D) channel-last -- directly the deconv1 input plane, no transpose needed.

    # heatmap head, stage 1: deconv + BN + ReLU, phase-stacked lane-dense (4*C = 128) output
    w1t, b1t = _build_subpixel_weight(params['deconv1_w'], params['bn1'])
    y1 = deconv_stage(tok, w1t, b1t, Hp, Wp)                              # (B, Hp*Wp, 4*C)

    # un-interleave sub-pixel phases -> spatial row-major tokens for stage 2 (tiny XLA pass)
    # TODO(synk): could be folded into the deconv2 kernel with phase-aware in-kernel gathering.
    C1 = DECONV_C
    y1 = y1.reshape(B, Hp, Wp, 2, 2, C1).transpose(0, 1, 3, 2, 4, 5).reshape(B, 4 * T, C1)

    # stage 2: deconv + BN + ReLU with the final 1x1 keypoint conv fused (block-diag matmul),
    # output padded to 128 lanes for unmasked stores.
    H2, W2 = 2 * Hp, 2 * Wp
    w2t, b2t = _build_subpixel_weight(params['deconv2_w'], params['bn2'])
    kw = jnp.kron(jnp.eye(4, dtype=jnp.float32),
                  params['final_w'].reshape(NKPTS, DECONV_C).T)           # (4*C, 4*17)
    kb = jnp.tile(params['final_b'], 4)
    KPAD = 128
    kw = jnp.pad(kw, ((0, 0), (0, KPAD - kw.shape[1])))
    kb = jnp.pad(kb, (0, KPAD - kb.shape[0])).reshape(1, KPAD)
    y2 = deconv_stage(y1, w2t, b2t, H2, W2, kp=(kw, kb))                  # (B, H2*W2, 128)

    # final phase un-interleave + required NCHW output conversion
    y2 = y2[..., :4 * NKPTS]
    out = y2.reshape(B, H2, W2, 2, 2, NKPTS).transpose(0, 1, 3, 2, 4, 5)
    out = out.reshape(B, 4 * Hp, 4 * Wp, NKPTS).transpose(0, 3, 1, 2)
    return out


# ------------------------------- deterministic parameter init ------------------------------
def init_params(key, H, W):
    T = (H // PATCH) * (W // PATCH)
    keys = iter(jax.random.split(key, 128))

    def nrm(shape, s=0.02):
        return jax.random.normal(next(keys), shape, jnp.float32) * s

    p = {
        # data_preprocessor buffers (ImageNet-style)
        'mean': jnp.array([123.675, 116.28, 103.53], jnp.float32),
        'std': jnp.array([58.395, 57.12, 57.375], jnp.float32),
        'patch_w': nrm((3 * PATCH * PATCH, D)),
        'patch_b': nrm((D,)),
        'pos': nrm((1, T, D)),
        'lnf_g': jnp.ones((D,), jnp.float32),
        'lnf_b': jnp.zeros((D,), jnp.float32),
        'blocks': [],
    }
    for _ in range(DEPTH):
        p['blocks'].append({
            'ln1_g': jnp.ones((D,), jnp.float32), 'ln1_b': jnp.zeros((D,), jnp.float32),
            'qkv_w': nrm((D, 3 * D)), 'qkv_b': nrm((3 * D,)),
            'proj_w': nrm((D, D)), 'proj_b': nrm((D,)),
            'ln2_g': jnp.ones((D,), jnp.float32), 'ln2_b': jnp.zeros((D,), jnp.float32),
            'mlp_w1': nrm((D, MLP_RATIO * D)), 'mlp_b1': nrm((MLP_RATIO * D,)),
            'mlp_w2': nrm((MLP_RATIO * D, D)), 'mlp_b2': nrm((D,)),
        })
    p['deconv1_w'] = nrm((D, DECONV_C, 4, 4))
    p['deconv2_w'] = nrm((DECONV_C, DECONV_C, 4, 4))
    for name in ('bn1', 'bn2'):
        p[name] = {
            'gamma': 1.0 + nrm((DECONV_C,)),
            'beta': nrm((DECONV_C,)),
            'mean': nrm((DECONV_C,)),
            'var': 1.0 + jnp.abs(nrm((DECONV_C,))),
        }
    p['final_w'] = nrm((NKPTS, DECONV_C, 1, 1))
    p['final_b'] = nrm((NKPTS,))
    return p


# --------------------------------------------- main ----------------------------------------
if __name__ == "__main__":
    key = jax.random.PRNGKey(0)
    kx, kp = jax.random.split(key)

    B, C, H, W = 2, 3, 64, 64
    x = jax.random.uniform(kx, (B, C, H, W), jnp.float32)   # "normalized to [0, 1]"
    params = init_params(kp, H, W)

    # NOTE: the PyTorch module's two x.max()/x.min() range asserts each force a blocking
    # device->host sync; dropped here (input is in-range by construction) per perf feedback.

    fwd = jax.jit(vitpose_wrapper_forward)
    out = jax.block_until_ready(fwd(params, x))
    assert out.shape == (B, NKPTS, H // 4, W // 4), out.shape
    assert out.dtype == jnp.float32
    print("KERNEL_OK")
</pallas_src>

<mosaic_0001>
module attributes {stable_mosaic.version = 11 : i64} {
  func.func @_vit_block_kernel(%arg0: i32, %arg1: memref<1x16x768xf32, #tpu.memory_space<vmem>>, %arg2: memref<768x32xf32, #tpu.memory_space<vmem>>, %arg3: memref<1x32xf32, #tpu.memory_space<vmem>>, %arg4: memref<16x32xf32, #tpu.memory_space<vmem>>, %arg5: memref<1x32xf32, #tpu.memory_space<vmem>>, %arg6: memref<1x32xf32, #tpu.memory_space<vmem>>, %arg7: memref<32x96xf32, #tpu.memory_space<vmem>>, %arg8: memref<1x96xf32, #tpu.memory_space<vmem>>, %arg9: memref<32x32xf32, #tpu.memory_space<vmem>>, %arg10: memref<1x32xf32, #tpu.memory_space<vmem>>, %arg11: memref<1x32xf32, #tpu.memory_space<vmem>>, %arg12: memref<1x32xf32, #tpu.memory_space<vmem>>, %arg13: memref<32x128xf32, #tpu.memory_space<vmem>>, %arg14: memref<1x128xf32, #tpu.memory_space<vmem>>, %arg15: memref<128x32xf32, #tpu.memory_space<vmem>>, %arg16: memref<1x32xf32, #tpu.memory_space<vmem>>, %arg17: memref<1x16x32xf32, #tpu.memory_space<vmem>>) attributes {dimension_semantics = [#tpu.dimension_semantics<parallel>], iteration_bounds = array<i64: 2>, scalar_prefetch = 0 : i64, scratch_operands = 0 : i64, tpu.core_type = #tpu.core_type<tc>, window_params = [{transform_indices = @transform_0, window_bounds = array<i64: 1, 16, 768>}, {pipeline_mode = #tpu.pipeline_mode<synchronous>, transform_indices = @transform_1, window_bounds = array<i64: 768, 32>}, {pipeline_mode = #tpu.pipeline_mode<synchronous>, transform_indices = @transform_2, window_bounds = array<i64: 1, 32>}, {pipeline_mode = #tpu.pipeline_mode<synchronous>, transform_indices = @transform_3, window_bounds = array<i64: 16, 32>}, {pipeline_mode = #tpu.pipeline_mode<synchronous>, transform_indices = @transform_4, window_bounds = array<i64: 1, 32>}, {pipeline_mode = #tpu.pipeline_mode<synchronous>, transform_indices = @transform_5, window_bounds = array<i64: 1, 32>}, {pipeline_mode = #tpu.pipeline_mode<synchronous>, transform_indices = @transform_6, window_bounds = array<i64: 32, 96>}, {pipeline_mode = #tpu.pipeline_mode<synchronous>, transform_indices = @transform_7, window_bounds = array<i64: 1, 96>}, {pipeline_mode = #tpu.pipeline_mode<synchronous>, transform_indices = @transform_8, window_bounds = array<i64: 32, 32>}, {pipeline_mode = #tpu.pipeline_mode<synchronous>, transform_indices = @transform_9, window_bounds = array<i64: 1, 32>}, {pipeline_mode = #tpu.pipeline_mode<synchronous>, transform_indices = @transform_10, window_bounds = array<i64: 1, 32>}, {pipeline_mode = #tpu.pipeline_mode<synchronous>, transform_indices = @transform_11, window_bounds = array<i64: 1, 32>}, {pipeline_mode = #tpu.pipeline_mode<synchronous>, transform_indices = @transform_12, window_bounds = array<i64: 32, 128>}, {pipeline_mode = #tpu.pipeline_mode<synchronous>, transform_indices = @transform_13, window_bounds = array<i64: 1, 128>}, {pipeline_mode = #tpu.pipeline_mode<synchronous>, transform_indices = @transform_14, window_bounds = array<i64: 128, 32>}, {pipeline_mode = #tpu.pipeline_mode<synchronous>, transform_indices = @transform_15, window_bounds = array<i64: 1, 32>}, {transform_indices = @transform_16, window_bounds = array<i64: 1, 16, 32>}]} {
    %c0 = arith.constant 0 : index
    %c0_0 = arith.constant 0 : index
    %c0_1 = arith.constant 0 : index
    %0 = vector.load %arg1[%c0, %c0_0, %c0_1] : memref<1x16x768xf32, #tpu.memory_space<vmem>>, vector<1x16x768xf32>
    %1 = vector.shape_cast %0 : vector<1x16x768xf32> to vector<16x768xf32>
    %c0_2 = arith.constant 0 : index
    %c0_3 = arith.constant 0 : index
    %2 = vector.load %arg2[%c0_2, %c0_3] : memref<768x32xf32, #tpu.memory_space<vmem>>, vector<768x32xf32>
    %cst = arith.constant dense<0.000000e+00> : vector<16x32xf32>
    %3 = tpu.matmul %1, %2, %cst {dimension_numbers = #tpu.dot_dimension_numbers<[1], [0], [0], [1], [0, 0, 1, 1], [], []>} : vector<16x768xf32>, vector<768x32xf32>, vector<16x32xf32> -> vector<16x32xf32>
    %c0_4 = arith.constant 0 : index
    %c0_5 = arith.constant 0 : index
    %4 = vector.load %arg3[%c0_4, %c0_5] : memref<1x32xf32, #tpu.memory_space<vmem>>, vector<1x32xf32>
    %5 = vector.broadcast %4 : vector<1x32xf32> to vector<16x32xf32>
    %6 = arith.addf %3, %5 : vector<16x32xf32>
    %c0_6 = arith.constant 0 : index
    %c0_7 = arith.constant 0 : index
    %7 = vector.load %arg4[%c0_6, %c0_7] : memref<16x32xf32, #tpu.memory_space<vmem>>, vector<16x32xf32>
    %8 = arith.addf %6, %7 : vector<16x32xf32>
    %c0_8 = arith.constant 0 : index
    %c0_9 = arith.constant 0 : index
    %9 = vector.load %arg5[%c0_8, %c0_9] : memref<1x32xf32, #tpu.memory_space<vmem>>, vector<1x32xf32>
    %c0_10 = arith.constant 0 : index
    %c0_11 = arith.constant 0 : index
    %10 = vector.load %arg6[%c0_10, %c0_11] : memref<1x32xf32, #tpu.memory_space<vmem>>, vector<1x32xf32>
    %cst_12 = arith.constant dense<0.000000e+00> : vector<16xf32>
    %11 = vector.multi_reduction <add>, %8, %cst_12 [1] : vector<16x32xf32> to vector<16xf32>
    %12 = vector.shape_cast %11 : vector<16xf32> to vector<16x1xf32>
    %cst_13 = arith.constant 3.200000e+01 : f32
    %13 = vector.broadcast %cst_13 : f32 to vector<16x1xf32>
    %14 = arith.divf %12, %13 : vector<16x1xf32>
    %15 = vector.broadcast %14 : vector<16x1xf32> to vector<16x32xf32>
    %16 = arith.subf %8, %15 : vector<16x32xf32>
    %17 = arith.mulf %16, %16 : vector<16x32xf32>
    %cst_14 = arith.constant dense<0.000000e+00> : vector<16xf32>
    %18 = vector.multi_reduction <add>, %17, %cst_14 [1] : vector<16x32xf32> to vector<16xf32>
    %19 = vector.shape_cast %18 : vector<16xf32> to vector<16x1xf32>
    %cst_15 = arith.constant 3.200000e+01 : f32
    %20 = vector.broadcast %cst_15 : f32 to vector<16x1xf32>
    %21 = arith.divf %19, %20 : vector<16x1xf32>
    %22 = vector.broadcast %14 : vector<16x1xf32> to vector<16x32xf32>
    %23 = arith.subf %8, %22 : vector<16x32xf32>
    %cst_16 = arith.constant 9.99999997E-7 : f32
    %24 = vector.broadcast %cst_16 : f32 to vector<16x1xf32>
    %25 = arith.addf %21, %24 : vector<16x1xf32>
    %26 = math.rsqrt %25 : vector<16x1xf32>
    %27 = vector.broadcast %26 : vector<16x1xf32> to vector<16x32xf32>
    %28 = arith.mulf %23, %27 : vector<16x32xf32>
    %29 = vector.broadcast %9 : vector<1x32xf32> to vector<16x32xf32>
    %30 = arith.mulf %28, %29 : vector<16x32xf32>
    %31 = vector.broadcast %10 : vector<1x32xf32> to vector<16x32xf32>
    %32 = arith.addf %30, %31 : vector<16x32xf32>
    %c0_17 = arith.constant 0 : index
    %c0_18 = arith.constant 0 : index
    %33 = vector.load %arg7[%c0_17, %c0_18] : memref<32x96xf32, #tpu.memory_space<vmem>>, vector<32x96xf32>
    %cst_19 = arith.constant dense<0.000000e+00> : vector<16x96xf32>
    %34 = tpu.matmul %32, %33, %cst_19 {dimension_numbers = #tpu.dot_dimension_numbers<[1], [0], [0], [1], [0, 0, 1, 1], [], []>} : vector<16x32xf32>, vector<32x96xf32>, vector<16x96xf32> -> vector<16x96xf32>
    %c0_20 = arith.constant 0 : index
    %c0_21 = arith.constant 0 : index
    %35 = vector.load %arg8[%c0_20, %c0_21] : memref<1x96xf32, #tpu.memory_space<vmem>>, vector<1x96xf32>
    %36 = vector.broadcast %35 : vector<1x96xf32> to vector<16x96xf32>
    %37 = arith.addf %34, %36 : vector<16x96xf32>
    %38 = vector.extract_strided_slice %37 {offsets = [0, 0], sizes = [16, 8], strides = [1, 1]} : vector<16x96xf32> to vector<16x8xf32>
    %39 = vector.extract_strided_slice %37 {offsets = [0, 32], sizes = [16, 8], strides = [1, 1]} : vector<16x96xf32> to vector<16x8xf32>
    %40 = vector.extract_strided_slice %37 {offsets = [0, 64], sizes = [16, 8], strides = [1, 1]} : vector<16x96xf32> to vector<16x8xf32>
    %cst_22 = arith.constant dense<0.000000e+00> : vector<16x16xf32>
    %41 = tpu.matmul %38, %39, %cst_22 {dimension_numbers = #tpu.dot_dimension_numbers<[1], [1], [0], [0], [0, 0, 1, 0], [], []>} : vector<16x8xf32>, vector<16x8xf32>, vector<16x16xf32> -> vector<16x16xf32>
    %cst_23 = arith.constant 0.353553385 : f32
    %42 = vector.broadcast %cst_23 : f32 to vector<16x16xf32>
    %43 = arith.mulf %41, %42 : vector<16x16xf32>
    %cst_24 = arith.constant dense<0xFF800000> : vector<16xf32>
    %44 = vector.multi_reduction <maximumf>, %43, %cst_24 [1] : vector<16x16xf32> to vector<16xf32>
    %45 = vector.shape_cast %44 : vector<16xf32> to vector<16x1xf32>
    %46 = vector.broadcast %45 : vector<16x1xf32> to vector<16x16xf32>
    %47 = arith.subf %43, %46 : vector<16x16xf32>
    %48 = math.exp %47 : vector<16x16xf32>
    %cst_25 = arith.constant dense<0.000000e+00> : vector<16xf32>
    %49 = vector.multi_reduction <add>, %48, %cst_25 [1] : vector<16x16xf32> to vector<16xf32>
    %50 = vector.shape_cast %49 : vector<16xf32> to vector<16x1xf32>
    %51 = vector.broadcast %50 : vector<16x1xf32> to vector<16x16xf32>
    %52 = arith.divf %48, %51 : vector<16x16xf32>
    %cst_26 = arith.constant dense<0.000000e+00> : vector<16x8xf32>
    %53 = tpu.matmul %52, %40, %cst_26 {dimension_numbers = #tpu.dot_dimension_numbers<[1], [0], [0], [1], [0, 0, 1, 1], [], []>} : vector<16x16xf32>, vector<16x8xf32>, vector<16x8xf32> -> vector<16x8xf32>
    %54 = vector.extract_strided_slice %37 {offsets = [0, 8], sizes = [16, 8], strides = [1, 1]} : vector<16x96xf32> to vector<16x8xf32>
    %55 = vector.extract_strided_slice %37 {offsets = [0, 40], sizes = [16, 8], strides = [1, 1]} : vector<16x96xf32> to vector<16x8xf32>
    %56 = vector.extract_strided_slice %37 {offsets = [0, 72], sizes = [16, 8], strides = [1, 1]} : vector<16x96xf32> to vector<16x8xf32>
    %cst_27 = arith.constant dense<0.000000e+00> : vector<16x16xf32>
    %57 = tpu.matmul %54, %55, %cst_27 {dimension_numbers = #tpu.dot_dimension_numbers<[1], [1], [0], [0], [0, 0, 1, 0], [], []>} : vector<16x8xf32>, vector<16x8xf32>, vector<16x16xf32> -> vector<16x16xf32>
    %cst_28 = arith.constant 0.353553385 : f32
    %58 = vector.broadcast %cst_28 : f32 to vector<16x16xf32>
    %59 = arith.mulf %57, %58 : vector<16x16xf32>
    %cst_29 = arith.constant dense<0xFF800000> : vector<16xf32>
    %60 = vector.multi_reduction <maximumf>, %59, %cst_29 [1] : vector<16x16xf32> to vector<16xf32>
    %61 = vector.shape_cast %60 : vector<16xf32> to vector<16x1xf32>
    %62 = vector.broadcast %61 : vector<16x1xf32> to vector<16x16xf32>
    %63 = arith.subf %59, %62 : vector<16x16xf32>
    %64 = math.exp %63 : vector<16x16xf32>
    %cst_30 = arith.constant dense<0.000000e+00> : vector<16xf32>
    %65 = vector.multi_reduction <add>, %64, %cst_30 [1] : vector<16x16xf32> to vector<16xf32>
    %66 = vector.shape_cast %65 : vector<16xf32> to vector<16x1xf32>
    %67 = vector.broadcast %66 : vector<16x1xf32> to vector<16x16xf32>
    %68 = arith.divf %64, %67 : vector<16x16xf32>
    %cst_31 = arith.constant dense<0.000000e+00> : vector<16x8xf32>
    %69 = tpu.matmul %68, %56, %cst_31 {dimension_numbers = #tpu.dot_dimension_numbers<[1], [0], [0], [1], [0, 0, 1, 1], [], []>} : vector<16x16xf32>, vector<16x8xf32>, vector<16x8xf32> -> vector<16x8xf32>
    %70 = vector.extract_strided_slice %37 {offsets = [0, 16], sizes = [16, 8], strides = [1, 1]} : vector<16x96xf32> to vector<16x8xf32>
    %71 = vector.extract_strided_slice %37 {offsets = [0, 48], sizes = [16, 8], strides = [1, 1]} : vector<16x96xf32> to vector<16x8xf32>
    %72 = vector.extract_strided_slice %37 {offsets = [0, 80], sizes = [16, 8], strides = [1, 1]} : vector<16x96xf32> to vector<16x8xf32>
    %cst_32 = arith.constant dense<0.000000e+00> : vector<16x16xf32>
    %73 = tpu.matmul %70, %71, %cst_32 {dimension_numbers = #tpu.dot_dimension_numbers<[1], [1], [0], [0], [0, 0, 1, 0], [], []>} : vector<16x8xf32>, vector<16x8xf32>, vector<16x16xf32> -> vector<16x16xf32>
    %cst_33 = arith.constant 0.353553385 : f32
    %74 = vector.broadcast %cst_33 : f32 to vector<16x16xf32>
    %75 = arith.mulf %73, %74 : vector<16x16xf32>
    %cst_34 = arith.constant dense<0xFF800000> : vector<16xf32>
    %76 = vector.multi_reduction <maximumf>, %75, %cst_34 [1] : vector<16x16xf32> to vector<16xf32>
    %77 = vector.shape_cast %76 : vector<16xf32> to vector<16x1xf32>
    %78 = vector.broadcast %77 : vector<16x1xf32> to vector<16x16xf32>
    %79 = arith.subf %75, %78 : vector<16x16xf32>
    %80 = math.exp %79 : vector<16x16xf32>
    %cst_35 = arith.constant dense<0.000000e+00> : vector<16xf32>
    %81 = vector.multi_reduction <add>, %80, %cst_35 [1] : vector<16x16xf32> to vector<16xf32>
    %82 = vector.shape_cast %81 : vector<16xf32> to vector<16x1xf32>
    %83 = vector.broadcast %82 : vector<16x1xf32> to vector<16x16xf32>
    %84 = arith.divf %80, %83 : vector<16x16xf32>
    %cst_36 = arith.constant dense<0.000000e+00> : vector<16x8xf32>
    %85 = tpu.matmul %84, %72, %cst_36 {dimension_numbers = #tpu.dot_dimension_numbers<[1], [0], [0], [1], [0, 0, 1, 1], [], []>} : vector<16x16xf32>, vector<16x8xf32>, vector<16x8xf32> -> vector<16x8xf32>
    %86 = vector.extract_strided_slice %37 {offsets = [0, 24], sizes = [16, 8], strides = [1, 1]} : vector<16x96xf32> to vector<16x8xf32>
    %87 = vector.extract_strided_slice %37 {offsets = [0, 56], sizes = [16, 8], strides = [1, 1]} : vector<16x96xf32> to vector<16x8xf32>
    %88 = vector.extract_strided_slice %37 {offsets = [0, 88], sizes = [16, 8], strides = [1, 1]} : vector<16x96xf32> to vector<16x8xf32>
    %cst_37 = arith.constant dense<0.000000e+00> : vector<16x16xf32>
    %89 = tpu.matmul %86, %87, %cst_37 {dimension_numbers = #tpu.dot_dimension_numbers<[1], [1], [0], [0], [0, 0, 1, 0], [], []>} : vector<16x8xf32>, vector<16x8xf32>, vector<16x16xf32> -> vector<16x16xf32>
    %cst_38 = arith.constant 0.353553385 : f32
    %90 = vector.broadcast %cst_38 : f32 to vector<16x16xf32>
    %91 = arith.mulf %89, %90 : vector<16x16xf32>
    %cst_39 = arith.constant dense<0xFF800000> : vector<16xf32>
    %92 = vector.multi_reduction <maximumf>, %91, %cst_39 [1] : vector<16x16xf32> to vector<16xf32>
    %93 = vector.shape_cast %92 : vector<16xf32> to vector<16x1xf32>
    %94 = vector.broadcast %93 : vector<16x1xf32> to vector<16x16xf32>
    %95 = arith.subf %91, %94 : vector<16x16xf32>
    %96 = math.exp %95 : vector<16x16xf32>
    %cst_40 = arith.constant dense<0.000000e+00> : vector<16xf32>
    %97 = vector.multi_reduction <add>, %96, %cst_40 [1] : vector<16x16xf32> to vector<16xf32>
    %98 = vector.shape_cast %97 : vector<16xf32> to vector<16x1xf32>
    %99 = vector.broadcast %98 : vector<16x1xf32> to vector<16x16xf32>
    %100 = arith.divf %96, %99 : vector<16x16xf32>
    %cst_41 = arith.constant dense<0.000000e+00> : vector<16x8xf32>
    %101 = tpu.matmul %100, %88, %cst_41 {dimension_numbers = #tpu.dot_dimension_numbers<[1], [0], [0], [1], [0, 0, 1, 1], [], []>} : vector<16x16xf32>, vector<16x8xf32>, vector<16x8xf32> -> vector<16x8xf32>
    %102 = tpu.concatenate %53, %69, %85, %101 in 1 : vector<16x8xf32>, vector<16x8xf32>, vector<16x8xf32>, vector<16x8xf32> -> vector<16x32xf32>
    %c0_42 = arith.constant 0 : index
    %c0_43 = arith.constant 0 : index
    %103 = vector.load %arg9[%c0_42, %c0_43] : memref<32x32xf32, #tpu.memory_space<vmem>>, vector<32x32xf32>
    %cst_44 = arith.constant dense<0.000000e+00> : vector<16x32xf32>
    %104 = tpu.matmul %102, %103, %cst_44 {dimension_numbers = #tpu.dot_dimension_numbers<[1], [0], [0], [1], [0, 0, 1, 1], [], []>} : vector<16x32xf32>, vector<32x32xf32>, vector<16x32xf32> -> vector<16x32xf32>
    %105 = arith.addf %8, %104 : vector<16x32xf32>
    %c0_45 = arith.constant 0 : index
    %c0_46 = arith.constant 0 : index
    %106 = vector.load %arg10[%c0_45, %c0_46] : memref<1x32xf32, #tpu.memory_space<vmem>>, vector<1x32xf32>
    %107 = vector.broadcast %106 : vector<1x32xf32> to vector<16x32xf32>
    %108 = arith.addf %105, %107 : vector<16x32xf32>
    %c0_47 = arith.constant 0 : index
    %c0_48 = arith.constant 0 : index
    %109 = vector.load %arg11[%c0_47, %c0_48] : memref<1x32xf32, #tpu.memory_space<vmem>>, vector<1x32xf32>
    %c0_49 = arith.constant 0 : index
    %c0_50 = arith.constant 0 : index
    %110 = vector.load %arg12[%c0_49, %c0_50] : memref<1x32xf32, #tpu.memory_space<vmem>>, vector<1x32xf32>
    %cst_51 = arith.constant dense<0.000000e+00> : vector<16xf32>
    %111 = vector.multi_reduction <add>, %108, %cst_51 [1] : vector<16x32xf32> to vector<16xf32>
    %112 = vector.shape_cast %111 : vector<16xf32> to vector<16x1xf32>
    %cst_52 = arith.constant 3.200000e+01 : f32
    %113 = vector.broadcast %cst_52 : f32 to vector<16x1xf32>
    %114 = arith.divf %112, %113 : vector<16x1xf32>
    %115 = vector.broadcast %114 : vector<16x1xf32> to vector<16x32xf32>
    %116 = arith.subf %108, %115 : vector<16x32xf32>
    %117 = arith.mulf %116, %116 : vector<16x32xf32>
    %cst_53 = arith.constant dense<0.000000e+00> : vector<16xf32>
    %118 = vector.multi_reduction <add>, %117, %cst_53 [1] : vector<16x32xf32> to vector<16xf32>
    %119 = vector.shape_cast %118 : vector<16xf32> to vector<16x1xf32>
    %cst_54 = arith.constant 3.200000e+01 : f32
    %120 = vector.broadcast %cst_54 : f32 to vector<16x1xf32>
    %121 = arith.divf %119, %120 : vector<16x1xf32>
    %122 = vector.broadcast %114 : vector<16x1xf32> to vector<16x32xf32>
    %123 = arith.subf %108, %122 : vector<16x32xf32>
    %cst_55 = arith.constant 9.99999997E-7 : f32
    %124 = vector.broadcast %cst_55 : f32 to vector<16x1xf32>
    %125 = arith.addf %121, %124 : vector<16x1xf32>
    %126 = math.rsqrt %125 : vector<16x1xf32>
    %127 = vector.broadcast %126 : vector<16x1xf32> to vector<16x32xf32>
    %128 = arith.mulf %123, %127 : vector<16x32xf32>
    %129 = vector.broadcast %109 : vector<1x32xf32> to vector<16x32xf32>
    %130 = arith.mulf %128, %129 : vector<16x32xf32>
    %131 = vector.broadcast %110 : vector<1x32xf32> to vector<16x32xf32>
    %132 = arith.addf %130, %131 : vector<16x32xf32>
    %c0_56 = arith.constant 0 : index
    %c0_57 = arith.constant 0 : index
    %133 = vector.load %arg13[%c0_56, %c0_57] : memref<32x128xf32, #tpu.memory_space<vmem>>, vector<32x128xf32>
    %cst_58 = arith.constant dense<0.000000e+00> : vector<16x128xf32>
    %134 = tpu.matmul %132, %133, %cst_58 {dimension_numbers = #tpu.dot_dimension_numbers<[1], [0], [0], [1], [0, 0, 1, 1], [], []>} : vector<16x32xf32>, vector<32x128xf32>, vector<16x128xf32> -> vector<16x128xf32>
    %c0_59 = arith.constant 0 : index
    %c0_60 = arith.constant 0 : index
    %135 = vector.load %arg14[%c0_59, %c0_60] : memref<1x128xf32, #tpu.memory_space<vmem>>, vector<1x128xf32>
    %136 = vector.broadcast %135 : vector<1x128xf32> to vector<16x128xf32>
    %137 = arith.addf %134, %136 : vector<16x128xf32>
    %138 = arith.mulf %137, %137 : vector<16x128xf32>
    %139 = arith.mulf %137, %138 : vector<16x128xf32>
    %cst_61 = arith.constant 4.471500e-02 : f32
    %140 = vector.broadcast %cst_61 : f32 to vector<16x128xf32>
    %141 = arith.mulf %140, %139 : vector<16x128xf32>
    %142 = arith.addf %137, %141 : vector<16x128xf32>
    %cst_62 = arith.constant 0.797884583 : f32
    %143 = vector.broadcast %cst_62 : f32 to vector<16x128xf32>
    %144 = arith.mulf %143, %142 : vector<16x128xf32>
    %145 = math.tanh %144 : vector<16x128xf32>
    %cst_63 = arith.constant 1.000000e+00 : f32
    %146 = vector.broadcast %cst_63 : f32 to vector<16x128xf32>
    %147 = arith.addf %146, %145 : vector<16x128xf32>
    %cst_64 = arith.constant 5.000000e-01 : f32
    %148 = vector.broadcast %cst_64 : f32 to vector<16x128xf32>
    %149 = arith.mulf %148, %147 : vector<16x128xf32>
    %150 = arith.mulf %137, %149 : vector<16x128xf32>
    %c0_65 = arith.constant 0 : index
    %c0_66 = arith.constant 0 : index
    %151 = vector.load %arg15[%c0_65, %c0_66] : memref<128x32xf32, #tpu.memory_space<vmem>>, vector<128x32xf32>
    %cst_67 = arith.constant dense<0.000000e+00> : vector<16x32xf32>
    %152 = tpu.matmul %150, %151, %cst_67 {dimension_numbers = #tpu.dot_dimension_numbers<[1], [0], [0], [1], [0, 0, 1, 1], [], []>} : vector<16x128xf32>, vector<128x32xf32>, vector<16x32xf32> -> vector<16x32xf32>
    %c0_68 = arith.constant 0 : index
    %c0_69 = arith.constant 0 : index
    %153 = vector.load %arg16[%c0_68, %c0_69] : memref<1x32xf32, #tpu.memory_space<vmem>>, vector<1x32xf32>
    %154 = vector.broadcast %153 : vector<1x32xf32> to vector<16x32xf32>
    %155 = arith.addf %152, %154 : vector<16x32xf32>
    %156 = arith.addf %108, %155 : vector<16x32xf32>
    %c0_70 = arith.constant 0 : index
    %c0_71 = arith.constant 0 : index
    %c0_72 = arith.constant 0 : index
    %157 = vector.load %arg17[%c0_70, %c0_71, %c0_72] : memref<1x16x32xf32, #tpu.memory_space<vmem>>, vector<1x16x32xf32>
    %158 = vector.shape_cast %157 : vector<1x16x32xf32> to vector<16x32xf32>
    %159 = vector.shape_cast %156 : vector<16x32xf32> to vector<1x16x32xf32>
    tpu.vector_store %arg17[%c0_70, %c0_71, %c0_72], %159 {strides = array<i32>} : memref<1x16x32xf32, #tpu.memory_space<vmem>>, vector<1x16x32xf32>,
    return
  }
  func.func @transform_0(%arg0: i32) -> (i32, i32, i32) {
    %c0_i32 = arith.constant 0 : i32
    %c0_i32_0 = arith.constant 0 : i32
    %c0_i32_1 = arith.constant 0 : i32
    return %arg0, %c0_i32, %c0_i32_0 : i32, i32, i32
  }
  func.func @transform_1(%arg0: i32) -> (i32, i32) {
    %c0_i32 = arith.constant 0 : i32
    %c0_i32_0 = arith.constant 0 : i32
    %c0_i32_1 = arith.constant 0 : i32
    return %c0_i32, %c0_i32_0 : i32, i32
  }
  func.func @transform_2(%arg0: i32) -> (i32, i32) {
    %c0_i32 = arith.constant 0 : i32
    %c0_i32_0 = arith.constant 0 : i32
    %c0_i32_1 = arith.constant 0 : i32
    return %c0_i32, %c0_i32_0 : i32, i32
  }
  func.func @transform_3(%arg0: i32) -> (i32, i32) {
    %c0_i32 = arith.constant 0 : i32
    %c0_i32_0 = arith.constant 0 : i32
    %c0_i32_1 = arith.constant 0 : i32
    return %c0_i32, %c0_i32_0 : i32, i32
  }
  func.func @transform_4(%arg0: i32) -> (i32, i32) {
    %c0_i32 = arith.constant 0 : i32
    %c0_i32_0 = arith.constant 0 : i32
    %c0_i32_1 = arith.constant 0 : i32
    return %c0_i32, %c0_i32_0 : i32, i32
  }
  func.func @transform_5(%arg0: i32) -> (i32, i32) {
    %c0_i32 = arith.constant 0 : i32
    %c0_i32_0 = arith.constant 0 : i32
    %c0_i32_1 = arith.constant 0 : i32
    return %c0_i32, %c0_i32_0 : i32, i32
  }
  func.func @transform_6(%arg0: i32) -> (i32, i32) {
    %c0_i32 = arith.constant 0 : i32
    %c0_i32_0 = arith.constant 0 : i32
    %c0_i32_1 = arith.constant 0 : i32
    return %c0_i32, %c0_i32_0 : i32, i32
  }
  func.func @transform_7(%arg0: i32) -> (i32, i32) {
    %c0_i32 = arith.constant 0 : i32
    %c0_i32_0 = arith.constant 0 : i32
    %c0_i32_1 = arith.constant 0 : i32
    return %c0_i32, %c0_i32_0 : i32, i32
  }
  func.func @transform_8(%arg0: i32) -> (i32, i32) {
    %c0_i32 = arith.constant 0 : i32
    %c0_i32_0 = arith.constant 0 : i32
    %c0_i32_1 = arith.constant 0 : i32
    return %c0_i32, %c0_i32_0 : i32, i32
  }
  func.func @transform_9(%arg0: i32) -> (i32, i32) {
    %c0_i32 = arith.constant 0 : i32
    %c0_i32_0 = arith.constant 0 : i32
    %c0_i32_1 = arith.constant 0 : i32
    return %c0_i32, %c0_i32_0 : i32, i32
  }
  func.func @transform_10(%arg0: i32) -> (i32, i32) {
    %c0_i32 = arith.constant 0 : i32
    %c0_i32_0 = arith.constant 0 : i32
    %c0_i32_1 = arith.constant 0 : i32
    return %c0_i32, %c0_i32_0 : i32, i32
  }
  func.func @transform_11(%arg0: i32) -> (i32, i32) {
    %c0_i32 = arith.constant 0 : i32
    %c0_i32_0 = arith.constant 0 : i32
    %c0_i32_1 = arith.constant 0 : i32
    return %c0_i32, %c0_i32_0 : i32, i32
  }
  func.func @transform_12(%arg0: i32) -> (i32, i32) {
    %c0_i32 = arith.constant 0 : i32
    %c0_i32_0 = arith.constant 0 : i32
    %c0_i32_1 = arith.constant 0 : i32
    return %c0_i32, %c0_i32_0 : i32, i32
  }
  func.func @transform_13(%arg0: i32) -> (i32, i32) {
    %c0_i32 = arith.constant 0 : i32
    %c0_i32_0 = arith.constant 0 : i32
    %c0_i32_1 = arith.constant 0 : i32
    return %c0_i32, %c0_i32_0 : i32, i32
  }
  func.func @transform_14(%arg0: i32) -> (i32, i32) {
    %c0_i32 = arith.constant 0 : i32
    %c0_i32_0 = arith.constant 0 : i32
    %c0_i32_1 = arith.constant 0 : i32
    return %c0_i32, %c0_i32_0 : i32, i32
  }
  func.func @transform_15(%arg0: i32) -> (i32, i32) {
    %c0_i32 = arith.constant 0 : i32
    %c0_i32_0 = arith.constant 0 : i32
    %c0_i32_1 = arith.constant 0 : i32
    return %c0_i32, %c0_i32_0 : i32, i32
  }
  func.func @transform_16(%arg0: i32) -> (i32, i32, i32) {
    %c0_i32 = arith.constant 0 : i32
    %c0_i32_0 = arith.constant 0 : i32
    %c0_i32_1 = arith.constant 0 : i32
    return %arg0, %c0_i32, %c0_i32_0 : i32, i32, i32
  }
}

module attributes {stable_mosaic.version = 11 : i64} {
  func.func @_vit_block_kernel(%arg0: i32, %arg1: memref<1x16x32xf32, #tpu.memory_space<vmem>>, %arg2: memref<1x32xf32, #tpu.memory_space<vmem>>, %arg3: memref<1x32xf32, #tpu.memory_space<vmem>>, %arg4: memref<32x96xf32, #tpu.memory_space<vmem>>, %arg5: memref<1x96xf32, #tpu.memory_space<vmem>>, %arg6: memref<32x32xf32, #tpu.memory_space<vmem>>, %arg7: memref<1x32xf32, #tpu.memory_space<vmem>>, %arg8: memref<1x32xf32, #tpu.memory_space<vmem>>, %arg9: memref<1x32xf32, #tpu.memory_space<vmem>>, %arg10: memref<32x128xf32, #tpu.memory_space<vmem>>, %arg11: memref<1x128xf32, #tpu.memory_space<vmem>>, %arg12: memref<128x32xf32, #tpu.memory_space<vmem>>, %arg13: memref<1x32xf32, #tpu.memory_space<vmem>>, %arg14: memref<1x32xf32, #tpu.memory_space<vmem>>, %arg15: memref<1x32xf32, #tpu.memory_space<vmem>>, %arg16: memref<1x16x32xf32, #tpu.memory_space<vmem>>) attributes {dimension_semantics = [#tpu.dimension_semantics<parallel>], iteration_bounds = array<i64: 2>, scalar_prefetch = 0 : i64, scratch_operands = 0 : i64, tpu.core_type = #tpu.core_type<tc>, window_params = [{transform_indices = @transform_0, window_bounds = array<i64: 1, 16, 32>}, {pipeline_mode = #tpu.pipeline_mode<synchronous>, transform_indices = @transform_1, window_bounds = array<i64: 1, 32>}, {pipeline_mode = #tpu.pipeline_mode<synchronous>, transform_indices = @transform_2, window_bounds = array<i64: 1, 32>}, {pipeline_mode = #tpu.pipeline_mode<synchronous>, transform_indices = @transform_3, window_bounds = array<i64: 32, 96>}, {pipeline_mode = #tpu.pipeline_mode<synchronous>, transform_indices = @transform_4, window_bounds = array<i64: 1, 96>}, {pipeline_mode = #tpu.pipeline_mode<synchronous>, transform_indices = @transform_5, window_bounds = array<i64: 32, 32>}, {pipeline_mode = #tpu.pipeline_mode<synchronous>, transform_indices = @transform_6, window_bounds = array<i64: 1, 32>}, {pipeline_mode = #tpu.pipeline_mode<synchronous>, transform_indices = @transform_7, window_bounds = array<i64: 1, 32>}, {pipeline_mode = #tpu.pipeline_mode<synchronous>, transform_indices = @transform_8, window_bounds = array<i64: 1, 32>}, {pipeline_mode = #tpu.pipeline_mode<synchronous>, transform_indices = @transform_9, window_bounds = array<i64: 32, 128>}, {pipeline_mode = #tpu.pipeline_mode<synchronous>, transform_indices = @transform_10, window_bounds = array<i64: 1, 128>}, {pipeline_mode = #tpu.pipeline_mode<synchronous>, transform_indices = @transform_11, window_bounds = array<i64: 128, 32>}, {pipeline_mode = #tpu.pipeline_mode<synchronous>, transform_indices = @transform_12, window_bounds = array<i64: 1, 32>}, {pipeline_mode = #tpu.pipeline_mode<synchronous>, transform_indices = @transform_13, window_bounds = array<i64: 1, 32>}, {pipeline_mode = #tpu.pipeline_mode<synchronous>, transform_indices = @transform_14, window_bounds = array<i64: 1, 32>}, {transform_indices = @transform_15, window_bounds = array<i64: 1, 16, 32>}]} {
    %c0 = arith.constant 0 : index
    %c0_0 = arith.constant 0 : index
    %c0_1 = arith.constant 0 : index
    %0 = vector.load %arg1[%c0, %c0_0, %c0_1] : memref<1x16x32xf32, #tpu.memory_space<vmem>>, vector<1x16x32xf32>
    %1 = vector.shape_cast %0 : vector<1x16x32xf32> to vector<16x32xf32>
    %c0_2 = arith.constant 0 : index
    %c0_3 = arith.constant 0 : index
    %2 = vector.load %arg2[%c0_2, %c0_3] : memref<1x32xf32, #tpu.memory_space<vmem>>, vector<1x32xf32>
    %c0_4 = arith.constant 0 : index
    %c0_5 = arith.constant 0 : index
    %3 = vector.load %arg3[%c0_4, %c0_5] : memref<1x32xf32, #tpu.memory_space<vmem>>, vector<1x32xf32>
    %cst = arith.constant dense<0.000000e+00> : vector<16xf32>
    %4 = vector.multi_reduction <add>, %1, %cst [1] : vector<16x32xf32> to vector<16xf32>
    %5 = vector.shape_cast %4 : vector<16xf32> to vector<16x1xf32>
    %cst_6 = arith.constant 3.200000e+01 : f32
    %6 = vector.broadcast %cst_6 : f32 to vector<16x1xf32>
    %7 = arith.divf %5, %6 : vector<16x1xf32>
    %8 = vector.broadcast %7 : vector<16x1xf32> to vector<16x32xf32>
    %9 = arith.subf %1, %8 : vector<16x32xf32>
    %10 = arith.mulf %9, %9 : vector<16x32xf32>
    %cst_7 = arith.constant dense<0.000000e+00> : vector<16xf32>
    %11 = vector.multi_reduction <add>, %10, %cst_7 [1] : vector<16x32xf32> to vector<16xf32>
    %12 = vector.shape_cast %11 : vector<16xf32> to vector<16x1xf32>
    %cst_8 = arith.constant 3.200000e+01 : f32
    %13 = vector.broadcast %cst_8 : f32 to vector<16x1xf32>
    %14 = arith.divf %12, %13 : vector<16x1xf32>
    %15 = vector.broadcast %7 : vector<16x1xf32> to vector<16x32xf32>
    %16 = arith.subf %1, %15 : vector<16x32xf32>
    %cst_9 = arith.constant 9.99999997E-7 : f32
    %17 = vector.broadcast %cst_9 : f32 to vector<16x1xf32>
    %18 = arith.addf %14, %17 : vector<16x1xf32>
    %19 = math.rsqrt %18 : vector<16x1xf32>
    %20 = vector.broadcast %19 : vector<16x1xf32> to vector<16x32xf32>
    %21 = arith.mulf %16, %20 : vector<16x32xf32>
    %22 = vector.broadcast %2 : vector<1x32xf32> to vector<16x32xf32>
    %23 = arith.mulf %21, %22 : vector<16x32xf32>
    %24 = vector.broadcast %3 : vector<1x32xf32> to vector<16x32xf32>
    %25 = arith.addf %23, %24 : vector<16x32xf32>
    %c0_10 = arith.constant 0 : index
    %c0_11 = arith.constant 0 : index
    %26 = vector.load %arg4[%c0_10, %c0_11] : memref<32x96xf32, #tpu.memory_space<vmem>>, vector<32x96xf32>
    %cst_12 = arith.constant dense<0.000000e+00> : vector<16x96xf32>
    %27 = tpu.matmul %25, %26, %cst_12 {dimension_numbers = #tpu.dot_dimension_numbers<[1], [0], [0], [1], [0, 0, 1, 1], [], []>} : vector<16x32xf32>, vector<32x96xf32>, vector<16x96xf32> -> vector<16x96xf32>
    %c0_13 = arith.constant 0 : index
    %c0_14 = arith.constant 0 : index
    %28 = vector.load %arg5[%c0_13, %c0_14] : memref<1x96xf32, #tpu.memory_space<vmem>>, vector<1x96xf32>
    %29 = vector.broadcast %28 : vector<1x96xf32> to vector<16x96xf32>
    %30 = arith.addf %27, %29 : vector<16x96xf32>
    %31 = vector.extract_strided_slice %30 {offsets = [0, 0], sizes = [16, 8], strides = [1, 1]} : vector<16x96xf32> to vector<16x8xf32>
    %32 = vector.extract_strided_slice %30 {offsets = [0, 32], sizes = [16, 8], strides = [1, 1]} : vector<16x96xf32> to vector<16x8xf32>
    %33 = vector.extract_strided_slice %30 {offsets = [0, 64], sizes = [16, 8], strides = [1, 1]} : vector<16x96xf32> to vector<16x8xf32>
    %cst_15 = arith.constant dense<0.000000e+00> : vector<16x16xf32>
    %34 = tpu.matmul %31, %32, %cst_15 {dimension_numbers = #tpu.dot_dimension_numbers<[1], [1], [0], [0], [0, 0, 1, 0], [], []>} : vector<16x8xf32>, vector<16x8xf32>, vector<16x16xf32> -> vector<16x16xf32>
    %cst_16 = arith.constant 0.353553385 : f32
    %35 = vector.broadcast %cst_16 : f32 to vector<16x16xf32>
    %36 = arith.mulf %34, %35 : vector<16x16xf32>
    %cst_17 = arith.constant dense<0xFF800000> : vector<16xf32>
    %37 = vector.multi_reduction <maximumf>, %36, %cst_17 [1] : vector<16x16xf32> to vector<16xf32>
    %38 = vector.shape_cast %37 : vector<16xf32> to vector<16x1xf32>
    %39 = vector.broadcast %38 : vector<16x1xf32> to vector<16x16xf32>
    %40 = arith.subf %36, %39 : vector<16x16xf32>
    %41 = math.exp %40 : vector<16x16xf32>
    %cst_18 = arith.constant dense<0.000000e+00> : vector<16xf32>
    %42 = vector.multi_reduction <add>, %41, %cst_18 [1] : vector<16x16xf32> to vector<16xf32>
    %43 = vector.shape_cast %42 : vector<16xf32> to vector<16x1xf32>
    %44 = vector.broadcast %43 : vector<16x1xf32> to vector<16x16xf32>
    %45 = arith.divf %41, %44 : vector<16x16xf32>
    %cst_19 = arith.constant dense<0.000000e+00> : vector<16x8xf32>
    %46 = tpu.matmul %45, %33, %cst_19 {dimension_numbers = #tpu.dot_dimension_numbers<[1], [0], [0], [1], [0, 0, 1, 1], [], []>} : vector<16x16xf32>, vector<16x8xf32>, vector<16x8xf32> -> vector<16x8xf32>
    %47 = vector.extract_strided_slice %30 {offsets = [0, 8], sizes = [16, 8], strides = [1, 1]} : vector<16x96xf32> to vector<16x8xf32>
    %48 = vector.extract_strided_slice %30 {offsets = [0, 40], sizes = [16, 8], strides = [1, 1]} : vector<16x96xf32> to vector<16x8xf32>
    %49 = vector.extract_strided_slice %30 {offsets = [0, 72], sizes = [16, 8], strides = [1, 1]} : vector<16x96xf32> to vector<16x8xf32>
    %cst_20 = arith.constant dense<0.000000e+00> : vector<16x16xf32>
    %50 = tpu.matmul %47, %48, %cst_20 {dimension_numbers = #tpu.dot_dimension_numbers<[1], [1], [0], [0], [0, 0, 1, 0], [], []>} : vector<16x8xf32>, vector<16x8xf32>, vector<16x16xf32> -> vector<16x16xf32>
    %cst_21 = arith.constant 0.353553385 : f32
    %51 = vector.broadcast %cst_21 : f32 to vector<16x16xf32>
    %52 = arith.mulf %50, %51 : vector<16x16xf32>
    %cst_22 = arith.constant dense<0xFF800000> : vector<16xf32>
    %53 = vector.multi_reduction <maximumf>, %52, %cst_22 [1] : vector<16x16xf32> to vector<16xf32>
    %54 = vector.shape_cast %53 : vector<16xf32> to vector<16x1xf32>
    %55 = vector.broadcast %54 : vector<16x1xf32> to vector<16x16xf32>
    %56 = arith.subf %52, %55 : vector<16x16xf32>
    %57 = math.exp %56 : vector<16x16xf32>
    %cst_23 = arith.constant dense<0.000000e+00> : vector<16xf32>
    %58 = vector.multi_reduction <add>, %57, %cst_23 [1] : vector<16x16xf32> to vector<16xf32>
    %59 = vector.shape_cast %58 : vector<16xf32> to vector<16x1xf32>
    %60 = vector.broadcast %59 : vector<16x1xf32> to vector<16x16xf32>
    %61 = arith.divf %57, %60 : vector<16x16xf32>
    %cst_24 = arith.constant dense<0.000000e+00> : vector<16x8xf32>
    %62 = tpu.matmul %61, %49, %cst_24 {dimension_numbers = #tpu.dot_dimension_numbers<[1], [0], [0], [1], [0, 0, 1, 1], [], []>} : vector<16x16xf32>, vector<16x8xf32>, vector<16x8xf32> -> vector<16x8xf32>
    %63 = vector.extract_strided_slice %30 {offsets = [0, 16], sizes = [16, 8], strides = [1, 1]} : vector<16x96xf32> to vector<16x8xf32>
    %64 = vector.extract_strided_slice %30 {offsets = [0, 48], sizes = [16, 8], strides = [1, 1]} : vector<16x96xf32> to vector<16x8xf32>
    %65 = vector.extract_strided_slice %30 {offsets = [0, 80], sizes = [16, 8], strides = [1, 1]} : vector<16x96xf32> to vector<16x8xf32>
    %cst_25 = arith.constant dense<0.000000e+00> : vector<16x16xf32>
    %66 = tpu.matmul %63, %64, %cst_25 {dimension_numbers = #tpu.dot_dimension_numbers<[1], [1], [0], [0], [0, 0, 1, 0], [], []>} : vector<16x8xf32>, vector<16x8xf32>, vector<16x16xf32> -> vector<16x16xf32>
    %cst_26 = arith.constant 0.353553385 : f32
    %67 = vector.broadcast %cst_26 : f32 to vector<16x16xf32>
    %68 = arith.mulf %66, %67 : vector<16x16xf32>
    %cst_27 = arith.constant dense<0xFF800000> : vector<16xf32>
    %69 = vector.multi_reduction <maximumf>, %68, %cst_27 [1] : vector<16x16xf32> to vector<16xf32>
    %70 = vector.shape_cast %69 : vector<16xf32> to vector<16x1xf32>
    %71 = vector.broadcast %70 : vector<16x1xf32> to vector<16x16xf32>
    %72 = arith.subf %68, %71 : vector<16x16xf32>
    %73 = math.exp %72 : vector<16x16xf32>
    %cst_28 = arith.constant dense<0.000000e+00> : vector<16xf32>
    %74 = vector.multi_reduction <add>, %73, %cst_28 [1] : vector<16x16xf32> to vector<16xf32>
    %75 = vector.shape_cast %74 : vector<16xf32> to vector<16x1xf32>
    %76 = vector.broadcast %75 : vector<16x1xf32> to vector<16x16xf32>
    %77 = arith.divf %73, %76 : vector<16x16xf32>
    %cst_29 = arith.constant dense<0.000000e+00> : vector<16x8xf32>
    %78 = tpu.matmul %77, %65, %cst_29 {dimension_numbers = #tpu.dot_dimension_numbers<[1], [0], [0], [1], [0, 0, 1, 1], [], []>} : vector<16x16xf32>, vector<16x8xf32>, vector<16x8xf32> -> vector<16x8xf32>
    %79 = vector.extract_strided_slice %30 {offsets = [0, 24], sizes = [16, 8], strides = [1, 1]} : vector<16x96xf32> to vector<16x8xf32>
    %80 = vector.extract_strided_slice %30 {offsets = [0, 56], sizes = [16, 8], strides = [1, 1]} : vector<16x96xf32> to vector<16x8xf32>
    %81 = vector.extract_strided_slice %30 {offsets = [0, 88], sizes = [16, 8], strides = [1, 1]} : vector<16x96xf32> to vector<16x8xf32>
    %cst_30 = arith.constant dense<0.000000e+00> : vector<16x16xf32>
    %82 = tpu.matmul %79, %80, %cst_30 {dimension_numbers = #tpu.dot_dimension_numbers<[1], [1], [0], [0], [0, 0, 1, 0], [], []>} : vector<16x8xf32>, vector<16x8xf32>, vector<16x16xf32> -> vector<16x16xf32>
    %cst_31 = arith.constant 0.353553385 : f32
    %83 = vector.broadcast %cst_31 : f32 to vector<16x16xf32>
    %84 = arith.mulf %82, %83 : vector<16x16xf32>
    %cst_32 = arith.constant dense<0xFF800000> : vector<16xf32>
    %85 = vector.multi_reduction <maximumf>, %84, %cst_32 [1] : vector<16x16xf32> to vector<16xf32>
    %86 = vector.shape_cast %85 : vector<16xf32> to vector<16x1xf32>
    %87 = vector.broadcast %86 : vector<16x1xf32> to vector<16x16xf32>
    %88 = arith.subf %84, %87 : vector<16x16xf32>
    %89 = math.exp %88 : vector<16x16xf32>
    %cst_33 = arith.constant dense<0.000000e+00> : vector<16xf32>
    %90 = vector.multi_reduction <add>, %89, %cst_33 [1] : vector<16x16xf32> to vector<16xf32>
    %91 = vector.shape_cast %90 : vector<16xf32> to vector<16x1xf32>
    %92 = vector.broadcast %91 : vector<16x1xf32> to vector<16x16xf32>
    %93 = arith.divf %89, %92 : vector<16x16xf32>
    %cst_34 = arith.constant dense<0.000000e+00> : vector<16x8xf32>
    %94 = tpu.matmul %93, %81, %cst_34 {dimension_numbers = #tpu.dot_dimension_numbers<[1], [0], [0], [1], [0, 0, 1, 1], [], []>} : vector<16x16xf32>, vector<16x8xf32>, vector<16x8xf32> -> vector<16x8xf32>
    %95 = tpu.concatenate %46, %62, %78, %94 in 1 : vector<16x8xf32>, vector<16x8xf32>, vector<16x8xf32>, vector<16x8xf32> -> vector<16x32xf32>
    %c0_35 = arith.constant 0 : index
    %c0_36 = arith.constant 0 : index
    %96 = vector.load %arg6[%c0_35, %c0_36] : memref<32x32xf32, #tpu.memory_space<vmem>>, vector<32x32xf32>
    %cst_37 = arith.constant dense<0.000000e+00> : vector<16x32xf32>
    %97 = tpu.matmul %95, %96, %cst_37 {dimension_numbers = #tpu.dot_dimension_numbers<[1], [0], [0], [1], [0, 0, 1, 1], [], []>} : vector<16x32xf32>, vector<32x32xf32>, vector<16x32xf32> -> vector<16x32xf32>
    %98 = arith.addf %1, %97 : vector<16x32xf32>
    %c0_38 = arith.constant 0 : index
    %c0_39 = arith.constant 0 : index
    %99 = vector.load %arg7[%c0_38, %c0_39] : memref<1x32xf32, #tpu.memory_space<vmem>>, vector<1x32xf32>
    %100 = vector.broadcast %99 : vector<1x32xf32> to vector<16x32xf32>
    %101 = arith.addf %98, %100 : vector<16x32xf32>
    %c0_40 = arith.constant 0 : index
    %c0_41 = arith.constant 0 : index
    %102 = vector.load %arg8[%c0_40, %c0_41] : memref<1x32xf32, #tpu.memory_space<vmem>>, vector<1x32xf32>
    %c0_42 = arith.constant 0 : index
    %c0_43 = arith.constant 0 : index
    %103 = vector.load %arg9[%c0_42, %c0_43] : memref<1x32xf32, #tpu.memory_space<vmem>>, vector<1x32xf32>
    %cst_44 = arith.constant dense<0.000000e+00> : vector<16xf32>
    %104 = vector.multi_reduction <add>, %101, %cst_44 [1] : vector<16x32xf32> to vector<16xf32>
    %105 = vector.shape_cast %104 : vector<16xf32> to vector<16x1xf32>
    %cst_45 = arith.constant 3.200000e+01 : f32
    %106 = vector.broadcast %cst_45 : f32 to vector<16x1xf32>
    %107 = arith.divf %105, %106 : vector<16x1xf32>
    %108 = vector.broadcast %107 : vector<16x1xf32> to vector<16x32xf32>
    %109 = arith.subf %101, %108 : vector<16x32xf32>
    %110 = arith.mulf %109, %109 : vector<16x32xf32>
    %cst_46 = arith.constant dense<0.000000e+00> : vector<16xf32>
    %111 = vector.multi_reduction <add>, %110, %cst_46 [1] : vector<16x32xf32> to vector<16xf32>
    %112 = vector.shape_cast %111 : vector<16xf32> to vector<16x1xf32>
    %cst_47 = arith.constant 3.200000e+01 : f32
    %113 = vector.broadcast %cst_47 : f32 to vector<16x1xf32>
    %114 = arith.divf %112, %113 : vector<16x1xf32>
    %115 = vector.broadcast %107 : vector<16x1xf32> to vector<16x32xf32>
    %116 = arith.subf %101, %115 : vector<16x32xf32>
    %cst_48 = arith.constant 9.99999997E-7 : f32
    %117 = vector.broadcast %cst_48 : f32 to vector<16x1xf32>
    %118 = arith.addf %114, %117 : vector<16x1xf32>
    %119 = math.rsqrt %118 : vector<16x1xf32>
    %120 = vector.broadcast %119 : vector<16x1xf32> to vector<16x32xf32>
    %121 = arith.mulf %116, %120 : vector<16x32xf32>
    %122 = vector.broadcast %102 : vector<1x32xf32> to vector<16x32xf32>
    %123 = arith.mulf %121, %122 : vector<16x32xf32>
    %124 = vector.broadcast %103 : vector<1x32xf32> to vector<16x32xf32>
    %125 = arith.addf %123, %124 : vector<16x32xf32>
    %c0_49 = arith.constant 0 : index
    %c0_50 = arith.constant 0 : index
    %126 = vector.load %arg10[%c0_49, %c0_50] : memref<32x128xf32, #tpu.memory_space<vmem>>, vector<32x128xf32>
    %cst_51 = arith.constant dense<0.000000e+00> : vector<16x128xf32>
    %127 = tpu.matmul %125, %126, %cst_51 {dimension_numbers = #tpu.dot_dimension_numbers<[1], [0], [0], [1], [0, 0, 1, 1], [], []>} : vector<16x32xf32>, vector<32x128xf32>, vector<16x128xf32> -> vector<16x128xf32>
    %c0_52 = arith.constant 0 : index
    %c0_53 = arith.constant 0 : index
    %128 = vector.load %arg11[%c0_52, %c0_53] : memref<1x128xf32, #tpu.memory_space<vmem>>, vector<1x128xf32>
    %129 = vector.broadcast %128 : vector<1x128xf32> to vector<16x128xf32>
    %130 = arith.addf %127, %129 : vector<16x128xf32>
    %131 = arith.mulf %130, %130 : vector<16x128xf32>
    %132 = arith.mulf %130, %131 : vector<16x128xf32>
    %cst_54 = arith.constant 4.471500e-02 : f32
    %133 = vector.broadcast %cst_54 : f32 to vector<16x128xf32>
    %134 = arith.mulf %133, %132 : vector<16x128xf32>
    %135 = arith.addf %130, %134 : vector<16x128xf32>
    %cst_55 = arith.constant 0.797884583 : f32
    %136 = vector.broadcast %cst_55 : f32 to vector<16x128xf32>
    %137 = arith.mulf %136, %135 : vector<16x128xf32>
    %138 = math.tanh %137 : vector<16x128xf32>
    %cst_56 = arith.constant 1.000000e+00 : f32
    %139 = vector.broadcast %cst_56 : f32 to vector<16x128xf32>
    %140 = arith.addf %139, %138 : vector<16x128xf32>
    %cst_57 = arith.constant 5.000000e-01 : f32
    %141 = vector.broadcast %cst_57 : f32 to vector<16x128xf32>
    %142 = arith.mulf %141, %140 : vector<16x128xf32>
    %143 = arith.mulf %130, %142 : vector<16x128xf32>
    %c0_58 = arith.constant 0 : index
    %c0_59 = arith.constant 0 : index
    %144 = vector.load %arg12[%c0_58, %c0_59] : memref<128x32xf32, #tpu.memory_space<vmem>>, vector<128x32xf32>
    %cst_60 = arith.constant dense<0.000000e+00> : vector<16x32xf32>
    %145 = tpu.matmul %143, %144, %cst_60 {dimension_numbers = #tpu.dot_dimension_numbers<[1], [0], [0], [1], [0, 0, 1, 1], [], []>} : vector<16x128xf32>, vector<128x32xf32>, vector<16x32xf32> -> vector<16x32xf32>
    %c0_61 = arith.constant 0 : index
    %c0_62 = arith.constant 0 : index
    %146 = vector.load %arg13[%c0_61, %c0_62] : memref<1x32xf32, #tpu.memory_space<vmem>>, vector<1x32xf32>
    %147 = vector.broadcast %146 : vector<1x32xf32> to vector<16x32xf32>
    %148 = arith.addf %145, %147 : vector<16x32xf32>
    %149 = arith.addf %101, %148 : vector<16x32xf32>
    %c0_63 = arith.constant 0 : index
    %c0_64 = arith.constant 0 : index
    %150 = vector.load %arg14[%c0_63, %c0_64] : memref<1x32xf32, #tpu.memory_space<vmem>>, vector<1x32xf32>
    %c0_65 = arith.constant 0 : index
    %c0_66 = arith.constant 0 : index
    %151 = vector.load %arg15[%c0_65, %c0_66] : memref<1x32xf32, #tpu.memory_space<vmem>>, vector<1x32xf32>
    %cst_67 = arith.constant dense<0.000000e+00> : vector<16xf32>
    %152 = vector.multi_reduction <add>, %149, %cst_67 [1] : vector<16x32xf32> to vector<16xf32>
    %153 = vector.shape_cast %152 : vector<16xf32> to vector<16x1xf32>
    %cst_68 = arith.constant 3.200000e+01 : f32
    %154 = vector.broadcast %cst_68 : f32 to vector<16x1xf32>
    %155 = arith.divf %153, %154 : vector<16x1xf32>
    %156 = vector.broadcast %155 : vector<16x1xf32> to vector<16x32xf32>
    %157 = arith.subf %149, %156 : vector<16x32xf32>
    %158 = arith.mulf %157, %157 : vector<16x32xf32>
    %cst_69 = arith.constant dense<0.000000e+00> : vector<16xf32>
    %159 = vector.multi_reduction <add>, %158, %cst_69 [1] : vector<16x32xf32> to vector<16xf32>
    %160 = vector.shape_cast %159 : vector<16xf32> to vector<16x1xf32>
    %cst_70 = arith.constant 3.200000e+01 : f32
    %161 = vector.broadcast %cst_70 : f32 to vector<16x1xf32>
    %162 = arith.divf %160, %161 : vector<16x1xf32>
    %163 = vector.broadcast %155 : vector<16x1xf32> to vector<16x32xf32>
    %164 = arith.subf %149, %163 : vector<16x32xf32>
    %cst_71 = arith.constant 9.99999997E-7 : f32
    %165 = vector.broadcast %cst_71 : f32 to vector<16x1xf32>
    %166 = arith.addf %162, %165 : vector<16x1xf32>
    %167 = math.rsqrt %166 : vector<16x1xf32>
    %168 = vector.broadcast %167 : vector<16x1xf32> to vector<16x32xf32>
    %169 = arith.mulf %164, %168 : vector<16x32xf32>
    %170 = vector.broadcast %150 : vector<1x32xf32> to vector<16x32xf32>
    %171 = arith.mulf %169, %170 : vector<16x32xf32>
    %172 = vector.broadcast %151 : vector<1x32xf32> to vector<16x32xf32>
    %173 = arith.addf %171, %172 : vector<16x32xf32>
    %c0_72 = arith.constant 0 : index
    %c0_73 = arith.constant 0 : index
    %c0_74 = arith.constant 0 : index
    %174 = vector.load %arg16[%c0_72, %c0_73, %c0_74] : memref<1x16x32xf32, #tpu.memory_space<vmem>>, vector<1x16x32xf32>
    %175 = vector.shape_cast %174 : vector<1x16x32xf32> to vector<16x32xf32>
    %176 = vector.shape_cast %173 : vector<16x32xf32> to vector<1x16x32xf32>
    tpu.vector_store %arg16[%c0_72, %c0_73, %c0_74], %176 {strides = array<i32>} : memref<1x16x32xf32, #tpu.memory_space<vmem>>, vector<1x16x32xf32>,
    return
  }
  func.func @transform_0(%arg0: i32) -> (i32, i32, i32) {
    %c0_i32 = arith.constant 0 : i32
    %c0_i32_0 = arith.constant 0 : i32
    %c0_i32_1 = arith.constant 0 : i32
    return %arg0, %c0_i32, %c0_i32_0 : i32, i32, i32
  }
  func.func @transform_1(%arg0: i32) -> (i32, i32) {
    %c0_i32 = arith.constant 0 : i32
    %c0_i32_0 = arith.constant 0 : i32
    %c0_i32_1 = arith.constant 0 : i32
    return %c0_i32, %c0_i32_0 : i32, i32
  }
  func.func @transform_2(%arg0: i32) -> (i32, i32) {
    %c0_i32 = arith.constant 0 : i32
    %c0_i32_0 = arith.constant 0 : i32
    %c0_i32_1 = arith.constant 0 : i32
    return %c0_i32, %c0_i32_0 : i32, i32
  }
  func.func @transform_3(%arg0: i32) -> (i32, i32) {
    %c0_i32 = arith.constant 0 : i32
    %c0_i32_0 = arith.constant 0 : i32
    %c0_i32_1 = arith.constant 0 : i32
    return %c0_i32, %c0_i32_0 : i32, i32
  }
  func.func @transform_4(%arg0: i32) -> (i32, i32) {
    %c0_i32 = arith.constant 0 : i32
    %c0_i32_0 = arith.constant 0 : i32
    %c0_i32_1 = arith.constant 0 : i32
    return %c0_i32, %c0_i32_0 : i32, i32
  }
  func.func @transform_5(%arg0: i32) -> (i32, i32) {
    %c0_i32 = arith.constant 0 : i32
    %c0_i32_0 = arith.constant 0 : i32
    %c0_i32_1 = arith.constant 0 : i32
    return %c0_i32, %c0_i32_0 : i32, i32
  }
  func.func @transform_6(%arg0: i32) -> (i32, i32) {
    %c0_i32 = arith.constant 0 : i32
    %c0_i32_0 = arith.constant 0 : i32
    %c0_i32_1 = arith.constant 0 : i32
    return %c0_i32, %c0_i32_0 : i32, i32
  }
  func.func @transform_7(%arg0: i32) -> (i32, i32) {
    %c0_i32 = arith.constant 0 : i32
    %c0_i32_0 = arith.constant 0 : i32
    %c0_i32_1 = arith.constant 0 : i32
    return %c0_i32, %c0_i32_0 : i32, i32
  }
  func.func @transform_8(%arg0: i32) -> (i32, i32) {
    %c0_i32 = arith.constant 0 : i32
    %c0_i32_0 = arith.constant 0 : i32
    %c0_i32_1 = arith.constant 0 : i32
    return %c0_i32, %c0_i32_0 : i32, i32
  }
  func.func @transform_9(%arg0: i32) -> (i32, i32) {
    %c0_i32 = arith.constant 0 : i32
    %c0_i32_0 = arith.constant 0 : i32
    %c0_i32_1 = arith.constant 0 : i32
    return %c0_i32, %c0_i32_0 : i32, i32
  }
  func.func @transform_10(%arg0: i32) -> (i32, i32) {
    %c0_i32 = arith.constant 0 : i32
    %c0_i32_0 = arith.constant 0 : i32
    %c0_i32_1 = arith.constant 0 : i32
    return %c0_i32, %c0_i32_0 : i32, i32
  }
  func.func @transform_11(%arg0: i32) -> (i32, i32) {
    %c0_i32 = arith.constant 0 : i32
    %c0_i32_0 = arith.constant 0 : i32
    %c0_i32_1 = arith.constant 0 : i32
    return %c0_i32, %c0_i32_0 : i32, i32
  }
  func.func @transform_12(%arg0: i32) -> (i32, i32) {
    %c0_i32 = arith.constant 0 : i32
    %c0_i32_0 = arith.constant 0 : i32
    %c0_i32_1 = arith.constant 0 : i32
    return %c0_i32, %c0_i32_0 : i32, i32
  }
  func.func @transform_13(%arg0: i32) -> (i32, i32) {
    %c0_i32 = arith.constant 0 : i32
    %c0_i32_0 = arith.constant 0 : i32
    %c0_i32_1 = arith.constant 0 : i32
    return %c0_i32, %c0_i32_0 : i32, i32
  }
  func.func @transform_14(%arg0: i32) -> (i32, i32) {
    %c0_i32 = arith.constant 0 : i32
    %c0_i32_0 = arith.constant 0 : i32
    %c0_i32_1 = arith.constant 0 : i32
    return %c0_i32, %c0_i32_0 : i32, i32
  }
  func.func @transform_15(%arg0: i32) -> (i32, i32, i32) {
    %c0_i32 = arith.constant 0 : i32
    %c0_i32_0 = arith.constant 0 : i32
    %c0_i32_1 = arith.constant 0 : i32
    return %arg0, %c0_i32, %c0_i32_0 : i32, i32, i32
  }
}

module attributes {stable_mosaic.version = 11 : i64} {
  func.func @_deconv_bn_relu_kernel(%arg0: i32, %arg1: memref<1x16x32xf32, #tpu.memory_space<vmem>>, %arg2: memref<9x32x128xf32, #tpu.memory_space<vmem>>, %arg3: memref<1x128xf32, #tpu.memory_space<vmem>>, %arg4: memref<1x16x128xf32, #tpu.memory_space<vmem>>, %arg5: memref<26x32xf32, #tpu.memory_space<vmem>>) attributes {dimension_semantics = [#tpu.dimension_semantics<parallel>], iteration_bounds = array<i64: 2>, scalar_prefetch = 0 : i64, scratch_operands = 1 : i64, tpu.core_type = #tpu.core_type<tc>, window_params = [{transform_indices = @transform_0, window_bounds = array<i64: 1, 16, 32>}, {pipeline_mode = #tpu.pipeline_mode<synchronous>, transform_indices = @transform_1, window_bounds = array<i64: 9, 32, 128>}, {pipeline_mode = #tpu.pipeline_mode<synchronous>, transform_indices = @transform_2, window_bounds = array<i64: 1, 128>}, {transform_indices = @transform_3, window_bounds = array<i64: 1, 16, 128>}]} {
    %cst = arith.constant 0.000000e+00 : f32
    %0 = vector.broadcast %cst : f32 to vector<26x32xf32>
    %c0 = arith.constant 0 : index
    %c0_0 = arith.constant 0 : index
    %1 = vector.load %arg5[%c0, %c0_0] : memref<26x32xf32, #tpu.memory_space<vmem>>, vector<26x32xf32>
    tpu.vector_store %arg5[%c0, %c0_0], %0 {strides = array<i32>} : memref<26x32xf32, #tpu.memory_space<vmem>>, vector<26x32xf32>,
    %c0_1 = arith.constant 0 : index
    %c0_2 = arith.constant 0 : index
    %c0_3 = arith.constant 0 : index
    %2 = vector.load %arg1[%c0_1, %c0_2, %c0_3] : memref<1x16x32xf32, #tpu.memory_space<vmem>>, vector<1x16x32xf32>
    %3 = vector.shape_cast %2 : vector<1x16x32xf32> to vector<16x32xf32>
    %c5 = arith.constant 5 : index
    %c0_4 = arith.constant 0 : index
    %4 = vector.load %arg5[%c5, %c0_4] : memref<26x32xf32, #tpu.memory_space<vmem>>, vector<16x32xf32>
    tpu.vector_store %arg5[%c5, %c0_4], %3 {strides = array<i32>} : memref<26x32xf32, #tpu.memory_space<vmem>>, vector<16x32xf32>,
    %5 = tpu.iota {dimensions = array<i32: 0>} : vector<16x1xi32>
    %c4_i32 = arith.constant 4 : i32
    %c0_i32 = arith.constant 0 : i32
    %6 = arith.cmpi eq, %c4_i32, %c0_i32 : i32
    %c1_i32 = arith.constant 1 : i32
    %7 = arith.select %6, %c1_i32, %c4_i32 : i32
    %8 = vector.broadcast %7 : i32 to vector<16x1xi32>
    %9 = arith.remsi %5, %8 : vector<16x1xi32>
    %c0_i32_5 = arith.constant 0 : i32
    %10 = vector.broadcast %c0_i32_5 : i32 to vector<16x1xi32>
    %11 = arith.cmpi ne, %9, %10 : vector<16x1xi32>
    %c0_i32_6 = arith.constant 0 : i32
    %12 = vector.broadcast %c0_i32_6 : i32 to vector<16x1xi32>
    %13 = arith.cmpi slt, %9, %12 : vector<16x1xi32>
    %c0_i32_7 = arith.constant 0 : i32
    %14 = arith.cmpi slt, %7, %c0_i32_7 : i32
    %15 = vector.broadcast %14 : i1 to vector<16x1xi1>
    %16 = vector.broadcast %15 : vector<16x1xi1> to vector<16x1xi1>
    %17 = arith.xori %13, %16 : vector<16x1xi1>
    %18 = arith.andi %17, %11 : vector<16x1xi1>
    %19 = vector.broadcast %7 : i32 to vector<16x1xi32>
    %20 = arith.addi %9, %19 : vector<16x1xi32>
    %21 = arith.select %18, %20, %9 : vector<16x1xi1>, vector<16x1xi32>
    %cst_8 = arith.constant 0.000000e+00 : f32
    %22 = vector.broadcast %cst_8 : f32 to vector<16x128xf32>
    %c0_9 = arith.constant 0 : index
    %c0_10 = arith.constant 0 : index
    %23 = vector.load %arg5[%c0_9, %c0_10] : memref<26x32xf32, #tpu.memory_space<vmem>>, vector<16x32xf32>
    %c0_i32_11 = arith.constant 0 : i32
    %24 = vector.broadcast %c0_i32_11 : i32 to vector<16x1xi32>
    %25 = arith.cmpi sgt, %21, %24 : vector<16x1xi32>
    %cst_12 = arith.constant 0.000000e+00 : f32
    %26 = vector.shape_cast %25 : vector<16x1xi1> to vector<16x1xi1>
    %27 = vector.broadcast %26 : vector<16x1xi1> to vector<16x32xi1>
    %28 = vector.broadcast %cst_12 : f32 to vector<16x32xf32>
    %29 = arith.select %27, %23, %28 : vector<16x32xi1>, vector<16x32xf32>
    %c0_13 = arith.constant 0 : index
    %c0_14 = arith.constant 0 : index
    %c0_15 = arith.constant 0 : index
    %30 = vector.load %arg2[%c0_13, %c0_14, %c0_15] : memref<9x32x128xf32, #tpu.memory_space<vmem>>, vector<1x32x128xf32>
    %31 = vector.shape_cast %30 : vector<1x32x128xf32> to vector<32x128xf32>
    %cst_16 = arith.constant dense<0.000000e+00> : vector<16x128xf32>
    %32 = tpu.matmul %29, %31, %cst_16 {dimension_numbers = #tpu.dot_dimension_numbers<[1], [0], [0], [1], [0, 0, 1, 1], [], []>} : vector<16x32xf32>, vector<32x128xf32>, vector<16x128xf32> -> vector<16x128xf32>
    %33 = arith.addf %22, %32 : vector<16x128xf32>
    %c1 = arith.constant 1 : index
    %c0_17 = arith.constant 0 : index
    %34 = vector.load %arg5[%c1, %c0_17] : memref<26x32xf32, #tpu.memory_space<vmem>>, vector<16x32xf32>
    %c1_18 = arith.constant 1 : index
    %c0_19 = arith.constant 0 : index
    %c0_20 = arith.constant 0 : index
    %35 = vector.load %arg2[%c1_18, %c0_19, %c0_20] : memref<9x32x128xf32, #tpu.memory_space<vmem>>, vector<1x32x128xf32>
    %36 = vector.shape_cast %35 : vector<1x32x128xf32> to vector<32x128xf32>
    %cst_21 = arith.constant dense<0.000000e+00> : vector<16x128xf32>
    %37 = tpu.matmul %34, %36, %cst_21 {dimension_numbers = #tpu.dot_dimension_numbers<[1], [0], [0], [1], [0, 0, 1, 1], [], []>} : vector<16x32xf32>, vector<32x128xf32>, vector<16x128xf32> -> vector<16x128xf32>
    %38 = arith.addf %33, %37 : vector<16x128xf32>
    %c2 = arith.constant 2 : index
    %c0_22 = arith.constant 0 : index
    %39 = vector.load %arg5[%c2, %c0_22] : memref<26x32xf32, #tpu.memory_space<vmem>>, vector<16x32xf32>
    %c3_i32 = arith.constant 3 : i32
    %40 = vector.broadcast %c3_i32 : i32 to vector<16x1xi32>
    %41 = arith.cmpi slt, %21, %40 : vector<16x1xi32>
    %cst_23 = arith.constant 0.000000e+00 : f32
    %42 = vector.shape_cast %41 : vector<16x1xi1> to vector<16x1xi1>
    %43 = vector.broadcast %42 : vector<16x1xi1> to vector<16x32xi1>
    %44 = vector.broadcast %cst_23 : f32 to vector<16x32xf32>
    %45 = arith.select %43, %39, %44 : vector<16x32xi1>, vector<16x32xf32>
    %c2_24 = arith.constant 2 : index
    %c0_25 = arith.constant 0 : index
    %c0_26 = arith.constant 0 : index
    %46 = vector.load %arg2[%c2_24, %c0_25, %c0_26] : memref<9x32x128xf32, #tpu.memory_space<vmem>>, vector<1x32x128xf32>
    %47 = vector.shape_cast %46 : vector<1x32x128xf32> to vector<32x128xf32>
    %cst_27 = arith.constant dense<0.000000e+00> : vector<16x128xf32>
    %48 = tpu.matmul %45, %47, %cst_27 {dimension_numbers = #tpu.dot_dimension_numbers<[1], [0], [0], [1], [0, 0, 1, 1], [], []>} : vector<16x32xf32>, vector<32x128xf32>, vector<16x128xf32> -> vector<16x128xf32>
    %49 = arith.addf %38, %48 : vector<16x128xf32>
    %c4 = arith.constant 4 : index
    %c0_28 = arith.constant 0 : index
    %50 = vector.load %arg5[%c4, %c0_28] : memref<26x32xf32, #tpu.memory_space<vmem>>, vector<16x32xf32>
    %c0_i32_29 = arith.constant 0 : i32
    %51 = vector.broadcast %c0_i32_29 : i32 to vector<16x1xi32>
    %52 = arith.cmpi sgt, %21, %51 : vector<16x1xi32>
    %cst_30 = arith.constant 0.000000e+00 : f32
    %53 = vector.shape_cast %52 : vector<16x1xi1> to vector<16x1xi1>
    %54 = vector.broadcast %53 : vector<16x1xi1> to vector<16x32xi1>
    %55 = vector.broadcast %cst_30 : f32 to vector<16x32xf32>
    %56 = arith.select %54, %50, %55 : vector<16x32xi1>, vector<16x32xf32>
    %c3 = arith.constant 3 : index
    %c0_31 = arith.constant 0 : index
    %c0_32 = arith.constant 0 : index
    %57 = vector.load %arg2[%c3, %c0_31, %c0_32] : memref<9x32x128xf32, #tpu.memory_space<vmem>>, vector<1x32x128xf32>
    %58 = vector.shape_cast %57 : vector<1x32x128xf32> to vector<32x128xf32>
    %cst_33 = arith.constant dense<0.000000e+00> : vector<16x128xf32>
    %59 = tpu.matmul %56, %58, %cst_33 {dimension_numbers = #tpu.dot_dimension_numbers<[1], [0], [0], [1], [0, 0, 1, 1], [], []>} : vector<16x32xf32>, vector<32x128xf32>, vector<16x128xf32> -> vector<16x128xf32>
    %60 = arith.addf %49, %59 : vector<16x128xf32>
    %c5_34 = arith.constant 5 : index
    %c0_35 = arith.constant 0 : index
    %61 = vector.load %arg5[%c5_34, %c0_35] : memref<26x32xf32, #tpu.memory_space<vmem>>, vector<16x32xf32>
    %c4_36 = arith.constant 4 : index
    %c0_37 = arith.constant 0 : index
    %c0_38 = arith.constant 0 : index
    %62 = vector.load %arg2[%c4_36, %c0_37, %c0_38] : memref<9x32x128xf32, #tpu.memory_space<vmem>>, vector<1x32x128xf32>
    %63 = vector.shape_cast %62 : vector<1x32x128xf32> to vector<32x128xf32>
    %cst_39 = arith.constant dense<0.000000e+00> : vector<16x128xf32>
    %64 = tpu.matmul %61, %63, %cst_39 {dimension_numbers = #tpu.dot_dimension_numbers<[1], [0], [0], [1], [0, 0, 1, 1], [], []>} : vector<16x32xf32>, vector<32x128xf32>, vector<16x128xf32> -> vector<16x128xf32>
    %65 = arith.addf %60, %64 : vector<16x128xf32>
    %c6 = arith.constant 6 : index
    %c0_40 = arith.constant 0 : index
    %66 = vector.load %arg5[%c6, %c0_40] : memref<26x32xf32, #tpu.memory_space<vmem>>, vector<16x32xf32>
    %c3_i32_41 = arith.constant 3 : i32
    %67 = vector.broadcast %c3_i32_41 : i32 to vector<16x1xi32>
    %68 = arith.cmpi slt, %21, %67 : vector<16x1xi32>
    %cst_42 = arith.constant 0.000000e+00 : f32
    %69 = vector.shape_cast %68 : vector<16x1xi1> to vector<16x1xi1>
    %70 = vector.broadcast %69 : vector<16x1xi1> to vector<16x32xi1>
    %71 = vector.broadcast %cst_42 : f32 to vector<16x32xf32>
    %72 = arith.select %70, %66, %71 : vector<16x32xi1>, vector<16x32xf32>
    %c5_43 = arith.constant 5 : index
    %c0_44 = arith.constant 0 : index
    %c0_45 = arith.constant 0 : index
    %73 = vector.load %arg2[%c5_43, %c0_44, %c0_45] : memref<9x32x128xf32, #tpu.memory_space<vmem>>, vector<1x32x128xf32>
    %74 = vector.shape_cast %73 : vector<1x32x128xf32> to vector<32x128xf32>
    %cst_46 = arith.constant dense<0.000000e+00> : vector<16x128xf32>
    %75 = tpu.matmul %72, %74, %cst_46 {dimension_numbers = #tpu.dot_dimension_numbers<[1], [0], [0], [1], [0, 0, 1, 1], [], []>} : vector<16x32xf32>, vector<32x128xf32>, vector<16x128xf32> -> vector<16x128xf32>
    %76 = arith.addf %65, %75 : vector<16x128xf32>
    %c8 = arith.constant 8 : index
    %c0_47 = arith.constant 0 : index
    %77 = vector.load %arg5[%c8, %c0_47] : memref<26x32xf32, #tpu.memory_space<vmem>>, vector<16x32xf32>
    %c0_i32_48 = arith.constant 0 : i32
    %78 = vector.broadcast %c0_i32_48 : i32 to vector<16x1xi32>
    %79 = arith.cmpi sgt, %21, %78 : vector<16x1xi32>
    %cst_49 = arith.constant 0.000000e+00 : f32
    %80 = vector.shape_cast %79 : vector<16x1xi1> to vector<16x1xi1>
    %81 = vector.broadcast %80 : vector<16x1xi1> to vector<16x32xi1>
    %82 = vector.broadcast %cst_49 : f32 to vector<16x32xf32>
    %83 = arith.select %81, %77, %82 : vector<16x32xi1>, vector<16x32xf32>
    %c6_50 = arith.constant 6 : index
    %c0_51 = arith.constant 0 : index
    %c0_52 = arith.constant 0 : index
    %84 = vector.load %arg2[%c6_50, %c0_51, %c0_52] : memref<9x32x128xf32, #tpu.memory_space<vmem>>, vector<1x32x128xf32>
    %85 = vector.shape_cast %84 : vector<1x32x128xf32> to vector<32x128xf32>
    %cst_53 = arith.constant dense<0.000000e+00> : vector<16x128xf32>
    %86 = tpu.matmul %83, %85, %cst_53 {dimension_numbers = #tpu.dot_dimension_numbers<[1], [0], [0], [1], [0, 0, 1, 1], [], []>} : vector<16x32xf32>, vector<32x128xf32>, vector<16x128xf32> -> vector<16x128xf32>
    %87 = arith.addf %76, %86 : vector<16x128xf32>
    %c9 = arith.constant 9 : index
    %c0_54 = arith.constant 0 : index
    %88 = vector.load %arg5[%c9, %c0_54] : memref<26x32xf32, #tpu.memory_space<vmem>>, vector<16x32xf32>
    %c7 = arith.constant 7 : index
    %c0_55 = arith.constant 0 : index
    %c0_56 = arith.constant 0 : index
    %89 = vector.load %arg2[%c7, %c0_55, %c0_56] : memref<9x32x128xf32, #tpu.memory_space<vmem>>, vector<1x32x128xf32>
    %90 = vector.shape_cast %89 : vector<1x32x128xf32> to vector<32x128xf32>
    %cst_57 = arith.constant dense<0.000000e+00> : vector<16x128xf32>
    %91 = tpu.matmul %88, %90, %cst_57 {dimension_numbers = #tpu.dot_dimension_numbers<[1], [0], [0], [1], [0, 0, 1, 1], [], []>} : vector<16x32xf32>, vector<32x128xf32>, vector<16x128xf32> -> vector<16x128xf32>
    %92 = arith.addf %87, %91 : vector<16x128xf32>
    %c10 = arith.constant 10 : index
    %c0_58 = arith.constant 0 : index
    %93 = vector.load %arg5[%c10, %c0_58] : memref<26x32xf32, #tpu.memory_space<vmem>>, vector<16x32xf32>
    %c3_i32_59 = arith.constant 3 : i32
    %94 = vector.broadcast %c3_i32_59 : i32 to vector<16x1xi32>
    %95 = arith.cmpi slt, %21, %94 : vector<16x1xi32>
    %cst_60 = arith.constant 0.000000e+00 : f32
    %96 = vector.shape_cast %95 : vector<16x1xi1> to vector<16x1xi1>
    %97 = vector.broadcast %96 : vector<16x1xi1> to vector<16x32xi1>
    %98 = vector.broadcast %cst_60 : f32 to vector<16x32xf32>
    %99 = arith.select %97, %93, %98 : vector<16x32xi1>, vector<16x32xf32>
    %c8_61 = arith.constant 8 : index
    %c0_62 = arith.constant 0 : index
    %c0_63 = arith.constant 0 : index
    %100 = vector.load %arg2[%c8_61, %c0_62, %c0_63] : memref<9x32x128xf32, #tpu.memory_space<vmem>>, vector<1x32x128xf32>
    %101 = vector.shape_cast %100 : vector<1x32x128xf32> to vector<32x128xf32>
    %cst_64 = arith.constant dense<0.000000e+00> : vector<16x128xf32>
    %102 = tpu.matmul %99, %101, %cst_64 {dimension_numbers = #tpu.dot_dimension_numbers<[1], [0], [0], [1], [0, 0, 1, 1], [], []>} : vector<16x32xf32>, vector<32x128xf32>, vector<16x128xf32> -> vector<16x128xf32>
    %103 = arith.addf %92, %102 : vector<16x128xf32>
    %c0_65 = arith.constant 0 : index
    %c0_66 = arith.constant 0 : index
    %104 = vector.load %arg3[%c0_65, %c0_66] : memref<1x128xf32, #tpu.memory_space<vmem>>, vector<1x128xf32>
    %105 = vector.broadcast %104 : vector<1x128xf32> to vector<16x128xf32>
    %106 = arith.addf %103, %105 : vector<16x128xf32>
    %cst_67 = arith.constant 0.000000e+00 : f32
    %107 = vector.broadcast %cst_67 : f32 to vector<16x128xf32>
    %108 = arith.maximumf %106, %107 : vector<16x128xf32>
    %c0_68 = arith.constant 0 : index
    %c0_69 = arith.constant 0 : index
    %c0_70 = arith.constant 0 : index
    %109 = vector.load %arg4[%c0_68, %c0_69, %c0_70] : memref<1x16x128xf32, #tpu.memory_space<vmem>>, vector<1x16x128xf32>
    %110 = vector.shape_cast %109 : vector<1x16x128xf32> to vector<16x128xf32>
    %111 = vector.shape_cast %108 : vector<16x128xf32> to vector<1x16x128xf32>
    tpu.vector_store %arg4[%c0_68, %c0_69, %c0_70], %111 {strides = array<i32>} : memref<1x16x128xf32, #tpu.memory_space<vmem>>, vector<1x16x128xf32>,
    return
  }
  func.func @transform_0(%arg0: i32) -> (i32, i32, i32) {
    %c0_i32 = arith.constant 0 : i32
    %c0_i32_0 = arith.constant 0 : i32
    %c0_i32_1 = arith.constant 0 : i32
    return %arg0, %c0_i32, %c0_i32_0 : i32, i32, i32
  }
  func.func @transform_1(%arg0: i32) -> (i32, i32, i32) {
    %c0_i32 = arith.constant 0 : i32
    %c0_i32_0 = arith.constant 0 : i32
    %c0_i32_1 = arith.constant 0 : i32
    %c0_i32_2 = arith.constant 0 : i32
    return %c0_i32, %c0_i32_0, %c0_i32_1 : i32, i32, i32
  }
  func.func @transform_2(%arg0: i32) -> (i32, i32) {
    %c0_i32 = arith.constant 0 : i32
    %c0_i32_0 = arith.constant 0 : i32
    %c0_i32_1 = arith.constant 0 : i32
    return %c0_i32, %c0_i32_0 : i32, i32
  }
  func.func @transform_3(%arg0: i32) -> (i32, i32, i32) {
    %c0_i32 = arith.constant 0 : i32
    %c0_i32_0 = arith.constant 0 : i32
    %c0_i32_1 = arith.constant 0 : i32
    return %arg0, %c0_i32, %c0_i32_0 : i32, i32, i32
  }
}

module attributes {stable_mosaic.version = 11 : i64} {
  func.func @_deconv_bn_relu_kp_kernel(%arg0: i32, %arg1: memref<1x64x32xf32, #tpu.memory_space<vmem>>, %arg2: memref<9x32x128xf32, #tpu.memory_space<vmem>>, %arg3: memref<1x128xf32, #tpu.memory_space<vmem>>, %arg4: memref<128x128xf32, #tpu.memory_space<vmem>>, %arg5: memref<1x128xf32, #tpu.memory_space<vmem>>, %arg6: memref<1x64x128xf32, #tpu.memory_space<vmem>>, %arg7: memref<82x32xf32, #tpu.memory_space<vmem>>) attributes {dimension_semantics = [#tpu.dimension_semantics<parallel>], iteration_bounds = array<i64: 2>, scalar_prefetch = 0 : i64, scratch_operands = 1 : i64, tpu.core_type = #tpu.core_type<tc>, window_params = [{transform_indices = @transform_0, window_bounds = array<i64: 1, 64, 32>}, {pipeline_mode = #tpu.pipeline_mode<synchronous>, transform_indices = @transform_1, window_bounds = array<i64: 9, 32, 128>}, {pipeline_mode = #tpu.pipeline_mode<synchronous>, transform_indices = @transform_2, window_bounds = array<i64: 1, 128>}, {pipeline_mode = #tpu.pipeline_mode<synchronous>, transform_indices = @transform_3, window_bounds = array<i64: 128, 128>}, {pipeline_mode = #tpu.pipeline_mode<synchronous>, transform_indices = @transform_4, window_bounds = array<i64: 1, 128>}, {transform_indices = @transform_5, window_bounds = array<i64: 1, 64, 128>}]} {
    %cst = arith.constant 0.000000e+00 : f32
    %0 = vector.broadcast %cst : f32 to vector<82x32xf32>
    %c0 = arith.constant 0 : index
    %c0_0 = arith.constant 0 : index
    %1 = vector.load %arg7[%c0, %c0_0] : memref<82x32xf32, #tpu.memory_space<vmem>>, vector<82x32xf32>
    tpu.vector_store %arg7[%c0, %c0_0], %0 {strides = array<i32>} : memref<82x32xf32, #tpu.memory_space<vmem>>, vector<82x32xf32>,
    %c0_1 = arith.constant 0 : index
    %c0_2 = arith.constant 0 : index
    %c0_3 = arith.constant 0 : index
    %2 = vector.load %arg1[%c0_1, %c0_2, %c0_3] : memref<1x64x32xf32, #tpu.memory_space<vmem>>, vector<1x64x32xf32>
    %3 = vector.shape_cast %2 : vector<1x64x32xf32> to vector<64x32xf32>
    %c9 = arith.constant 9 : index
    %c0_4 = arith.constant 0 : index
    %4 = vector.load %arg7[%c9, %c0_4] : memref<82x32xf32, #tpu.memory_space<vmem>>, vector<64x32xf32>
    tpu.vector_store %arg7[%c9, %c0_4], %3 {strides = array<i32>} : memref<82x32xf32, #tpu.memory_space<vmem>>, vector<64x32xf32>,
    %5 = tpu.iota {dimensions = array<i32: 0>} : vector<64x1xi32>
    %c8_i32 = arith.constant 8 : i32
    %c0_i32 = arith.constant 0 : i32
    %6 = arith.cmpi eq, %c8_i32, %c0_i32 : i32
    %c1_i32 = arith.constant 1 : i32
    %7 = arith.select %6, %c1_i32, %c8_i32 : i32
    %8 = vector.broadcast %7 : i32 to vector<64x1xi32>
    %9 = arith.remsi %5, %8 : vector<64x1xi32>
    %c0_i32_5 = arith.constant 0 : i32
    %10 = vector.broadcast %c0_i32_5 : i32 to vector<64x1xi32>
    %11 = arith.cmpi ne, %9, %10 : vector<64x1xi32>
    %c0_i32_6 = arith.constant 0 : i32
    %12 = vector.broadcast %c0_i32_6 : i32 to vector<64x1xi32>
    %13 = arith.cmpi slt, %9, %12 : vector<64x1xi32>
    %c0_i32_7 = arith.constant 0 : i32
    %14 = arith.cmpi slt, %7, %c0_i32_7 : i32
    %15 = vector.broadcast %14 : i1 to vector<64x1xi1>
    %16 = vector.broadcast %15 : vector<64x1xi1> to vector<64x1xi1>
    %17 = arith.xori %13, %16 : vector<64x1xi1>
    %18 = arith.andi %17, %11 : vector<64x1xi1>
    %19 = vector.broadcast %7 : i32 to vector<64x1xi32>
    %20 = arith.addi %9, %19 : vector<64x1xi32>
    %21 = arith.select %18, %20, %9 : vector<64x1xi1>, vector<64x1xi32>
    %cst_8 = arith.constant 0.000000e+00 : f32
    %22 = vector.broadcast %cst_8 : f32 to vector<64x128xf32>
    %c0_9 = arith.constant 0 : index
    %c0_10 = arith.constant 0 : index
    %23 = vector.load %arg7[%c0_9, %c0_10] : memref<82x32xf32, #tpu.memory_space<vmem>>, vector<64x32xf32>
    %c0_i32_11 = arith.constant 0 : i32
    %24 = vector.broadcast %c0_i32_11 : i32 to vector<64x1xi32>
    %25 = arith.cmpi sgt, %21, %24 : vector<64x1xi32>
    %cst_12 = arith.constant 0.000000e+00 : f32
    %26 = vector.shape_cast %25 : vector<64x1xi1> to vector<64x1xi1>
    %27 = vector.broadcast %26 : vector<64x1xi1> to vector<64x32xi1>
    %28 = vector.broadcast %cst_12 : f32 to vector<64x32xf32>
    %29 = arith.select %27, %23, %28 : vector<64x32xi1>, vector<64x32xf32>
    %c0_13 = arith.constant 0 : index
    %c0_14 = arith.constant 0 : index
    %c0_15 = arith.constant 0 : index
    %30 = vector.load %arg2[%c0_13, %c0_14, %c0_15] : memref<9x32x128xf32, #tpu.memory_space<vmem>>, vector<1x32x128xf32>
    %31 = vector.shape_cast %30 : vector<1x32x128xf32> to vector<32x128xf32>
    %cst_16 = arith.constant dense<0.000000e+00> : vector<64x128xf32>
    %32 = tpu.matmul %29, %31, %cst_16 {dimension_numbers = #tpu.dot_dimension_numbers<[1], [0], [0], [1], [0, 0, 1, 1], [], []>} : vector<64x32xf32>, vector<32x128xf32>, vector<64x128xf32> -> vector<64x128xf32>
    %33 = arith.addf %22, %32 : vector<64x128xf32>
    %c1 = arith.constant 1 : index
    %c0_17 = arith.constant 0 : index
    %34 = vector.load %arg7[%c1, %c0_17] : memref<82x32xf32, #tpu.memory_space<vmem>>, vector<64x32xf32>
    %c1_18 = arith.constant 1 : index
    %c0_19 = arith.constant 0 : index
    %c0_20 = arith.constant 0 : index
    %35 = vector.load %arg2[%c1_18, %c0_19, %c0_20] : memref<9x32x128xf32, #tpu.memory_space<vmem>>, vector<1x32x128xf32>
    %36 = vector.shape_cast %35 : vector<1x32x128xf32> to vector<32x128xf32>
    %cst_21 = arith.constant dense<0.000000e+00> : vector<64x128xf32>
    %37 = tpu.matmul %34, %36, %cst_21 {dimension_numbers = #tpu.dot_dimension_numbers<[1], [0], [0], [1], [0, 0, 1, 1], [], []>} : vector<64x32xf32>, vector<32x128xf32>, vector<64x128xf32> -> vector<64x128xf32>
    %38 = arith.addf %33, %37 : vector<64x128xf32>
    %c2 = arith.constant 2 : index
    %c0_22 = arith.constant 0 : index
    %39 = vector.load %arg7[%c2, %c0_22] : memref<82x32xf32, #tpu.memory_space<vmem>>, vector<64x32xf32>
    %c7_i32 = arith.constant 7 : i32
    %40 = vector.broadcast %c7_i32 : i32 to vector<64x1xi32>
    %41 = arith.cmpi slt, %21, %40 : vector<64x1xi32>
    %cst_23 = arith.constant 0.000000e+00 : f32
    %42 = vector.shape_cast %41 : vector<64x1xi1> to vector<64x1xi1>
    %43 = vector.broadcast %42 : vector<64x1xi1> to vector<64x32xi1>
    %44 = vector.broadcast %cst_23 : f32 to vector<64x32xf32>
    %45 = arith.select %43, %39, %44 : vector<64x32xi1>, vector<64x32xf32>
    %c2_24 = arith.constant 2 : index
    %c0_25 = arith.constant 0 : index
    %c0_26 = arith.constant 0 : index
    %46 = vector.load %arg2[%c2_24, %c0_25, %c0_26] : memref<9x32x128xf32, #tpu.memory_space<vmem>>, vector<1x32x128xf32>
    %47 = vector.shape_cast %46 : vector<1x32x128xf32> to vector<32x128xf32>
    %cst_27 = arith.constant dense<0.000000e+00> : vector<64x128xf32>
    %48 = tpu.matmul %45, %47, %cst_27 {dimension_numbers = #tpu.dot_dimension_numbers<[1], [0], [0], [1], [0, 0, 1, 1], [], []>} : vector<64x32xf32>, vector<32x128xf32>, vector<64x128xf32> -> vector<64x128xf32>
    %49 = arith.addf %38, %48 : vector<64x128xf32>
    %c8 = arith.constant 8 : index
    %c0_28 = arith.constant 0 : index
    %50 = vector.load %arg7[%c8, %c0_28] : memref<82x32xf32, #tpu.memory_space<vmem>>, vector<64x32xf32>
    %c0_i32_29 = arith.constant 0 : i32
    %51 = vector.broadcast %c0_i32_29 : i32 to vector<64x1xi32>
    %52 = arith.cmpi sgt, %21, %51 : vector<64x1xi32>
    %cst_30 = arith.constant 0.000000e+00 : f32
    %53 = vector.shape_cast %52 : vector<64x1xi1> to vector<64x1xi1>
    %54 = vector.broadcast %53 : vector<64x1xi1> to vector<64x32xi1>
    %55 = vector.broadcast %cst_30 : f32 to vector<64x32xf32>
    %56 = arith.select %54, %50, %55 : vector<64x32xi1>, vector<64x32xf32>
    %c3 = arith.constant 3 : index
    %c0_31 = arith.constant 0 : index
    %c0_32 = arith.constant 0 : index
    %57 = vector.load %arg2[%c3, %c0_31, %c0_32] : memref<9x32x128xf32, #tpu.memory_space<vmem>>, vector<1x32x128xf32>
    %58 = vector.shape_cast %57 : vector<1x32x128xf32> to vector<32x128xf32>
    %cst_33 = arith.constant dense<0.000000e+00> : vector<64x128xf32>
    %59 = tpu.matmul %56, %58, %cst_33 {dimension_numbers = #tpu.dot_dimension_numbers<[1], [0], [0], [1], [0, 0, 1, 1], [], []>} : vector<64x32xf32>, vector<32x128xf32>, vector<64x128xf32> -> vector<64x128xf32>
    %60 = arith.addf %49, %59 : vector<64x128xf32>
    %c9_34 = arith.constant 9 : index
    %c0_35 = arith.constant 0 : index
    %61 = vector.load %arg7[%c9_34, %c0_35] : memref<82x32xf32, #tpu.memory_space<vmem>>, vector<64x32xf32>
    %c4 = arith.constant 4 : index
    %c0_36 = arith.constant 0 : index
    %c0_37 = arith.constant 0 : index
    %62 = vector.load %arg2[%c4, %c0_36, %c0_37] : memref<9x32x128xf32, #tpu.memory_space<vmem>>, vector<1x32x128xf32>
    %63 = vector.shape_cast %62 : vector<1x32x128xf32> to vector<32x128xf32>
    %cst_38 = arith.constant dense<0.000000e+00> : vector<64x128xf32>
    %64 = tpu.matmul %61, %63, %cst_38 {dimension_numbers = #tpu.dot_dimension_numbers<[1], [0], [0], [1], [0, 0, 1, 1], [], []>} : vector<64x32xf32>, vector<32x128xf32>, vector<64x128xf32> -> vector<64x128xf32>
    %65 = arith.addf %60, %64 : vector<64x128xf32>
    %c10 = arith.constant 10 : index
    %c0_39 = arith.constant 0 : index
    %66 = vector.load %arg7[%c10, %c0_39] : memref<82x32xf32, #tpu.memory_space<vmem>>, vector<64x32xf32>
    %c7_i32_40 = arith.constant 7 : i32
    %67 = vector.broadcast %c7_i32_40 : i32 to vector<64x1xi32>
    %68 = arith.cmpi slt, %21, %67 : vector<64x1xi32>
    %cst_41 = arith.constant 0.000000e+00 : f32
    %69 = vector.shape_cast %68 : vector<64x1xi1> to vector<64x1xi1>
    %70 = vector.broadcast %69 : vector<64x1xi1> to vector<64x32xi1>
    %71 = vector.broadcast %cst_41 : f32 to vector<64x32xf32>
    %72 = arith.select %70, %66, %71 : vector<64x32xi1>, vector<64x32xf32>
    %c5 = arith.constant 5 : index
    %c0_42 = arith.constant 0 : index
    %c0_43 = arith.constant 0 : index
    %73 = vector.load %arg2[%c5, %c0_42, %c0_43] : memref<9x32x128xf32, #tpu.memory_space<vmem>>, vector<1x32x128xf32>
    %74 = vector.shape_cast %73 : vector<1x32x128xf32> to vector<32x128xf32>
    %cst_44 = arith.constant dense<0.000000e+00> : vector<64x128xf32>
    %75 = tpu.matmul %72, %74, %cst_44 {dimension_numbers = #tpu.dot_dimension_numbers<[1], [0], [0], [1], [0, 0, 1, 1], [], []>} : vector<64x32xf32>, vector<32x128xf32>, vector<64x128xf32> -> vector<64x128xf32>
    %76 = arith.addf %65, %75 : vector<64x128xf32>
    %c16 = arith.constant 16 : index
    %c0_45 = arith.constant 0 : index
    %77 = vector.load %arg7[%c16, %c0_45] : memref<82x32xf32, #tpu.memory_space<vmem>>, vector<64x32xf32>
    %c0_i32_46 = arith.constant 0 : i32
    %78 = vector.broadcast %c0_i32_46 : i32 to vector<64x1xi32>
    %79 = arith.cmpi sgt, %21, %78 : vector<64x1xi32>
    %cst_47 = arith.constant 0.000000e+00 : f32
    %80 = vector.shape_cast %79 : vector<64x1xi1> to vector<64x1xi1>
    %81 = vector.broadcast %80 : vector<64x1xi1> to vector<64x32xi1>
    %82 = vector.broadcast %cst_47 : f32 to vector<64x32xf32>
    %83 = arith.select %81, %77, %82 : vector<64x32xi1>, vector<64x32xf32>
    %c6 = arith.constant 6 : index
    %c0_48 = arith.constant 0 : index
    %c0_49 = arith.constant 0 : index
    %84 = vector.load %arg2[%c6, %c0_48, %c0_49] : memref<9x32x128xf32, #tpu.memory_space<vmem>>, vector<1x32x128xf32>
    %85 = vector.shape_cast %84 : vector<1x32x128xf32> to vector<32x128xf32>
    %cst_50 = arith.constant dense<0.000000e+00> : vector<64x128xf32>
    %86 = tpu.matmul %83, %85, %cst_50 {dimension_numbers = #tpu.dot_dimension_numbers<[1], [0], [0], [1], [0, 0, 1, 1], [], []>} : vector<64x32xf32>, vector<32x128xf32>, vector<64x128xf32> -> vector<64x128xf32>
    %87 = arith.addf %76, %86 : vector<64x128xf32>
    %c17 = arith.constant 17 : index
    %c0_51 = arith.constant 0 : index
    %88 = vector.load %arg7[%c17, %c0_51] : memref<82x32xf32, #tpu.memory_space<vmem>>, vector<64x32xf32>
    %c7 = arith.constant 7 : index
    %c0_52 = arith.constant 0 : index
    %c0_53 = arith.constant 0 : index
    %89 = vector.load %arg2[%c7, %c0_52, %c0_53] : memref<9x32x128xf32, #tpu.memory_space<vmem>>, vector<1x32x128xf32>
    %90 = vector.shape_cast %89 : vector<1x32x128xf32> to vector<32x128xf32>
    %cst_54 = arith.constant dense<0.000000e+00> : vector<64x128xf32>
    %91 = tpu.matmul %88, %90, %cst_54 {dimension_numbers = #tpu.dot_dimension_numbers<[1], [0], [0], [1], [0, 0, 1, 1], [], []>} : vector<64x32xf32>, vector<32x128xf32>, vector<64x128xf32> -> vector<64x128xf32>
    %92 = arith.addf %87, %91 : vector<64x128xf32>
    %c18 = arith.constant 18 : index
    %c0_55 = arith.constant 0 : index
    %93 = vector.load %arg7[%c18, %c0_55] : memref<82x32xf32, #tpu.memory_space<vmem>>, vector<64x32xf32>
    %c7_i32_56 = arith.constant 7 : i32
    %94 = vector.broadcast %c7_i32_56 : i32 to vector<64x1xi32>
    %95 = arith.cmpi slt, %21, %94 : vector<64x1xi32>
    %cst_57 = arith.constant 0.000000e+00 : f32
    %96 = vector.shape_cast %95 : vector<64x1xi1> to vector<64x1xi1>
    %97 = vector.broadcast %96 : vector<64x1xi1> to vector<64x32xi1>
    %98 = vector.broadcast %cst_57 : f32 to vector<64x32xf32>
    %99 = arith.select %97, %93, %98 : vector<64x32xi1>, vector<64x32xf32>
    %c8_58 = arith.constant 8 : index
    %c0_59 = arith.constant 0 : index
    %c0_60 = arith.constant 0 : index
    %100 = vector.load %arg2[%c8_58, %c0_59, %c0_60] : memref<9x32x128xf32, #tpu.memory_space<vmem>>, vector<1x32x128xf32>
    %101 = vector.shape_cast %100 : vector<1x32x128xf32> to vector<32x128xf32>
    %cst_61 = arith.constant dense<0.000000e+00> : vector<64x128xf32>
    %102 = tpu.matmul %99, %101, %cst_61 {dimension_numbers = #tpu.dot_dimension_numbers<[1], [0], [0], [1], [0, 0, 1, 1], [], []>} : vector<64x32xf32>, vector<32x128xf32>, vector<64x128xf32> -> vector<64x128xf32>
    %103 = arith.addf %92, %102 : vector<64x128xf32>
    %c0_62 = arith.constant 0 : index
    %c0_63 = arith.constant 0 : index
    %104 = vector.load %arg3[%c0_62, %c0_63] : memref<1x128xf32, #tpu.memory_space<vmem>>, vector<1x128xf32>
    %105 = vector.broadcast %104 : vector<1x128xf32> to vector<64x128xf32>
    %106 = arith.addf %103, %105 : vector<64x128xf32>
    %cst_64 = arith.constant 0.000000e+00 : f32
    %107 = vector.broadcast %cst_64 : f32 to vector<64x128xf32>
    %108 = arith.maximumf %106, %107 : vector<64x128xf32>
    %c0_65 = arith.constant 0 : index
    %c0_66 = arith.constant 0 : index
    %109 = vector.load %arg4[%c0_65, %c0_66] : memref<128x128xf32, #tpu.memory_space<vmem>>, vector<128x128xf32>
    %cst_67 = arith.constant dense<0.000000e+00> : vector<64x128xf32>
    %110 = tpu.matmul %108, %109, %cst_67 {dimension_numbers = #tpu.dot_dimension_numbers<[1], [0], [0], [1], [0, 0, 1, 1], [], []>} : vector<64x128xf32>, vector<128x128xf32>, vector<64x128xf32> -> vector<64x128xf32>
    %c0_68 = arith.constant 0 : index
    %c0_69 = arith.constant 0 : index
    %111 = vector.load %arg5[%c0_68, %c0_69] : memref<1x128xf32, #tpu.memory_space<vmem>>, vector<1x128xf32>
    %112 = vector.broadcast %111 : vector<1x128xf32> to vector<64x128xf32>
    %113 = arith.addf %110, %112 : vector<64x128xf32>
    %c0_70 = arith.constant 0 : index
    %c0_71 = arith.constant 0 : index
    %c0_72 = arith.constant 0 : index
    %114 = vector.load %arg6[%c0_70, %c0_71, %c0_72] : memref<1x64x128xf32, #tpu.memory_space<vmem>>, vector<1x64x128xf32>
    %115 = vector.shape_cast %114 : vector<1x64x128xf32> to vector<64x128xf32>
    %116 = vector.shape_cast %113 : vector<64x128xf32> to vector<1x64x128xf32>
    tpu.vector_store %arg6[%c0_70, %c0_71, %c0_72], %116 {strides = array<i32>} : memref<1x64x128xf32, #tpu.memory_space<vmem>>, vector<1x64x128xf32>,
    return
  }
  func.func @transform_0(%arg0: i32) -> (i32, i32, i32) {
    %c0_i32 = arith.constant 0 : i32
    %c0_i32_0 = arith.constant 0 : i32
    %c0_i32_1 = arith.constant 0 : i32
    return %arg0, %c0_i32, %c0_i32_0 : i32, i32, i32
  }
  func.func @transform_1(%arg0: i32) -> (i32, i32, i32) {
    %c0_i32 = arith.constant 0 : i32
    %c0_i32_0 = arith.constant 0 : i32
    %c0_i32_1 = arith.constant 0 : i32
    %c0_i32_2 = arith.constant 0 : i32
    return %c0_i32, %c0_i32_0, %c0_i32_1 : i32, i32, i32
  }
  func.func @transform_2(%arg0: i32) -> (i32, i32) {
    %c0_i32 = arith.constant 0 : i32
    %c0_i32_0 = arith.constant 0 : i32
    %c0_i32_1 = arith.constant 0 : i32
    return %c0_i32, %c0_i32_0 : i32, i32
  }
  func.func @transform_3(%arg0: i32) -> (i32, i32) {
    %c0_i32 = arith.constant 0 : i32
    %c0_i32_0 = arith.constant 0 : i32
    %c0_i32_1 = arith.constant 0 : i32
    return %c0_i32, %c0_i32_0 : i32, i32
  }
  func.func @transform_4(%arg0: i32) -> (i32, i32) {
    %c0_i32 = arith.constant 0 : i32
    %c0_i32_0 = arith.constant 0 : i32
    %c0_i32_1 = arith.constant 0 : i32
    return %c0_i32, %c0_i32_0 : i32, i32
  }
  func.func @transform_5(%arg0: i32) -> (i32, i32, i32) {
    %c0_i32 = arith.constant 0 : i32
    %c0_i32_0 = arith.constant 0 : i32
    %c0_i32_1 = arith.constant 0 : i32
    return %arg0, %c0_i32, %c0_i32_0 : i32, i32, i32
  }
}

</mosaic_0001>

<bundles_post_ra>
// kernel: mul.151
= control target key start
LH: loop header
LB: loop body
LE: loop exit
PB: predicated region body
PF: predicated region fallthrough
CT: control target
= control target key end

     0   :  { %s40_s0 = inlined_call_operand.vmem [shape: f32[3,256], index: 0, kind: input, shape index: {}]   ;;  %s41_s1 = inlined_call_operand.vmem [shape: f32[768], index: 1, kind: output, shape index: {}]  }
   0x1   :  { %v16_v0 = vld [vmem:[%s40_s0 + $0x4] sm:$0xf]  ;;  %v8_v1 = vld [vmem:[%s40_s0] sm:$0xf] }
   0x2   :  { %7 = vst [vmem:[#allocation0 + $0x8] sm:$0xf] %v16_v0 }
   0x3   :  { %9 = vst [vmem:[#allocation0] sm:$0xf] %v8_v1 }
   0x9   :  { %v13_v2 = vld [vmem:[#allocation0 + $0x8] sm:$0x7]  }
   0xa   :  { %v10_v3 = vld [vmem:[#allocation0] sm:$0x7]   ;;  %17 = vst [vmem:[%s41_s1 + $0x1] ss:$2 sm:$0x7] %v13_v2  }
   0xb   :  { %11 = vst [vmem:[%s41_s1] ss:$2 sm:$0x7] %v10_v3  }

// kernel: vitpose_wrapper_forward.5
= control target key start
LH: loop header
LB: loop body
LE: loop exit
PB: predicated region body
PF: predicated region fallthrough
CT: control target
= control target key end

     0   :  { %s1686_s18 = smov 0   ;;  %s2058_s0 = inlined_call_operand.vmem [shape: f32[2,16,32], index: 0, kind: input, shape index: {}]   ;;  %s2059_s1 = inlined_call_operand.vmem [shape: f32[1,32], index: 1, kind: input, shape index: {}]   ;;  %s2060_s2 = inlined_call_operand.vmem [shape: f32[1,32], index: 2, kind: input, shape index: {}]   ;;  %s2061_s3 = inlined_call_operand.vmem [shape: f32[32,96], index: 3, kind: input, shape index: {}]   ;;  %s2062_s4 = inlined_call_operand.vmem [shape: f32[1,96], index: 4, kind: input, shape index: {}]   ;;  %s2063_s5 = inlined_call_operand.vmem [shape: f32[32,32], index: 5, kind: input, shape index: {}]   ;;  %s2064_s6 = inlined_call_operand.vmem [shape: f32[1,32], index: 6, kind: input, shape index: {}]   ;;  %s2065_s7 = inlined_call_operand.vmem [shape: f32[1,32], index: 7, kind: input, shape index: {}]   ;;  %s2066_s8 = inlined_call_operand.vmem [shape: f32[1,32], index: 8, kind: input, shape index: {}]   ;;  %s2067_s9 = inlined_call_operand.vmem [shape: f32[32,128], index: 9, kind: input, shape index: {}]   ;;  %s2068_s10 = inlined_call_operand.vmem [shape: f32[1,128], index: 10, kind: input, shape index: {}]   ;;  %s2069_s11 = inlined_call_operand.vmem [shape: f32[128,32], index: 11, kind: input, shape index: {}]   ;;  %s2070_s12 = inlined_call_operand.vmem [shape: f32[1,32], index: 12, kind: input, shape index: {}]   ;;  %s2071_s13 = inlined_call_operand.vmem [shape: f32[1,32], index: 13, kind: input, shape index: {}]   ;;  %s2072_s14 = inlined_call_operand.vmem [shape: f32[1,32], index: 14, kind: input, shape index: {}]   ;;  %s2073_s15 = inlined_call_operand.vmem [shape: f32[2,16,32], index: 15, kind: output, shape index: {}]  }
   0x1 LB: > { %s1435_s19 = sadd.s32 4294967295, %s1589_s18   ;;  %p1439_p0 = scmp.ge.s32.totalorder %s1589_s18, 1  ;;  %s1589_s18 = sphi %s1686_s18, %s25_s18  }
   0x2   : > { %p437_p1 = scmp.lt.s32.totalorder %s1589_s18, 3 }
   0x4   : > { %p438_p2 = pnand %p1439_p0, %p437_p1 }
   0x5   : > { %p485_p3 = scmp.lt.s32.totalorder (!%p438_p2), %s1435_s19, 1  ;;  %s1592_s26 = smov (!%p438_p2), 96  }
   0x6   : > { %441 = sbr.rel (%p438_p2) target bundleno = 2564 (0xa04), region = 80  ;;  %s1593_s27 = smov (!%p438_p2), 88  }
   0x7   : > { %s1594_s28 = smov (!%p438_p2), 120   ;;  %s1595_s29 = smov (!%p438_p2), 64  }
   0x8   : > { %s1596_s30 = smov (!%p438_p2), 104   ;;  %s1597_s16 = smov (!%p438_p2), 80  }
   0x9   : > { %s1598_s17 = smov (!%p438_p2), 112   ;;  %s1599_s21 = smov (!%p438_p2), 72  }
   0xa   : > { %s1600_s22 = smov (!%p438_p2), 56   ;;  %s1602_s24 = smov (!%p438_p2), 40  }
   0xb   : > { %s2081_s19 = smov (!%p485_p3, %s1435_s19), 1  ;;  %vm499_vm0 = vcmask 261120   ;;  %v1591_v4 = vmov 32.0   ;;  %v564_v21 = vld [vmem:[%s2061_s3 + $0x18] sm:$0xff]  ;;  %v563_v22 = vld [vmem:[%s2061_s3 + $0x10] sm:$0xff]  ;;  %v562_v23 = vld [vmem:[%s2061_s3 + $0x8] sm:$0xff] }
   0xc   : > { %s1476_s20 = sshll.u32 %s2081_s19, 4  ;;  %1533 = vrcp.f32 %v1591_v4  ;;  %587 = vmatpush.msra.mxu0 %v564_v21  ;;  %v561_v24 = vld [vmem:[%s2061_s3] sm:$0xff]  ;;  %vm604_vm8 = vcmask 64512   ;;  %vm638_vm9 = vcmask 130048   ;;  %s1603_s25 = smov 16  }
   0xd   : > { %s489_s23 = scalar_lea.vmem %s2058_s0, %s1476_s20  ;;  %v1523_v39 = vld [vmem:[%s2059_s1] ss:$0 sm:$0xff] }
   0xe   : > { %v1702_v0 = vld [vmem:[%s489_s23] sm:$0xff]  ;;  %v1706_v2 = vld [vmem:[%s489_s23 + $0x8] sm:$0xff]  ;;  %588 = vmatpush.msra.mxu0 %v563_v22  ;;  %s1601_s23 = smov 48  }
   0xf   : > { %v500_v1 = vsel %vm499_vm0, %v1702_v0, 0.0  ;;  %v503_v3 = vsel %vm499_vm0, %v1706_v2, 0.0  ;;  %v1524_v43 = vld [vmem:[%s2060_s2] ss:$0 sm:$0xff] }
  0x10   : > { %501 = vadd.xlane.f32.xlu0 %v500_v1  ;;  %589 = vmatpush.msra.mxu0 %v562_v23  ;;  %v1525_v54 = vld [vmem:[%s2062_s4] ss:$0 sm:$0xff] }
  0x12   : > { %v1534_v5 = vpop.eup %1533  ;;  %590 = vmatpush.msra.mxu0 %v561_v24 }
  0x13   : > { %v507_v6 = vmul.f32 32.0, %v1534_v5  ;;  %vm511_vm1 = vweird.f32 %v1534_v5 }
  0x15   : > { %v508_v7 = vsub.f32 1.0, %v507_v6 }
  0x17   : > { %v509_v8 = vmul.f32 %v1534_v5, %v508_v7 }
  0x18   : > { %504 = vadd.xlane.f32.xlu0 %v503_v3 }
  0x19   : > { %v510_v9 = vadd.f32 %v1534_v5, %v509_v8 }
  0x1b   : > { %v1710_v10 = vsel %vm511_vm1, %v1534_v5, %v510_v9 }
  0x83   : > { %v502_v11 = vpop.xlane.xlu0 %501 }
  0x84   : > { %v513_v12 = vmul.f32 %v1710_v10, %v502_v11 }
  0x86   : > { %v515_v13 = vsub.f32 %v1702_v0, %v513_v12 }
  0x88   : > { %v517_v14 = vmul.f32 %v515_v13, %v515_v13 }
  0x8a   : > { %v519_v15 = vsel %vm499_vm0, %v517_v14, 0.0 }
  0x8b   : > { %520 = vadd.xlane.f32.xlu1 %v519_v15  ;;  %v505_v16 = vpop.xlane.xlu0 %504 }
  0x8c   : > { %v514_v17 = vmul.f32 %v1710_v10, %v505_v16 }
  0x8e   : > { %v516_v18 = vsub.f32 %v1706_v2, %v514_v17 }
  0x90   : > { %v518_v19 = vmul.f32 %v516_v18, %v516_v18 }
  0x92   : > { %v522_v20 = vsel %vm499_vm0, %v518_v19, 0.0 }
  0x93   : > { %523 = vadd.xlane.f32.xlu1 %v522_v20 }
  0xfe   : > { %v521_v25 = vpop.xlane.xlu1 %520 }
  0xff   : > { %v525_v26 = vmul.f32 %v521_v25, %v1710_v10 }
 0x101   : > { %v527_v27 = vadd.f32 1e-06, %v525_v26 }
 0x103   : > { %1535 = vrsqrt.f32 %v527_v27  ;;  %vm535_vm3 = vweird.f32 %v527_v27 }
 0x106   : > { %v524_v28 = vpop.xlane.xlu1 %523 }
 0x107   : > { %v526_v29 = vmul.f32 %v524_v28, %v1710_v10 }
 0x109   : > { %v1536_v30 = vpop.eup %1535  ;;  %v528_v31 = vadd.f32 1e-06, %v526_v29 }
 0x10a   : > { %v530_v32 = vmul.f32 %v1536_v30, %v527_v27  ;;  %vm536_vm2 = vweird.f32 %v1536_v30 }
 0x10b   : > { %1537 = vrsqrt.f32 %v528_v31  ;;  %vm537_vm4 = vmor %vm535_vm3, %vm536_vm2  ;;  %vm545_vm6 = vweird.f32 %v528_v31 }
 0x10c   : > { %v531_v33 = vmul.f32 %v1536_v30, %v530_v32 }
 0x10e   : > { %v532_v34 = vmul.f32 0.5, %v531_v33 }
 0x110   : > { %v533_v35 = vsub.f32 1.5, %v532_v34 }
 0x111   : > { %v1538_v36 = vpop.eup %1537 }
 0x112   : > { %v534_v37 = vmul.f32 %v1536_v30, %v533_v35  ;;  %v540_v38 = vmul.f32 %v1538_v36, %v528_v31  ;;  %vm546_vm5 = vweird.f32 %v1538_v36 }
 0x113   : > { %vm547_vm7 = vmor %vm545_vm6, %vm546_vm5 }
 0x114   : > { %v538_v40 = vsel %vm537_vm4, %v1536_v30, %v534_v37  ;;  %v541_v41 = vmul.f32 %v1538_v36, %v540_v38 }
 0x115   : > { %v549_v42 = vmul.f32 %v538_v40, %v515_v13 }
 0x116   : > { %v542_v44 = vmul.f32 0.5, %v541_v41 }
 0x117   : > { %v554_v45 = vmul.f32 %v1523_v39, %v549_v42 }
 0x118   : > { %v543_v46 = vsub.f32 1.5, %v542_v44 }
 0x119   : > { %v559_v47 = vadd.f32 %v1524_v43, %v554_v45 }
 0x11a   : > { %v544_v48 = vmul.f32 %v1538_v36, %v543_v46 }
 0x11b   : > { %1444 = vmatmul.msk.f32.vlgmr.msra.gmra.mxu0 %vm499_vm0, %v559_v47 }
 0x11c   : > { %v548_v49 = vsel %vm547_vm7, %v1538_v36, %v544_v48 }
 0x11d   : > { %v550_v50 = vmul.f32 %v548_v49, %v516_v18 }
 0x11f   : > { %v555_v51 = vmul.f32 %v1523_v39, %v550_v50 }
 0x121   : > { %v560_v52 = vadd.f32 %v1524_v43, %v555_v51 }
 0x123   : > { %1445 = vmatmul.msk.f32.gmra.mxu0 %vm499_vm0, %v560_v52 }
 0x198   : > { %v592_v53 = vpop.f32.mrf.mxu0 }
 0x199   : > { %v593_v57 = vadd.f32 %v1525_v54, %v592_v53 }
 0x1a0   : > { %v595_v55 = vpop.f32.mrf.mxu0 }
 0x1a1   : > { %v1743_v56 = vadd.f32 %v1525_v54, %v595_v55 }
 0x1a3   : > { %602 = vrot.lane.b32.xlu2 %v1743_v56, %s1592_s26  ;;  %v1755_v4 = vpack.i.bf16 %v593_v57, %v1743_v56 }
 0x1ab   : > { %600 = vrot.lane.b32.xlu2 %v593_v57, %s1592_s26  ;;  %s1604_s26 = smov 8  }
 0x1fd   : > { %v603_v58 = vpop.permute.xlu2 %602 }
 0x1fe   : > { %1446 = vmatpush.xpose.msk.msra.mxu1 %vm604_vm8, %v603_v58 }
 0x205   : > { %v601_v59 = vpop.permute.xlu2 %600 }
 0x206   : > { %1447 = vmatpush.xpose.msk.msra.mxu1 %vm604_vm8, %v601_v59 }
 0x209   : > { %1448 = vmatmul.msk.f32.vlgmr.msra.gmra.mxu1 %vm604_vm8, %v593_v57 }
 0x211   : > { %1449 = vmatmul.msk.f32.gmra.mxu1 %vm604_vm8, %v1743_v56 }
 0x286   : > { %v630_v60 = vpop.f32.mrf.mxu1 }
 0x287   : > { %v636_v61 = vmul.f32 0.35355338, %v630_v60 }
 0x289   : > { %v639_v62 = vsel %vm638_vm9, %v636_v61, -inf }
 0x28a   : > { %640 = vmax.xlane.f32.xlu0 %v639_v62 }
 0x28e   : > { %v633_v63 = vpop.f32.mrf.mxu1 }
 0x28f   : > { %v637_v1 = vmul.f32 0.35355338, %v633_v63 }
 0x291   : > { %v642_v3 = vsel %vm638_vm9, %v637_v1, -inf }
 0x292   : > { %643 = vmax.xlane.f32.xlu1 %v642_v3 }
 0x29e   : > { %728 = vrot.lane.b32.xlu0 %v1743_v56, %s1593_s27 }
 0x2a6   : > { %722 = vrot.lane.b32.xlu0 %v593_v57, %s1594_s28 }
 0x2ab   : > { %1504 = vrot.lane.b32.xlu1 %v1755_v4, %s1595_s29 }
 0x2b3   : > { %726 = vrot.lane.b32.xlu1 %v593_v57, %s1593_s27  ;;  %s1605_s27 = smov 24  }
 0x2bb   : > { %724 = vrot.lane.b32.xlu1 %v1743_v56, %s1594_s28 }
 0x2c3   : > { %970 = vrot.lane.b32.xlu1 %v593_v57, %s1596_s30 }
 0x2cb   : > { %850 = vrot.lane.b32.xlu1 %v593_v57, %s1597_s16 }
 0x2d3   : > { %846 = vrot.lane.b32.xlu1 %v593_v57, %s1598_s17 }
 0x2fd   : > { %v641_v5 = vpop.xlane.xlu0 %640 }
 0x2fe   : > { %v645_v6 = vsub.f32 %v636_v61, %v641_v5 }
 0x300   : > { %v647_v7 = vmul.f32 1.442695, %v645_v6 }
 0x302   : > { %1539 = vpow2.f32 %v647_v7 }
 0x305   : > { %v644_v8 = vpop.xlane.xlu1 %643 }
 0x306   : > { %v646_v9 = vsub.f32 %v637_v1, %v644_v8 }
 0x308   : > { %v1540_v11 = vpop.eup %1539  ;;  %v649_v12 = vmul.f32 1.442695, %v646_v9 }
 0x309   : > { %v651_v13 = vsel %vm638_vm9, %v1540_v11, 0.0 }
 0x30a   : > { %1541 = vpow2.f32 %v649_v12  ;;  %652 = vadd.xlane.f32.xlu2 %v651_v13 }
 0x310   : > { %v1542_v14 = vpop.eup %1541  ;;  %v729_v15 = vpop.permute.xlu0 %728 }
 0x311   : > { %1478 = vmatpush.xpose.msk.msra.mxu3 %vm604_vm8, %v729_v15  ;;  %v654_v16 = vsel %vm638_vm9, %v1542_v14, 0.0 }
 0x312   : > { %655 = vadd.xlane.f32.xlu0 %v654_v16 }
 0x318   : > { %v723_v22 = vpop.permute.xlu0 %722 }
 0x31d   : > { %v1505_v17 = vpop.permute.xlu1 %1504 }
 0x31e   : > { %v1506_v18 = vunpack.i.l.bf16 %v1505_v17  ;;  %v1507_v19 = vunpack.i.h.bf16 %v1505_v17 }
 0x320   : > { %713 = vmatpush.msra.mxu2 %v1506_v18 }
 0x322   : > { %976 = vrot.lane.b32.xlu2 %v1743_v56, %s1599_s21  ;;  %714 = vmatpush.msra.mxu2 %v1507_v19 }
 0x324   : > { %1452 = vmatpush.xpose.msk.msrb.mxu2 %vm604_vm8, %v729_v15 }
 0x325   : > { %v727_v20 = vpop.permute.xlu1 %726 }
 0x326   : > { %974 = vrot.lane.b32.xlu0 %v593_v57, %s1599_s21  ;;  %1479 = vmatpush.xpose.msk.msra.mxu3 %vm604_vm8, %v727_v20 }
 0x328   : > { %1453 = vmatpush.xpose.msk.msrb.mxu2 %vm604_vm8, %v727_v20 }
 0x32a   : > { %848 = vrot.lane.b32.xlu2 %v1743_v56, %s1598_s17  ;;  %s494_s17 = scalar_lea.vmem %s2073_s15, %s1476_s20 }
 0x32d   : > { %v725_v21 = vpop.permute.xlu1 %724 }
 0x32e   : > { %852 = vrot.lane.b32.xlu0 %v1743_v56, %s1597_s16  ;;  %1455 = vmatmul.msk.f32.vlgmr.msra.gmra.mxu3 %vm604_vm8, %v725_v21 }
 0x335   : > { %v971_v43 = vpop.permute.xlu1 %970 }
 0x336   : > { %972 = vrot.lane.b32.xlu0 %v1743_v56, %s1596_s30 }
 0x33d   : > { %v851_v50 = vpop.permute.xlu1 %850 }
 0x345   : > { %v847_v52 = vpop.permute.xlu1 %846 }
 0x37d   : > { %v653_v23 = vpop.xlane.xlu2 %652 }
 0x37e   : > { %1543 = vrcp.f32 %v653_v23  ;;  %v668_v29 = vand.u32 2147483648, %v653_v23  ;;  %v666_v31 = vand.u32 2147483647, %v653_v23  ;;  %vm662_vm11 = vweird.f32 %v653_v23 }
 0x380   : > { %v669_v34 = vor.u32 1.1754944e-38, %v668_v29  ;;  %vm667_vm13 = vcmp.eq.f32.partialorder %v666_v31, 8.507059e+37 }
 0x384   : > { %v1544_v24 = vpop.eup %1543 }
 0x385   : > { %v658_v25 = vmul.f32 %v1544_v24, %v653_v23  ;;  %v977_v26 = vpop.permute.xlu2 %976  ;;  %v656_v27 = vpop.xlane.xlu0 %655  ;;  %vm663_vm10 = vweird.f32 %v1544_v24 }
 0x386   : > { %1545 = vrcp.f32 %v656_v27  ;;  %1464 = vmatpush.xpose.msk.msrb.mxu3 %vm604_vm8, %v977_v26  ;;  %vm664_vm12 = vmor %vm662_vm11, %vm663_vm10  ;;  %v683_v40 = vand.u32 2147483648, %v656_v27  ;;  %v681_v42 = vand.u32 2147483647, %v656_v27  ;;  %vm677_vm15 = vweird.f32 %v656_v27 }
 0x387   : > { %v659_v28 = vsub.f32 1.0, %v658_v25 }
 0x388   : > { %v684_v45 = vor.u32 1.1754944e-38, %v683_v40  ;;  %vm682_vm2 = vcmp.eq.f32.partialorder %v681_v42, 8.507059e+37 }
 0x389   : > { %v660_v30 = vmul.f32 %v1544_v24, %v659_v28 }
 0x38b   : > { %v661_v32 = vadd.f32 %v1544_v24, %v660_v30 }
 0x38c   : > { %v1546_v33 = vpop.eup %1545 }
 0x38d   : > { %v673_v35 = vmul.f32 %v1546_v33, %v656_v27  ;;  %v665_v36 = vsel %vm664_vm12, %v1544_v24, %v661_v32  ;;  %vm678_vm14 = vweird.f32 %v1546_v33  ;;  %v849_v54 = vpop.permute.xlu2 %848 }
 0x38e   : > { %v670_v37 = vsel %vm667_vm13, %v669_v34, %v665_v36  ;;  %vm679_vm1 = vmor %vm677_vm15, %vm678_vm14 }
 0x38f   : > { %v674_v38 = vsub.f32 1.0, %v673_v35  ;;  %v671_v39 = vmul.f32 %v1540_v11, %v670_v37 }
 0x391   : > { %v675_v41 = vmul.f32 %v1546_v33, %v674_v38  ;;  %1450 = vmatmul.msk.f32.vlgmr.msra.gmra.mxu2 %vm638_vm9, %v671_v39 }
 0x393   : > { %v676_v44 = vadd.f32 %v1546_v33, %v675_v41 }
 0x395   : > { %v680_v46 = vsel %vm679_vm1, %v1546_v33, %v676_v44 }
 0x396   : > { %v685_v47 = vsel %vm682_vm2, %v684_v45, %v680_v46 }
 0x397   : > { %v686_v48 = vmul.f32 %v1542_v14, %v685_v47 }
 0x398   : > { %v975_v49 = vpop.permute.xlu0 %974 }
 0x399   : > { %1451 = vmatmul.msk.f32.gmra.mxu2 %vm638_vm9, %v686_v48  ;;  %1465 = vmatpush.xpose.msk.msrb.mxu3 %vm604_vm8, %v975_v49 }
 0x39c   : > { %1466 = vmatmul.msk.f32.vlgmr.msrb.gmra.mxu3 %vm604_vm8, %v971_v43 }
 0x3a0   : > { %v853_v51 = vpop.permute.xlu0 %852 }
 0x3a1   : > { %1454 = vmatmul.msk.f32.vlgmr.msrb.gmra.mxu2 %vm604_vm8, %v723_v22  ;;  %1458 = vmatpush.xpose.msk.msrb.mxu0 %vm604_vm8, %v853_v51 }
 0x3a5   : > { %1459 = vmatpush.xpose.msk.msrb.mxu0 %vm604_vm8, %v851_v50 }
 0x3a8   : > { %v973_v53 = vpop.permute.xlu0 %972  ;;  %1460 = vmatmul.msk.f32.vlgmr.msrb.gmra.mxu0 %vm604_vm8, %v847_v52 }
 0x3a9   : > { %1467 = vmatmul.msk.f32.gmra.mxu3 %vm604_vm8, %v973_v53 }
 0x3b0   : > { %1461 = vmatmul.msk.f32.gmra.mxu0 %vm604_vm8, %v849_v54 }
 0x3b1   : > { %v758_v55 = vpop.f32.mrf.mxu3 }
 0x3b2   : > { %v762_v56 = vmul.f32 0.35355338, %v758_v55 }
 0x3b4   : > { %v766_v57 = vsel %vm638_vm9, %v762_v56, -inf }
 0x3b5   : > { %767 = vmax.xlane.f32.xlu1 %v766_v57 }
 0x414   : > { %v1786_v58 = vpop.f32.mrf.mxu2 }
 0x41c   : > { %v1788_v59 = vpop.f32.mrf.mxu2 }
 0x41f   : > { %v1003_v60 = vpop.f32.mrf.mxu3 }
 0x420   : > { %v1009_v61 = vmul.f32 0.35355338, %v1003_v60 }
 0x422   : > { %v1011_v62 = vsel %vm638_vm9, %v1009_v61, -inf }
 0x423   : > { %1012 = vmax.xlane.f32.xlu2 %v1011_v62 }
 0x424   : > { %v755_v6 = vpop.f32.mrf.mxu2 }
 0x425   : > { %v879_v63 = vpop.f32.mrf.mxu0  ;;  %v761_v9 = vmul.f32 0.35355338, %v755_v6 }
 0x426   : > { %v885_v1 = vmul.f32 0.35355338, %v879_v63 }
 0x427   : > { %v763_v17 = vsel %vm638_vm9, %v761_v9, -inf }
 0x428   : > { %v768_v3 = vpop.xlane.xlu1 %767  ;;  %v887_v5 = vsel %vm638_vm9, %v885_v1, -inf }
 0x429   : > { %v770_v7 = vsub.f32 %v762_v56, %v768_v3  ;;  %888 = vmax.xlane.f32.xlu0 %v887_v5 }
 0x42b   : > { %v773_v8 = vmul.f32 1.442695, %v770_v7 }
 0x42c   : > { %v1006_v11 = vpop.f32.mrf.mxu3 }
 0x42d   : > { %v1010_v12 = vmul.f32 0.35355338, %v1006_v11  ;;  %v882_v13 = vpop.f32.mrf.mxu0  ;;  %1547 = vpow2.f32 %v773_v8 }
 0x42e   : > { %v886_v14 = vmul.f32 0.35355338, %v882_v13 }
 0x42f   : > { %v1014_v15 = vsel %vm638_vm9, %v1010_v12, -inf }
 0x430   : > { %1015 = vmax.xlane.f32.xlu2 %v1014_v15  ;;  %v890_v16 = vsel %vm638_vm9, %v886_v14, -inf }
 0x431   : > { %891 = vmax.xlane.f32.xlu1 %v890_v16  ;;  %764 = vmax.xlane.f32.xlu0 %v763_v17 }
 0x433   : > { %v1795_v18 = vpop.eup %1547 }
 0x434   : > { %v778_v19 = vsel %vm638_vm9, %v1795_v18, 0.0 }
 0x438   : > { %779 = vadd.xlane.f32.xlu2 %v778_v19 }
 0x445   : > { %1509 = vrot.lane.b32.xlu0 %v1755_v4, %s1600_s22 }
 0x496   : > { %v1013_v20 = vpop.xlane.xlu2 %1012 }
 0x497   : > { %v1017_v21 = vsub.f32 %v1009_v61, %v1013_v20 }
 0x499   : > { %v1019_v22 = vmul.f32 1.442695, %v1017_v21 }
 0x49b   : > { %1549 = vpow2.f32 %v1019_v22 }
 0x49c   : > { %v889_v23 = vpop.xlane.xlu0 %888 }
 0x49d   : > { %v893_v24 = vsub.f32 %v885_v1, %v889_v23 }
 0x49f   : > { %v895_v25 = vmul.f32 1.442695, %v893_v24 }
 0x4a1   : > { %v1800_v26 = vpop.eup %1549  ;;  %1551 = vpow2.f32 %v895_v25 }
 0x4a2   : > { %v1023_v27 = vsel %vm638_vm9, %v1800_v26, 0.0 }
 0x4a3   : > { %v1016_v28 = vpop.xlane.xlu2 %1015  ;;  %1024 = vadd.xlane.f32.xlu1 %v1023_v27 }
 0x4a4   : > { %v1018_v29 = vsub.f32 %v1010_v12, %v1016_v28  ;;  %v892_v30 = vpop.xlane.xlu1 %891  ;;  %v765_v31 = vpop.xlane.xlu0 %764 }
 0x4a5   : > { %v894_v32 = vsub.f32 %v886_v14, %v892_v30  ;;  %v769_v33 = vsub.f32 %v761_v9, %v765_v31 }
 0x4a6   : > { %v1021_v34 = vmul.f32 1.442695, %v1018_v29 }
 0x4a7   : > { %v1804_v35 = vpop.eup %1551  ;;  %v897_v36 = vmul.f32 1.442695, %v894_v32  ;;  %v771_v37 = vmul.f32 1.442695, %v769_v33 }
 0x4a8   : > { %1553 = vpow2.f32 %v1021_v34  ;;  %v899_v38 = vsel %vm638_vm9, %v1804_v35, 0.0 }
 0x4a9   : > { %1555 = vpow2.f32 %v897_v36  ;;  %900 = vadd.xlane.f32.xlu2 %v899_v38 }
 0x4aa   : > { %1557 = vpow2.f32 %v771_v37 }
 0x4ab   : > { %v1822_v48 = vpop.xlane.xlu2 %779 }
 0x4ac   : > { %v807_v13 = vand.u32 2147483648, %v1822_v48  ;;  %vm801_vm11 = vweird.f32 %v1822_v48  ;;  %v805_v30 = vand.u32 2147483647, %v1822_v48 }
 0x4ae   : > { %v1808_v39 = vpop.eup %1553  ;;  %v808_v34 = vor.u32 1.1754944e-38, %v807_v13  ;;  %vm806_vm1 = vcmp.eq.f32.partialorder %v805_v30, 8.507059e+37 }
 0x4af   : > { %v1810_v40 = vpop.eup %1555  ;;  %v1026_v41 = vsel %vm638_vm9, %v1808_v39, 0.0 }
 0x4b0   : > { %v1814_v42 = vpop.eup %1557  ;;  %1027 = vadd.xlane.f32.xlu1 %v1026_v41  ;;  %v902_v43 = vsel %vm638_vm9, %v1810_v40, 0.0 }
 0x4b1   : > { %903 = vadd.xlane.f32.xlu2 %v902_v43  ;;  %v775_v44 = vsel %vm638_vm9, %v1814_v42, 0.0 }
 0x4b2   : > { %776 = vadd.xlane.f32.xlu0 %v775_v44 }
 0x4b7   : > { %v1510_v45 = vpop.permute.xlu0 %1509 }
 0x4b8   : > { %v1511_v46 = vunpack.i.l.bf16 %v1510_v45  ;;  %v1512_v47 = vunpack.i.h.bf16 %v1510_v45 }
 0x4ba   : > { %837 = vmatpush.msra.mxu2 %v1511_v46 }
 0x4bc   : > { %838 = vmatpush.msra.mxu2 %v1512_v47 }
 0x4c6   : > { %1519 = vrot.lane.b32.xlu0 %v1755_v4, %s1601_s23 }
 0x4c9   : > { %1514 = vrot.lane.b32.xlu1 %v1755_v4, %s1602_s24 }
 0x516   : > { %v1831_v53 = vpop.xlane.xlu1 %1024 }
 0x51c   : > { %v901_v49 = vpop.xlane.xlu2 %900 }
 0x51d   : > { %1559 = vrcp.f32 %v901_v49  ;;  %v916_v16 = vand.u32 2147483648, %v901_v49  ;;  %vm910_vm7 = vweird.f32 %v901_v49  ;;  %v914_v19 = vand.u32 2147483647, %v901_v49 }
 0x51e   : > { %1561 = vrcp.f32 %v1822_v48 }
 0x51f   : > { %v917_v31 = vor.u32 1.1754944e-38, %v916_v16  ;;  %vm915_vm15 = vcmp.eq.f32.partialorder %v914_v19, 8.507059e+37  ;;  %v1127_v19 = vld [vmem:[%s2063_s5 + $0x10] sm:$0xff] }
 0x523   : > { %v1825_v50 = vpop.eup %1559  ;;  %v1840_v62 = vpop.xlane.xlu1 %1027 }
 0x524   : > { %v1827_v51 = vpop.xlane.xlu2 %903  ;;  %v1829_v52 = vpop.eup %1561  ;;  %v906_v55 = vmul.f32 %v1825_v50, %v901_v49  ;;  %vm911_vm4 = vweird.f32 %v1825_v50 }
 0x525   : > { %1563 = vrcp.f32 %v1827_v51  ;;  %v777_v54 = vpop.xlane.xlu0 %776  ;;  %v797_v4 = vmul.f32 %v1829_v52, %v1822_v48  ;;  %vm802_vm6 = vweird.f32 %v1829_v52  ;;  %vm1857_vm12 = vmor %vm910_vm7, %vm911_vm4  ;;  %v931_v45 = vand.u32 2147483648, %v1827_v51 }
 0x526   : > { %1565 = vrcp.f32 %v777_v54  ;;  %v907_v56 = vsub.f32 1.0, %v906_v55  ;;  %v792_v8 = vand.u32 2147483648, %v777_v54  ;;  %v790_v12 = vand.u32 2147483647, %v777_v54  ;;  %vm1871_vm14 = vmor %vm801_vm11, %vm802_vm6 }
 0x527   : > { %1567 = vrcp.f32 %v1831_v53  ;;  %v798_v61 = vsub.f32 1.0, %v797_v4  ;;  %vm786_vm5 = vweird.f32 %v777_v54  ;;  %vm1034_vm6 = vweird.f32 %v1831_v53  ;;  %v1224_v4 = vld [vmem:[%s2067_s9 + $0x10] sm:$0xff] }
 0x528   : > { %v908_v3 = vmul.f32 %v1825_v50, %v907_v56  ;;  %1569 = vrcp.f32 %v1840_v62  ;;  %v793_v20 = vor.u32 1.1754944e-38, %v792_v8  ;;  %vm791_vm13 = vcmp.eq.f32.partialorder %v790_v12, 8.507059e+37 }
 0x529   : > { %v799_v7 = vmul.f32 %v1829_v52, %v798_v61  ;;  %v1040_v56 = vand.u32 2147483648, %v1831_v53  ;;  %v932_v61 = vor.u32 1.1754944e-38, %v931_v45 }
 0x52a   : > { %v909_v14 = vadd.f32 %v1825_v50, %v908_v3 }
 0x52b   : > { %v1838_v57 = vpop.eup %1563  ;;  %v800_v21 = vadd.f32 %v1829_v52, %v799_v7  ;;  %v1041_v7 = vor.u32 1.1754944e-38, %v1040_v56  ;;  %v1223_v56 = vld [vmem:[%s2067_s9 + $0x8] sm:$0xff] }
 0x52c   : > { %v1566_v60 = vpop.eup %1565  ;;  %v921_v5 = vmul.f32 %v1838_v57, %v1827_v51  ;;  %v913_v29 = vsel %vm1857_vm12, %v1825_v50, %v909_v14  ;;  %vm926_vm2 = vweird.f32 %v1838_v57 }
 0x52d   : > { %v782_v63 = vmul.f32 %v1566_v60, %v777_v54  ;;  %v1842_v1 = vpop.eup %1567  ;;  %vm787_vm3 = vweird.f32 %v1566_v60  ;;  %v804_v37 = vsel %vm1871_vm14, %v1829_v52, %v800_v21  ;;  %v918_v43 = vsel %vm915_vm15, %v917_v31, %v913_v29  ;;  %v1125_v21 = vld [vmem:[%s2063_s5] sm:$0xff] }
 0x52e   : > { %v1030_v9 = vmul.f32 %v1842_v1, %v1831_v53  ;;  %v922_v15 = vsub.f32 1.0, %v921_v5  ;;  %vm788_vm10 = vmor %vm786_vm5, %vm787_vm3  ;;  %v1861_v25 = vpop.eup %1569  ;;  %v809_v48 = vsel %vm806_vm1, %v808_v34, %v804_v37  ;;  %vm925_vm3 = vweird.f32 %v1827_v51 }
 0x52f   : > { %v783_v6 = vsub.f32 1.0, %v782_v63  ;;  %v1045_v41 = vmul.f32 %v1861_v25, %v1840_v62  ;;  %v919_v50 = vmul.f32 %v1804_v35, %v918_v43  ;;  %v929_v52 = vand.u32 2147483647, %v1827_v51  ;;  %vm1890_vm5 = vmor %vm925_vm3, %vm926_vm2 }
 0x530   : > { %v1031_v22 = vsub.f32 1.0, %v1030_v9  ;;  %v923_v27 = vmul.f32 %v1838_v57, %v922_v15  ;;  %vm1035_vm4 = vweird.f32 %v1842_v1  ;;  %v1038_v51 = vand.u32 2147483647, %v1831_v53 }
 0x531   : > { %v784_v11 = vmul.f32 %v1566_v60, %v783_v6  ;;  %v1046_v55 = vsub.f32 1.0, %v1045_v41  ;;  %v810_v63 = vmul.f32 %v1795_v18, %v809_v48  ;;  %vm1036_vm7 = vmor %vm1034_vm6, %vm1035_vm4  ;;  %vm1050_vm12 = vweird.f32 %v1861_v25 }
 0x532   : > { %v1032_v38 = vmul.f32 %v1842_v1, %v1031_v22  ;;  %v924_v44 = vadd.f32 %v1838_v57, %v923_v27  ;;  %vm1039_vm11 = vcmp.eq.f32.partialorder %v1038_v51, 8.507059e+37  ;;  %v1055_v18 = vand.u32 2147483648, %v1840_v62 }
 0x533   : > { %v785_v17 = vadd.f32 %v1566_v60, %v784_v11  ;;  %v1047_v5 = vmul.f32 %v1861_v25, %v1046_v55  ;;  %v1053_v9 = vand.u32 2147483647, %v1840_v62  ;;  %vm1122_vm1 = vcmask 195584   ;;  %v1225_v55 = vld [vmem:[%s2067_s9 + $0x18] sm:$0xff] }
 0x534   : > { %v1033_v54 = vadd.f32 %v1842_v1, %v1032_v38  ;;  %v928_v35 = vsel %vm1890_vm5, %v1838_v57, %v924_v44 }
 0x535   : > { %v789_v24 = vsel %vm788_vm10, %v1566_v60, %v785_v17  ;;  %vm930_vm10 = vcmp.eq.f32.partialorder %v929_v52, 8.507059e+37  ;;  %v1048_v53 = vadd.f32 %v1861_v25, %v1047_v5  ;;  %vm1054_vm15 = vcmp.eq.f32.partialorder %v1053_v9, 8.507059e+37  ;;  %v1290_v5 = vld [vmem:[%s2069_s11 + $0x68] sm:$0xff] }
 0x536   : > { %v794_v28 = vsel %vm791_vm13, %v793_v20, %v789_v24  ;;  %v1037_v3 = vsel %vm1036_vm7, %v1842_v1, %v1033_v54  ;;  %v933_v6 = vsel %vm930_vm10, %v932_v61, %v928_v35  ;;  %vm1049_vm13 = vweird.f32 %v1840_v62  ;;  %v1126_v20 = vld [vmem:[%s2063_s5 + $0x8] sm:$0xff] }
 0x537   : > { %v795_v32 = vmul.f32 %v1814_v42, %v794_v28  ;;  %v1042_v57 = vsel %vm1039_vm11, %v1041_v7, %v1037_v3  ;;  %v934_v8 = vmul.f32 %v1810_v40, %v933_v6  ;;  %vm1051_vm14 = vmor %vm1049_vm13, %vm1050_vm12  ;;  %v1056_v40 = vor.u32 1.1754944e-38, %v1055_v18  ;;  %v1291_v3 = vld [vmem:[%s2069_s11 + $0x70] sm:$0xff] }
 0x538   : > { %v1520_v36 = vpop.permute.xlu0 %1519  ;;  %v1043_v1 = vmul.f32 %v1800_v26, %v1042_v57  ;;  %v1052_v11 = vsel %vm1051_vm14, %v1861_v25, %v1048_v53 }
 0x539   : > { %1456 = vmatmul.msk.f32.vlgmr.msra.gmra.mxu2 %vm638_vm9, %v795_v32  ;;  %v1521_v42 = vunpack.i.l.bf16 %v1520_v36  ;;  %v1522_v47 = vunpack.i.h.bf16 %v1520_v36  ;;  %v1057_v12 = vsel %vm1054_vm15, %v1056_v40, %v1052_v11 }
 0x53a   : > { %v1058_v13 = vmul.f32 %v1808_v39, %v1057_v12  ;;  %v1128_v39 = vld [vmem:[%s2063_s5 + $0x18] sm:$0xff]  ;;  %v1527_v12 = vld [vmem:[%s2065_s7] ss:$0 sm:$0xff] }
 0x53b   : > { %961 = vmatpush.msrb.mxu1 %v1521_v42  ;;  %v1515_v46 = vpop.permute.xlu1 %1514  ;;  %1147 = vmatpush.msra.mxu0 %v1128_v39 }
 0x53c   : > { %v1516_v49 = vunpack.i.l.bf16 %v1515_v46  ;;  %v1517_v60 = vunpack.i.h.bf16 %v1515_v46 }
 0x53d   : > { %962 = vmatpush.msrb.mxu1 %v1522_v47  ;;  %1148 = vmatpush.msra.mxu0 %v1127_v19 }
 0x53e   : > { %1462 = vmatmul.msk.f32.vlgmr.msrb.gmra.mxu1 %vm638_vm9, %v919_v50  ;;  %1085 = vmatpush.msrb.mxu2 %v1516_v49 }
 0x53f   : > { %1149 = vmatpush.msra.mxu0 %v1126_v20  ;;  %1248 = vmatpush.msra.mxu1 %v1225_v55 }
 0x540   : > { %1086 = vmatpush.msrb.mxu2 %v1517_v60  ;;  %v1222_v60 = vld [vmem:[%s2067_s9] sm:$0xff] }
 0x541   : > { %1457 = vmatmul.msk.f32.gmra.mxu2 %vm638_vm9, %v810_v63  ;;  %1150 = vmatpush.msra.mxu0 %v1125_v21  ;;  %v1292_v63 = vld [vmem:[%s2069_s11 + $0x78] sm:$0xff] }
 0x542   : > { %1249 = vmatpush.msra.mxu1 %v1224_v4  ;;  %1297 = vmatpush.msra.mxu3 %v1292_v63 }
 0x544   : > { %1250 = vmatpush.msra.mxu1 %v1223_v56  ;;  %1298 = vmatpush.msra.mxu3 %v1291_v3 }
 0x546   : > { %1463 = vmatmul.msk.f32.gmra.mxu1 %vm638_vm9, %v934_v8  ;;  %1299 = vmatpush.msra.mxu3 %v1290_v5 }
 0x547   : > { %1251 = vmatpush.msra.mxu1 %v1222_v60 }
 0x549   : > { %1468 = vmatmul.msk.f32.vlgmr.msrb.gmra.mxu2 %vm638_vm9, %v1043_v1 }
 0x551   : > { %1469 = vmatmul.msk.f32.gmra.mxu2 %vm638_vm9, %v1058_v13 }
 0x5bb   : > { %v964_v14 = vpop.f32.mrf.mxu1 }
 0x5bc   : > { %1104 = vrot.lane.b32.xlu0 %v964_v14, %s1603_s25  ;;  %v840_v15 = vpop.f32.mrf.mxu2 }
 0x5bd   : > { %1096 = vrot.lane.b32.xlu2 %v840_v15, %s1604_s26 }
 0x5c3   : > { %v967_v16 = vpop.f32.mrf.mxu1 }
 0x5c4   : > { %v843_v26 = vpop.f32.mrf.mxu2 }
 0x5c5   : > { %1098 = vrot.lane.b32.xlu1 %v843_v26, %s1604_s26 }
 0x5cc   : > { %v1088_v62 = vpop.f32.mrf.mxu2 }
 0x5cd   : > { %1112 = vrot.lane.b32.xlu0 %v1088_v62, %s1605_s27  ;;  %v1528_v62 = vld [vmem:[%s2066_s8] ss:$0 sm:$0xff] }
 0x5d4   : > { %v1091_v17 = vpop.f32.mrf.mxu2 }
 0x5d5   : > { %1106 = vrot.lane.b32.xlu0 %v967_v16, %s1603_s25  ;;  %1114 = vrot.lane.b32.xlu2 %v1091_v17, %s1605_s27 }
 0x617   : > { %v1097_v23 = vpop.permute.xlu2 %1096 }
 0x618   : > { %v1118_v24 = vsel %vm604_vm8, %v1786_v58, %v1097_v23  ;;  %v1526_v58 = vld [vmem:[%s2064_s6] ss:$0 sm:$0xff] }
 0x62e   : > { %v1105_v22 = vpop.permute.xlu0 %1104 }
 0x62f   : > { %v1120_v25 = vsel %vm638_vm9, %v1118_v24, %v1105_v22  ;;  %v1115_v32 = vpop.permute.xlu2 %1114 }
 0x637   : > { %v1099_v29 = vpop.permute.xlu1 %1098 }
 0x638   : > { %v1119_v30 = vsel %vm604_vm8, %v1788_v59, %v1099_v29  ;;  %v1286_v29 = vld [vmem:[%s2069_s11 + $0x48] sm:$0xff] }
 0x63f   : > { %v1113_v27 = vpop.permute.xlu0 %1112 }
 0x640   : > { %v1123_v28 = vsel %vm1122_vm1, %v1120_v25, %v1113_v27  ;;  %v1289_v25 = vld [vmem:[%s2069_s11 + $0x60] sm:$0xff]  ;;  %v1288_v27 = vld [vmem:[%s2069_s11 + $0x58] sm:$0xff] }
 0x641   : > { %1470 = vmatmul.msk.f32.vlgmr.msra.gmra.mxu0 %vm499_vm0, %v1123_v28  ;;  %1300 = vmatpush.msra.mxu3 %v1289_v25  ;;  %v1287_v28 = vld [vmem:[%s2069_s11 + $0x50] sm:$0xff] }
 0x643   : > { %1301 = vmatpush.msra.mxu3 %v1288_v27 }
 0x645   : > { %1302 = vmatpush.msra.mxu3 %v1287_v28 }
 0x647   : > { %v1107_v31 = vpop.permute.xlu0 %1106  ;;  %1303 = vmatpush.msra.mxu3 %v1286_v29 }
 0x648   : > { %v1121_v33 = vsel %vm638_vm9, %v1119_v30, %v1107_v31  ;;  %v1285_v30 = vld [vmem:[%s2069_s11 + $0x40] sm:$0xff]  ;;  %v1284_v31 = vld [vmem:[%s2069_s11 + $0x38] sm:$0xff] }
 0x649   : > { %v1124_v34 = vsel %vm1122_vm1, %v1121_v33, %v1115_v32  ;;  %1304 = vmatpush.msra.mxu3 %v1285_v30  ;;  %v1283_v32 = vld [vmem:[%s2069_s11 + $0x30] sm:$0xff]  ;;  %v1282_v33 = vld [vmem:[%s2069_s11 + $0x28] sm:$0xff] }
 0x64a   : > { %1471 = vmatmul.msk.f32.gmra.mxu0 %vm499_vm0, %v1124_v34  ;;  %v1281_v34 = vld [vmem:[%s2069_s11 + $0x20] sm:$0xff] }
 0x64b   : > { %1305 = vmatpush.msra.mxu3 %v1284_v31  ;;  %v1531_v31 = vld [vmem:[%s2071_s13] ss:$0 sm:$0xff] }
 0x64d   : > { %1306 = vmatpush.msra.mxu3 %v1283_v32 }
 0x64f   : > { %1307 = vmatpush.msra.mxu3 %v1282_v33 }
 0x651   : > { %1308 = vmatpush.msra.mxu3 %v1281_v34 }
 0x6be   : > { %v1152_v36 = vpop.f32.mrf.mxu0 }
 0x6bf   : > { %v1158_v37 = vadd.f32 %v1152_v36, %v1702_v0  ;;  %v1279_v36 = vld [vmem:[%s2069_s11 + $0x10] sm:$0xff] }
 0x6c1   : > { %v1941_v38 = vadd.f32 %v1526_v58, %v1158_v37  ;;  %v1278_v37 = vld [vmem:[%s2069_s11 + $0x8] sm:$0xff] }
 0x6c3   : > { %v1168_v41 = vsel %vm499_vm0, %v1941_v38, 0.0 }
 0x6c4   : > { %1169 = vadd.xlane.f32.xlu1 %v1168_v41  ;;  %v1277_v41 = vld [vmem:[%s2069_s11] sm:$0xff] }
 0x6c7   : > { %v1155_v59 = vpop.f32.mrf.mxu0 }
 0x6c8   : > { %v1159_v42 = vadd.f32 %v1155_v59, %v1706_v2  ;;  %v1529_v59 = vld [vmem:[%s2068_s10] ss:$0 sm:$0xff] }
 0x6ca   : > { %v1946_v43 = vadd.f32 %v1526_v58, %v1159_v42  ;;  %v1280_v58 = vld [vmem:[%s2069_s11 + $0x18] sm:$0xff] }
 0x6cb   : > { %1309 = vmatpush.msra.mxu3 %v1280_v58 }
 0x6cc   : > { %v1171_v44 = vsel %vm499_vm0, %v1946_v43, 0.0 }
 0x6cd   : > { %1172 = vadd.xlane.f32.xlu0 %v1171_v44  ;;  %1310 = vmatpush.msra.mxu3 %v1279_v36 }
 0x6cf   : > { %1311 = vmatpush.msra.mxu3 %v1278_v37 }
 0x6d1   : > { %1312 = vmatpush.msra.mxu3 %v1277_v41 }
 0x737   : > { %v1170_v45 = vpop.xlane.xlu1 %1169 }
 0x738   : > { %v1174_v46 = vmul.f32 %v1170_v45, %v1710_v10 }
 0x73a   : > { %v1176_v0 = vsub.f32 %v1941_v38, %v1174_v46 }
 0x73c   : > { %v1178_v47 = vmul.f32 %v1176_v0, %v1176_v0 }
 0x73e   : > { %v1180_v48 = vsel %vm499_vm0, %v1178_v47, 0.0 }
 0x73f   : > { %1181 = vadd.xlane.f32.xlu2 %v1180_v48 }
 0x740   : > { %v1173_v49 = vpop.xlane.xlu0 %1172 }
 0x741   : > { %v1175_v50 = vmul.f32 %v1173_v49, %v1710_v10 }
 0x743   : > { %v1177_v2 = vsub.f32 %v1946_v43, %v1175_v50 }
 0x745   : > { %v1179_v52 = vmul.f32 %v1177_v2, %v1177_v2 }
 0x747   : > { %v1183_v54 = vsel %vm499_vm0, %v1179_v52, 0.0 }
 0x748   : > { %1184 = vadd.xlane.f32.xlu1 %v1183_v54 }
 0x7b2   : > { %v1182_v35 = vpop.xlane.xlu2 %1181 }
 0x7b3   : > { %v1186_v51 = vmul.f32 %v1182_v35, %v1710_v10 }
 0x7b5   : > { %v1188_v61 = vadd.f32 1e-06, %v1186_v51 }
 0x7b7   : > { %1571 = vrsqrt.f32 %v1188_v61  ;;  %vm1196_vm9 = vweird.f32 %v1188_v61 }
 0x7bb   : > { %v1185_v6 = vpop.xlane.xlu1 %1184 }
 0x7bc   : > { %v1187_v7 = vmul.f32 %v1185_v6, %v1710_v10  ;;  %v1530_v6 = vld [vmem:[%s2070_s12] ss:$0 sm:$0xff] }
 0x7bd   : > { %v1572_v57 = vpop.eup %1571 }
 0x7be   : > { %v1191_v8 = vmul.f32 %v1572_v57, %v1188_v61  ;;  %v1189_v53 = vadd.f32 1e-06, %v1187_v7  ;;  %vm1197_vm8 = vweird.f32 %v1572_v57 }
 0x7bf   : > { %vm1198_vm2 = vmor %vm1196_vm9, %vm1197_vm8 }
 0x7c0   : > { %v1192_v18 = vmul.f32 %v1572_v57, %v1191_v8  ;;  %1573 = vrsqrt.f32 %v1189_v53  ;;  %vm1206_vm4 = vweird.f32 %v1189_v53 }
 0x7c2   : > { %v1193_v1 = vmul.f32 0.5, %v1192_v18 }
 0x7c4   : > { %v1194_v9 = vsub.f32 1.5, %v1193_v1 }
 0x7c6   : > { %v1574_v11 = vpop.eup %1573  ;;  %v1195_v40 = vmul.f32 %v1572_v57, %v1194_v9 }
 0x7c7   : > { %v1201_v13 = vmul.f32 %v1574_v11, %v1189_v53  ;;  %vm1207_vm3 = vweird.f32 %v1574_v11 }
 0x7c8   : > { %v1199_v14 = vsel %vm1198_vm2, %v1572_v57, %v1195_v40  ;;  %vm1208_vm5 = vmor %vm1206_vm4, %vm1207_vm3 }
 0x7c9   : > { %v1210_v15 = vmul.f32 %v1199_v14, %v1176_v0  ;;  %v1202_v26 = vmul.f32 %v1574_v11, %v1201_v13 }
 0x7cb   : > { %v1215_v16 = vmul.f32 %v1527_v12, %v1210_v15  ;;  %v1203_v17 = vmul.f32 0.5, %v1202_v26 }
 0x7cd   : > { %v1204_v39 = vsub.f32 1.5, %v1203_v17  ;;  %v1220_v19 = vadd.f32 %v1528_v62, %v1215_v16 }
 0x7cf   : > { %v1205_v20 = vmul.f32 %v1574_v11, %v1204_v39  ;;  %1472 = vmatmul.msk.f32.vlgmr.msra.gmra.mxu1 %vm499_vm0, %v1220_v19 }
 0x7d1   : > { %v1209_v21 = vsel %vm1208_vm5, %v1574_v11, %v1205_v20 }
 0x7d2   : > { %v1211_v22 = vmul.f32 %v1209_v21, %v1177_v2 }
 0x7d4   : > { %v1216_v23 = vmul.f32 %v1527_v12, %v1211_v22 }
 0x7d6   : > { %v1221_v24 = vadd.f32 %v1528_v62, %v1216_v23 }
 0x7d8   : > { %1473 = vmatmul.msk.f32.gmra.mxu1 %vm499_vm0, %v1221_v24 }
 0x84c   : > { %v1253_v42 = vpop.f32.mrf.mxu1 }
 0x84d   : > { %v1254_v44 = vadd.f32 %v1529_v59, %v1253_v42 }
 0x84f   : > { %v1259_v45 = vmul.f32 %v1254_v44, %v1254_v44 }
 0x851   : > { %v1261_v46 = vmul.f32 %v1259_v45, %v1254_v44 }
 0x853   : > { %v1263_v0 = vmul.f32 0.044715, %v1261_v46 }
 0x855   : > { %v1265_v47 = vadd.f32 %v1263_v0, %v1254_v44  ;;  %v1256_v48 = vpop.f32.mrf.mxu1 }
 0x856   : > { %v1257_v49 = vadd.f32 %v1529_v59, %v1256_v48 }
 0x857   : > { %v1267_v50 = vmul.f32 0.7978846, %v1265_v47 }
 0x858   : > { %v1260_v2 = vmul.f32 %v1257_v49, %v1257_v49 }
 0x859   : > { %1575 = vtanh.f32 %v1267_v50 }
 0x85a   : > { %v1262_v52 = vmul.f32 %v1260_v2, %v1257_v49 }
 0x85c   : > { %v1264_v54 = vmul.f32 0.044715, %v1262_v52 }
 0x85e   : > { %v1266_v55 = vadd.f32 %v1264_v54, %v1257_v49 }
 0x85f   : > { %v1576_v4 = vpop.eup %1575 }
 0x860   : > { %v1271_v56 = vadd.f32 1.0, %v1576_v4  ;;  %v1268_v60 = vmul.f32 0.7978846, %v1266_v55 }
 0x862   : > { %v1273_v35 = vmul.f32 0.5, %v1271_v56  ;;  %1577 = vtanh.f32 %v1268_v60 }
 0x864   : > { %v1275_v51 = vmul.f32 %v1273_v35, %v1254_v44 }
 0x866   : > { %1313 = vmatmul.f32.vlgmr.msra.gmra.mxu3 %v1275_v51 }
 0x868   : > { %v1578_v61 = vpop.eup %1577 }
 0x869   : > { %v1272_v63 = vadd.f32 1.0, %v1578_v61 }
 0x86b   : > { %v1274_v3 = vmul.f32 0.5, %v1272_v63 }
 0x86d   : > { %v1276_v5 = vmul.f32 %v1274_v3, %v1257_v49 }
 0x86f   : > { %1316 = vmatmul.f32.gmra.mxu3 %v1276_v5 }
 0x8e9   : > { %v1314_v7 = vpop.f32.mrf.mxu3 }
 0x8ea   : > { %v1315_v57 = vadd.f32 %v1530_v6, %v1314_v7 }
 0x8ec   : > { %v1320_v8 = vadd.f32 %v1315_v57, %v1941_v38 }
 0x8ee   : > { %v1324_v53 = vsel %vm499_vm0, %v1320_v8, 0.0 }
 0x8ef   : > { %1325 = vadd.xlane.f32.xlu2 %v1324_v53 }
 0x8f2   : > { %v1317_v18 = vpop.f32.mrf.mxu3 }
 0x8f3   : > { %v1318_v1 = vadd.f32 %v1530_v6, %v1317_v18 }
 0x8f5   : > { %v1321_v9 = vadd.f32 %v1318_v1, %v1946_v43 }
 0x8f7   : > { %v1327_v11 = vsel %vm499_vm0, %v1321_v9, 0.0 }
 0x8f8   : > { %1328 = vadd.xlane.f32.xlu0 %v1327_v11 }
 0x962   : > { %v1326_v40 = vpop.xlane.xlu2 %1325 }
 0x963   : > { %v1330_v12 = vmul.f32 %v1326_v40, %v1710_v10 }
 0x965   : > { %v1332_v13 = vsub.f32 %v1320_v8, %v1330_v12 }
 0x967   : > { %v1334_v14 = vmul.f32 %v1332_v13, %v1332_v13 }
 0x969   : > { %v1336_v15 = vsel %vm499_vm0, %v1334_v14, 0.0 }
 0x96a   : > { %1337 = vadd.xlane.f32.xlu1 %v1336_v15 }
 0x96b   : > { %v1329_v26 = vpop.xlane.xlu0 %1328 }
 0x96c   : > { %v1331_v38 = vmul.f32 %v1329_v26, %v1710_v10 }
 0x96e   : > { %v1333_v62 = vsub.f32 %v1321_v9, %v1331_v38 }
 0x970   : > { %v1335_v16 = vmul.f32 %v1333_v62, %v1333_v62 }
 0x972   : > { %v1339_v17 = vsel %vm499_vm0, %v1335_v16, 0.0 }
 0x973   : > { %1340 = vadd.xlane.f32.xlu2 %v1339_v17 }
 0x9dd   : > { %v1338_v43 = vpop.xlane.xlu1 %1337 }
 0x9de   : > { %v1342_v39 = vmul.f32 %v1338_v43, %v1710_v10 }
 0x9e0   : > { %v1344_v19 = vadd.f32 1e-06, %v1342_v39 }
 0x9e2   : > { %1579 = vrsqrt.f32 %v1344_v19  ;;  %vm1352_vm7 = vweird.f32 %v1344_v19 }
 0x9e6   : > { %v1341_v20 = vpop.xlane.xlu2 %1340 }
 0x9e7   : > { %v1343_v21 = vmul.f32 %v1341_v20, %v1710_v10  ;;  %v1532_v10 = vld [vmem:[%s2072_s14] ss:$0 sm:$0xff] }
 0x9e8   : > { %v1580_v22 = vpop.eup %1579 }
 0x9e9   : > { %v1347_v23 = vmul.f32 %v1580_v22, %v1344_v19  ;;  %v1345_v24 = vadd.f32 1e-06, %v1343_v21  ;;  %vm1353_vm6 = vweird.f32 %v1580_v22 }
 0x9ea   : > { %vm1354_vm10 = vmor %vm1352_vm7, %vm1353_vm6 }
 0x9eb   : > { %v1348_v25 = vmul.f32 %v1580_v22, %v1347_v23  ;;  %1581 = vrsqrt.f32 %v1345_v24  ;;  %vm1362_vm12 = vweird.f32 %v1345_v24 }
 0x9ed   : > { %v1349_v27 = vmul.f32 0.5, %v1348_v25 }
 0x9ef   : > { %v1350_v28 = vsub.f32 1.5, %v1349_v27 }
 0x9f1   : > { %v1582_v29 = vpop.eup %1581  ;;  %v1351_v30 = vmul.f32 %v1580_v22, %v1350_v28 }
 0x9f2   : > { %v1357_v32 = vmul.f32 %v1582_v29, %v1345_v24  ;;  %vm1363_vm11 = vweird.f32 %v1582_v29 }
 0x9f3   : > { %v1355_v33 = vsel %vm1354_vm10, %v1580_v22, %v1351_v30  ;;  %vm1364_vm13 = vmor %vm1362_vm12, %vm1363_vm11 }
 0x9f4   : > { %v1366_v34 = vmul.f32 %v1355_v33, %v1332_v13  ;;  %v1358_v58 = vmul.f32 %v1582_v29, %v1357_v32 }
 0x9f6   : > { %v1371_v36 = vmul.f32 %v1531_v31, %v1366_v34  ;;  %v1359_v37 = vmul.f32 0.5, %v1358_v58 }
 0x9f8   : > { %v1376_v41 = vadd.f32 %v1532_v10, %v1371_v36  ;;  %v1360_v59 = vsub.f32 1.5, %v1359_v37 }
 0x9fa   : > { %1378 = vst.msk [vmem:[%s494_s17] sm:$0xff] %vm499_vm0, %v1376_v41  ;;  %v1361_v42 = vmul.f32 %v1582_v29, %v1360_v59 }
 0x9fc   : > { %v1365_v44 = vsel %vm1364_vm13, %v1582_v29, %v1361_v42 }
 0x9fd   : > { %v1367_v45 = vmul.f32 %v1365_v44, %v1333_v62 }
 0x9ff   : > { %v1372_v46 = vmul.f32 %v1531_v31, %v1367_v45 }
 0xa01   : > { %v1377_v0 = vadd.f32 %v1532_v10, %v1372_v46 }
 0xa03   : > { %1379 = vst.msk [vmem:[%s494_s17 + $0x8] sm:$0xff] %vm499_vm0, %v1377_v0 }
 0xa04 PF: > { %s25_s18 = sadd.s32 1, %s1589_s18  }
 0xa05   : > { %p22_p4 = scmp.ge.s32.totalorder %s25_s18, 4  }
 0xa07   :  { %24 = sbr.rel (!%p22_p4) target bundleno = 1 (0x1), region = 110 }

// kernel: vitpose_wrapper_forward.4
= control target key start
LH: loop header
LB: loop body
LE: loop exit
PB: predicated region body
PF: predicated region fallthrough
CT: control target
= control target key end

     0   :  { %s1908_s21 = smov 0   ;;  %s2510_s0 = inlined_call_operand.vmem [shape: f32[2,16,768], index: 0, kind: input, shape index: {}]   ;;  %s2511_s1 = inlined_call_operand.vmem [shape: f32[768,32], index: 1, kind: input, shape index: {}]   ;;  %s2512_s2 = inlined_call_operand.vmem [shape: f32[1,32], index: 2, kind: input, shape index: {}]   ;;  %s2513_s3 = inlined_call_operand.vmem [shape: f32[16,32], index: 3, kind: input, shape index: {}]   ;;  %s2514_s4 = inlined_call_operand.vmem [shape: f32[1,32], index: 4, kind: input, shape index: {}]   ;;  %s2515_s5 = inlined_call_operand.vmem [shape: f32[1,32], index: 5, kind: input, shape index: {}]   ;;  %s2516_s6 = inlined_call_operand.vmem [shape: f32[32,96], index: 6, kind: input, shape index: {}]   ;;  %s2517_s7 = inlined_call_operand.vmem [shape: f32[1,96], index: 7, kind: input, shape index: {}]   ;;  %s2518_s8 = inlined_call_operand.vmem [shape: f32[32,32], index: 8, kind: input, shape index: {}]   ;;  %s2519_s9 = inlined_call_operand.vmem [shape: f32[1,32], index: 9, kind: input, shape index: {}]   ;;  %s2520_s10 = inlined_call_operand.vmem [shape: f32[1,32], index: 10, kind: input, shape index: {}]   ;;  %s2521_s11 = inlined_call_operand.vmem [shape: f32[1,32], index: 11, kind: input, shape index: {}]   ;;  %s2522_s12 = inlined_call_operand.vmem [shape: f32[32,128], index: 12, kind: input, shape index: {}]   ;;  %s2523_s13 = inlined_call_operand.vmem [shape: f32[1,128], index: 13, kind: input, shape index: {}]   ;;  %s2524_s14 = inlined_call_operand.vmem [shape: f32[128,32], index: 14, kind: input, shape index: {}]   ;;  %s2525_s15 = inlined_call_operand.vmem [shape: f32[1,32], index: 15, kind: input, shape index: {}]   ;;  %s2526_s16 = inlined_call_operand.vmem [shape: f32[2,16,32], index: 16, kind: output, shape index: {}]  }
   0x1   :  { %2527 = sst [smem:[#allocation2_spill]] %s2510_s0 }
   0x2 LB: > { %s1658_s22 = sadd.s32 4294967295, %s1806_s21   ;;  %p1662_p0 = scmp.ge.s32.totalorder %s1806_s21, 1  ;;  %s1806_s21 = sphi %s1908_s21, %s26_s21  }
   0x3   : > { %p462_p1 = scmp.lt.s32.totalorder %s1806_s21, 3 }
   0x5   : > { %p463_p2 = pnand %p1662_p0, %p462_p1 }
   0x6   : > { %p2044_p3 = scmp.lt.s32.totalorder (!%p463_p2), %s1658_s22, 1  ;;  %s2529_s0 = sld [smem:[#allocation2_spill]] (!%p463_p2) }
   0x7   : > { %466 = sbr.rel (%p463_p2) target bundleno = 2125 (0x84d), region = 84  ;;  %s1810_s27 = smov (!%p463_p2), 88  }
   0x8   : > { %s1811_s28 = smov (!%p463_p2), 72   ;;  %s1812_s29 = smov (!%p463_p2), 112  }
   0x9   : > { %s1813_s30 = smov (!%p463_p2), 120   ;;  %s1815_s18 = smov (!%p463_p2), 104  }
   0xa   : > { %s1816_s19 = smov (!%p463_p2), 64   ;;  %s1818_s20 = smov (!%p463_p2), 56  }
   0xb   : > { %s1819_s23 = smov (!%p463_p2), 40   ;;  %s1820_s25 = smov (!%p463_p2), 16  }
   0xc   : > { %v549_v0 = vld [vmem:[%s2511_s1 + $0x78] sm:$0xff]  ;;  %v548_v1 = vld [vmem:[%s2511_s1 + $0x70] sm:$0xff]  ;;  %v547_v4 = vld [vmem:[%s2511_s1 + $0x68] sm:$0xff]  ;;  %s2531_s22 = smov (!%p2044_p3, %s1658_s22), 1  ;;  %vm778_vm0 = vcmask 261120   ;;  %vm883_vm8 = vcmask 64512  }
   0xd   : > { %v565_v2 = vld [vmem:[%s2511_s1 + $0xf8] sm:$0xff]  ;;  %634 = vmatpush.msra.mxu0 %v549_v0  ;;  %v564_v3 = vld [vmem:[%s2511_s1 + $0xf0] sm:$0xff]  ;;  %v563_v5 = vld [vmem:[%s2511_s1 + $0xe8] sm:$0xff]  ;;  %s1701_s24 = smul.u32 96, %s2531_s22  ;;  %vm917_vm9 = vcmask 130048   ;;  %s1821_s26 = smov 8  }
   0xe   : > { %657 = vmatpush.msra.mxu1 %v565_v2  ;;  %v546_v6 = vld [vmem:[%s2511_s1 + $0x60] sm:$0xff]  ;;  %v581_v8 = vld [vmem:[%s2511_s1 + $0x178] sm:$0xff]  ;;  %v580_v9 = vld [vmem:[%s2511_s1 + $0x170] sm:$0xff] }
   0xf   : > { %635 = vmatpush.msra.mxu0 %v548_v1  ;;  %v562_v7 = vld [vmem:[%s2511_s1 + $0xe0] sm:$0xff]  ;;  %v597_v10 = vld [vmem:[%s2511_s1 + $0x1f8] sm:$0xff]  ;;  %680 = vmatpush.msra.mxu2 %v581_v8  ;;  %v579_v13 = vld [vmem:[%s2511_s1 + $0x168] sm:$0xff]  ;;  %s2130_s17 = scalar_lea.vmem %s2529_s0, %s1701_s24  ;;  %s1809_s24 = smov 96  }
  0x10   : > { %658 = vmatpush.msra.mxu1 %v564_v3  ;;  %v545_v11 = vld [vmem:[%s2511_s1 + $0x58] sm:$0xff]  ;;  %703 = vmatpush.msra.mxu3 %v597_v10  ;;  %v596_v14 = vld [vmem:[%s2511_s1 + $0x1f0] sm:$0xff]  ;;  %v595_v17 = vld [vmem:[%s2511_s1 + $0x1e8] sm:$0xff]  ;;  %s1814_s0 = smov 80  }
  0x11   : > { %636 = vmatpush.msra.mxu0 %v547_v4  ;;  %v561_v12 = vld [vmem:[%s2511_s1 + $0xd8] sm:$0xff]  ;;  %v544_v15 = vld [vmem:[%s2511_s1 + $0x50] sm:$0xff]  ;;  %681 = vmatpush.msra.mxu2 %v580_v9  ;;  %v578_v18 = vld [vmem:[%s2511_s1 + $0x160] sm:$0xff] }
  0x12   : > { %659 = vmatpush.msra.mxu1 %v563_v5  ;;  %v560_v16 = vld [vmem:[%s2511_s1 + $0xd0] sm:$0xff]  ;;  %704 = vmatpush.msra.mxu3 %v596_v14  ;;  %v594_v19 = vld [vmem:[%s2511_s1 + $0x1e0] sm:$0xff]  ;;  %v543_v20 = vld [vmem:[%s2511_s1 + $0x48] sm:$0xff] }
  0x13   : > { %637 = vmatpush.msra.mxu0 %v546_v6  ;;  %v559_v21 = vld [vmem:[%s2511_s1 + $0xc8] sm:$0xff]  ;;  %682 = vmatpush.msra.mxu2 %v579_v13  ;;  %v577_v22 = vld [vmem:[%s2511_s1 + $0x158] sm:$0xff]  ;;  %v542_v24 = vld [vmem:[%s2511_s1 + $0x40] sm:$0xff] }
  0x14   : > { %660 = vmatpush.msra.mxu1 %v562_v7  ;;  %705 = vmatpush.msra.mxu3 %v595_v17  ;;  %v593_v23 = vld [vmem:[%s2511_s1 + $0x1d8] sm:$0xff]  ;;  %v558_v25 = vld [vmem:[%s2511_s1 + $0xc0] sm:$0xff]  ;;  %v576_v26 = vld [vmem:[%s2511_s1 + $0x150] sm:$0xff] }
  0x15   : > { %638 = vmatpush.msra.mxu0 %v545_v11  ;;  %683 = vmatpush.msra.mxu2 %v578_v18  ;;  %v592_v27 = vld [vmem:[%s2511_s1 + $0x1d0] sm:$0xff]  ;;  %v541_v28 = vld [vmem:[%s2511_s1 + $0x38] sm:$0xff]  ;;  %v575_v30 = vld [vmem:[%s2511_s1 + $0x148] sm:$0xff] }
  0x16   : > { %661 = vmatpush.msra.mxu1 %v561_v12  ;;  %706 = vmatpush.msra.mxu3 %v594_v19  ;;  %v557_v29 = vld [vmem:[%s2511_s1 + $0xb8] sm:$0xff]  ;;  %v591_v31 = vld [vmem:[%s2511_s1 + $0x1c8] sm:$0xff]  ;;  %v540_v32 = vld [vmem:[%s2511_s1 + $0x30] sm:$0xff] }
  0x17   : > { %639 = vmatpush.msra.mxu0 %v544_v15  ;;  %684 = vmatpush.msra.mxu2 %v577_v22  ;;  %v556_v33 = vld [vmem:[%s2511_s1 + $0xb0] sm:$0xff]  ;;  %v574_v34 = vld [vmem:[%s2511_s1 + $0x140] sm:$0xff]  ;;  %v539_v36 = vld [vmem:[%s2511_s1 + $0x28] sm:$0xff] }
  0x18   : > { %662 = vmatpush.msra.mxu1 %v560_v16  ;;  %707 = vmatpush.msra.mxu3 %v593_v23  ;;  %v590_v35 = vld [vmem:[%s2511_s1 + $0x1c0] sm:$0xff]  ;;  %v555_v37 = vld [vmem:[%s2511_s1 + $0xa8] sm:$0xff]  ;;  %v573_v38 = vld [vmem:[%s2511_s1 + $0x138] sm:$0xff] }
  0x19   : > { %640 = vmatpush.msra.mxu0 %v543_v20  ;;  %685 = vmatpush.msra.mxu2 %v576_v26  ;;  %v589_v39 = vld [vmem:[%s2511_s1 + $0x1b8] sm:$0xff]  ;;  %v538_v40 = vld [vmem:[%s2511_s1 + $0x20] sm:$0xff]  ;;  %v572_v42 = vld [vmem:[%s2511_s1 + $0x130] sm:$0xff] }
  0x1a   : > { %663 = vmatpush.msra.mxu1 %v559_v21  ;;  %708 = vmatpush.msra.mxu3 %v592_v27  ;;  %v554_v41 = vld [vmem:[%s2511_s1 + $0xa0] sm:$0xff]  ;;  %v588_v43 = vld [vmem:[%s2511_s1 + $0x1b0] sm:$0xff]  ;;  %v537_v44 = vld [vmem:[%s2511_s1 + $0x18] sm:$0xff] }
  0x1b   : > { %641 = vmatpush.msra.mxu0 %v542_v24  ;;  %686 = vmatpush.msra.mxu2 %v575_v30  ;;  %v553_v45 = vld [vmem:[%s2511_s1 + $0x98] sm:$0xff]  ;;  %v571_v46 = vld [vmem:[%s2511_s1 + $0x128] sm:$0xff]  ;;  %v536_v48 = vld [vmem:[%s2511_s1 + $0x10] sm:$0xff] }
  0x1c   : > { %664 = vmatpush.msra.mxu1 %v558_v25  ;;  %709 = vmatpush.msra.mxu3 %v591_v31  ;;  %v587_v47 = vld [vmem:[%s2511_s1 + $0x1a8] sm:$0xff]  ;;  %v552_v49 = vld [vmem:[%s2511_s1 + $0x90] sm:$0xff]  ;;  %v570_v50 = vld [vmem:[%s2511_s1 + $0x120] sm:$0xff] }
  0x1d   : > { %642 = vmatpush.msra.mxu0 %v541_v28  ;;  %687 = vmatpush.msra.mxu2 %v574_v34  ;;  %v586_v51 = vld [vmem:[%s2511_s1 + $0x1a0] sm:$0xff]  ;;  %v535_v52 = vld [vmem:[%s2511_s1 + $0x8] sm:$0xff]  ;;  %v569_v54 = vld [vmem:[%s2511_s1 + $0x118] sm:$0xff] }
  0x1e   : > { %665 = vmatpush.msra.mxu1 %v557_v29  ;;  %710 = vmatpush.msra.mxu3 %v590_v35  ;;  %v551_v53 = vld [vmem:[%s2511_s1 + $0x88] sm:$0xff]  ;;  %v585_v55 = vld [vmem:[%s2511_s1 + $0x198] sm:$0xff]  ;;  %v534_v56 = vld [vmem:[%s2511_s1] sm:$0xff] }
  0x1f   : > { %643 = vmatpush.msra.mxu0 %v540_v32  ;;  %688 = vmatpush.msra.mxu2 %v573_v38  ;;  %v550_v57 = vld [vmem:[%s2511_s1 + $0x80] sm:$0xff]  ;;  %v613_v58 = vld [vmem:[%s2511_s1 + $0x278] sm:$0xff]  ;;  %v568_v60 = vld [vmem:[%s2511_s1 + $0x110] sm:$0xff] }
  0x20   : > { %666 = vmatpush.msra.mxu1 %v556_v33  ;;  %711 = vmatpush.msra.mxu3 %v589_v39  ;;  %v629_v59 = vld [vmem:[%s2511_s1 + $0x2f8] sm:$0xff]  ;;  %v584_v61 = vld [vmem:[%s2511_s1 + $0x190] sm:$0xff]  ;;  %v567_v0 = vld [vmem:[%s2511_s1 + $0x108] sm:$0xff] }
  0x21   : > { %644 = vmatpush.msra.mxu0 %v539_v36  ;;  %689 = vmatpush.msra.mxu2 %v572_v42  ;;  %v612_v62 = vld [vmem:[%s2511_s1 + $0x270] sm:$0xff]  ;;  %v583_v1 = vld [vmem:[%s2511_s1 + $0x188] sm:$0xff]  ;;  %v610_v3 = vld [vmem:[%s2511_s1 + $0x260] sm:$0xff] }
  0x22   : > { %667 = vmatpush.msra.mxu1 %v555_v37  ;;  %712 = vmatpush.msra.mxu3 %v588_v43  ;;  %v628_v63 = vld [vmem:[%s2511_s1 + $0x2f0] sm:$0xff]  ;;  %v611_v2 = vld [vmem:[%s2511_s1 + $0x268] sm:$0xff]  ;;  %v626_v5 = vld [vmem:[%s2511_s1 + $0x2e0] sm:$0xff] }
  0x23   : > { %645 = vmatpush.msra.mxu0 %v538_v40  ;;  %690 = vmatpush.msra.mxu2 %v571_v46  ;;  %v627_v4 = vld [vmem:[%s2511_s1 + $0x2e8] sm:$0xff]  ;;  %v566_v6 = vld [vmem:[%s2511_s1 + $0x100] sm:$0xff]  ;;  %v609_v8 = vld [vmem:[%s2511_s1 + $0x258] sm:$0xff] }
  0x24   : > { %668 = vmatpush.msra.mxu1 %v554_v41  ;;  %713 = vmatpush.msra.mxu3 %v587_v47  ;;  %v582_v7 = vld [vmem:[%s2511_s1 + $0x180] sm:$0xff]  ;;  %v625_v9 = vld [vmem:[%s2511_s1 + $0x2d8] sm:$0xff]  ;;  %v524_v10 = vld [vmem:[%s2130_s17 + $0x10] sm:$0xff] }
  0x25   : > { %646 = vmatpush.msra.mxu0 %v537_v44  ;;  %691 = vmatpush.msra.mxu2 %v570_v50  ;;  %v522_v11 = vld [vmem:[%s2130_s17] sm:$0xff]  ;;  %v525_v12 = vld [vmem:[%s2130_s17 + $0x18] sm:$0xff]  ;;  %v523_v13 = vld [vmem:[%s2130_s17 + $0x8] sm:$0xff] }
  0x26   : > { %669 = vmatpush.msra.mxu1 %v553_v45  ;;  %714 = vmatpush.msra.mxu3 %v586_v51  ;;  %v608_v14 = vld [vmem:[%s2511_s1 + $0x250] sm:$0xff]  ;;  %v607_v16 = vld [vmem:[%s2511_s1 + $0x248] sm:$0xff]  ;;  %v606_v18 = vld [vmem:[%s2511_s1 + $0x240] sm:$0xff] }
  0x27   : > { %647 = vmatpush.msra.mxu0 %v536_v48  ;;  %692 = vmatpush.msra.mxu2 %v569_v54  ;;  %v624_v15 = vld [vmem:[%s2511_s1 + $0x2d0] sm:$0xff]  ;;  %v623_v17 = vld [vmem:[%s2511_s1 + $0x2c8] sm:$0xff]  ;;  %v622_v19 = vld [vmem:[%s2511_s1 + $0x2c0] sm:$0xff] }
  0x28   : > { %670 = vmatpush.msra.mxu1 %v552_v49  ;;  %715 = vmatpush.msra.mxu3 %v585_v55  ;;  %v530_v20 = vld [vmem:[%s2130_s17 + $0x40] sm:$0xff]  ;;  %v528_v21 = vld [vmem:[%s2130_s17 + $0x30] sm:$0xff]  ;;  %v605_v22 = vld [vmem:[%s2511_s1 + $0x238] sm:$0xff] }
  0x29   : > { %648 = vmatpush.msra.mxu0 %v535_v52  ;;  %693 = vmatpush.msra.mxu2 %v568_v60  ;;  %v621_v23 = vld [vmem:[%s2511_s1 + $0x2b8] sm:$0xff]  ;;  %v531_v24 = vld [vmem:[%s2130_s17 + $0x48] sm:$0xff]  ;;  %v604_v26 = vld [vmem:[%s2511_s1 + $0x230] sm:$0xff] }
  0x2a   : > { %671 = vmatpush.msra.mxu1 %v551_v53  ;;  %716 = vmatpush.msra.mxu3 %v584_v61  ;;  %v529_v25 = vld [vmem:[%s2130_s17 + $0x38] sm:$0xff]  ;;  %v620_v27 = vld [vmem:[%s2511_s1 + $0x2b0] sm:$0xff]  ;;  %v603_v28 = vld [vmem:[%s2511_s1 + $0x228] sm:$0xff] }
  0x2b   : > { %649 = vmatpush.msra.mxu0 %v534_v56  ;;  %694 = vmatpush.msra.mxu2 %v567_v0  ;;  %v619_v29 = vld [vmem:[%s2511_s1 + $0x2a8] sm:$0xff]  ;;  %v602_v30 = vld [vmem:[%s2511_s1 + $0x220] sm:$0xff]  ;;  %v601_v32 = vld [vmem:[%s2511_s1 + $0x218] sm:$0xff] }
  0x2c   : > { %672 = vmatpush.msra.mxu1 %v550_v57  ;;  %717 = vmatpush.msra.mxu3 %v583_v1  ;;  %v618_v31 = vld [vmem:[%s2511_s1 + $0x2a0] sm:$0xff]  ;;  %v617_v33 = vld [vmem:[%s2511_s1 + $0x298] sm:$0xff]  ;;  %v600_v34 = vld [vmem:[%s2511_s1 + $0x210] sm:$0xff] }
  0x2d   : > { %726 = vmatpush.msrb.mxu0 %v613_v58  ;;  %695 = vmatpush.msra.mxu2 %v566_v6  ;;  %v616_v35 = vld [vmem:[%s2511_s1 + $0x290] sm:$0xff]  ;;  %v599_v36 = vld [vmem:[%s2511_s1 + $0x208] sm:$0xff]  ;;  %v598_v38 = vld [vmem:[%s2511_s1 + $0x200] sm:$0xff] }
  0x2e   : > { %749 = vmatpush.msrb.mxu1 %v629_v59  ;;  %718 = vmatpush.msra.mxu3 %v582_v7  ;;  %v615_v37 = vld [vmem:[%s2511_s1 + $0x288] sm:$0xff]  ;;  %v614_v39 = vld [vmem:[%s2511_s1 + $0x280] sm:$0xff]  ;;  %v532_v42 = vld [vmem:[%s2130_s17 + $0x50] sm:$0xff] }
  0x2f   : > { %727 = vmatpush.msrb.mxu0 %v612_v62  ;;  %696 = vmatmul.f32.vlgmr.msra.gmra.mxu2 %v524_v10  ;;  %v526_v40 = vld [vmem:[%s2130_s17 + $0x20] sm:$0xff]  ;;  %v527_v41 = vld [vmem:[%s2130_s17 + $0x28] sm:$0xff]  ;;  %v533_v43 = vld [vmem:[%s2130_s17 + $0x58] sm:$0xff]  ;;  %s1817_s17 = smov 48  }
  0x30   : > { %750 = vmatpush.msrb.mxu1 %v628_v63  ;;  %650 = vmatmul.f32.vlgmr.msra.gmra.mxu0 %v522_v11  ;;  %v1745_v46 = vld [vmem:[%s2512_s2] ss:$0 sm:$0xff]  ;;  %v773_v7 = vld [vmem:[%s2513_s3 + $0x8] sm:$0xff]  ;;  %v1808_v11 = vmov 32.0  }
  0x31   : > { %728 = vmatpush.msrb.mxu0 %v611_v2  ;;  %719 = vmatmul.f32.vlgmr.msra.gmra.mxu3 %v525_v12  ;;  %v772_v61 = vld [vmem:[%s2513_s3] sm:$0xff]  ;;  %1754 = vrcp.f32 %v1808_v11 }
  0x32   : > { %751 = vmatpush.msrb.mxu1 %v627_v4 }
  0x33   : > { %729 = vmatpush.msrb.mxu0 %v610_v3  ;;  %673 = vmatmul.f32.vlgmr.msra.gmra.mxu1 %v523_v13 }
  0x34   : > { %752 = vmatpush.msrb.mxu1 %v626_v5 }
  0x35   : > { %730 = vmatpush.msrb.mxu0 %v609_v8 }
  0x36   : > { %753 = vmatpush.msrb.mxu1 %v625_v9 }
  0x37   : > { %731 = vmatpush.msrb.mxu0 %v608_v14  ;;  %699 = vmatmul.f32.gmra.mxu2 %v530_v20  ;;  %v1755_v12 = vpop.eup %1754 }
  0x38   : > { %754 = vmatpush.msrb.mxu1 %v624_v15  ;;  %653 = vmatmul.f32.gmra.mxu0 %v528_v21  ;;  %v786_v13 = vmul.f32 32.0, %v1755_v12  ;;  %vm790_vm1 = vweird.f32 %v1755_v12 }
  0x39   : > { %732 = vmatpush.msrb.mxu0 %v607_v16  ;;  %722 = vmatmul.f32.gmra.mxu3 %v531_v24 }
  0x3a   : > { %755 = vmatpush.msrb.mxu1 %v623_v17  ;;  %v787_v14 = vsub.f32 1.0, %v786_v13 }
  0x3b   : > { %733 = vmatpush.msrb.mxu0 %v606_v18  ;;  %676 = vmatmul.f32.gmra.mxu1 %v529_v25 }
  0x3c   : > { %756 = vmatpush.msrb.mxu1 %v622_v19  ;;  %v788_v15 = vmul.f32 %v1755_v12, %v787_v14 }
  0x3d   : > { %734 = vmatpush.msrb.mxu0 %v605_v22 }
  0x3e   : > { %757 = vmatpush.msrb.mxu1 %v621_v23  ;;  %v789_v16 = vadd.f32 %v1755_v12, %v788_v15 }
  0x3f   : > { %735 = vmatpush.msrb.mxu0 %v604_v26 }
  0x40   : > { %758 = vmatpush.msrb.mxu1 %v620_v27  ;;  %v2251_v17 = vsel %vm790_vm1, %v1755_v12, %v789_v16 }
  0x41   : > { %736 = vmatpush.msrb.mxu0 %v603_v28  ;;  %v843_v28 = vld [vmem:[%s2516_s6 + $0x18] sm:$0xff] }
  0x42   : > { %759 = vmatpush.msrb.mxu1 %v619_v29  ;;  %866 = vmatpush.msrb.mxu2 %v843_v28  ;;  %v842_v29 = vld [vmem:[%s2516_s6 + $0x10] sm:$0xff] }
  0x43   : > { %737 = vmatpush.msrb.mxu0 %v602_v30  ;;  %v841_v30 = vld [vmem:[%s2516_s6 + $0x8] sm:$0xff] }
  0x44   : > { %760 = vmatpush.msrb.mxu1 %v618_v31  ;;  %867 = vmatpush.msrb.mxu2 %v842_v29  ;;  %v840_v31 = vld [vmem:[%s2516_s6] sm:$0xff] }
  0x45   : > { %738 = vmatpush.msrb.mxu0 %v601_v32 }
  0x46   : > { %761 = vmatpush.msrb.mxu1 %v617_v33  ;;  %868 = vmatpush.msrb.mxu2 %v841_v30 }
  0x47   : > { %739 = vmatpush.msrb.mxu0 %v600_v34 }
  0x48   : > { %762 = vmatpush.msrb.mxu1 %v616_v35  ;;  %869 = vmatpush.msrb.mxu2 %v840_v31 }
  0x49   : > { %740 = vmatpush.msrb.mxu0 %v599_v36 }
  0x4a   : > { %763 = vmatpush.msrb.mxu1 %v615_v37 }
  0x4b   : > { %741 = vmatpush.msrb.mxu0 %v598_v38 }
  0x4c   : > { %764 = vmatpush.msrb.mxu1 %v614_v39  ;;  %742 = vmatmul.f32.vlgmr.msrb.gmra.mxu0 %v526_v40 }
  0x4d   : > { %765 = vmatmul.f32.vlgmr.msrb.gmra.mxu1 %v527_v41 }
  0x54   : > { %745 = vmatmul.f32.gmra.mxu0 %v532_v42 }
  0x55   : > { %768 = vmatmul.f32.gmra.mxu1 %v533_v43 }
  0xad   : > { %v651_v44 = vpop.f32.mrf.mxu0 }
  0xae   : > { %v652_v47 = vadd.f32 %v1745_v46, %v651_v44 }
  0xb0   : > { %v674_v45 = vpop.f32.mrf.mxu1 }
  0xb1   : > { %v675_v51 = vadd.f32 %v674_v45, %v652_v47 }
  0xb2   : > { %v697_v48 = vpop.f32.mrf.mxu2 }
  0xb3   : > { %v698_v53 = vadd.f32 %v697_v48, %v675_v51 }
  0xb4   : > { %v720_v52 = vpop.f32.mrf.mxu3 }
  0xb5   : > { %v654_v49 = vpop.f32.mrf.mxu0  ;;  %v721_v55 = vadd.f32 %v720_v52, %v698_v53 }
  0xb6   : > { %v655_v54 = vadd.f32 %v1745_v46, %v654_v49  ;;  %v1746_v46 = vld [vmem:[%s2514_s4] ss:$0 sm:$0xff] }
  0xb8   : > { %v677_v50 = vpop.f32.mrf.mxu1 }
  0xb9   : > { %v678_v56 = vadd.f32 %v677_v50, %v655_v54  ;;  %v1747_v50 = vld [vmem:[%s2515_s5] ss:$0 sm:$0xff] }
  0xba   : > { %v700_v57 = vpop.f32.mrf.mxu2 }
  0xbb   : > { %v701_v62 = vadd.f32 %v700_v57, %v678_v56 }
  0xbc   : > { %v723_v0 = vpop.f32.mrf.mxu3 }
  0xbd   : > { %v724_v2 = vadd.f32 %v723_v0, %v701_v62 }
  0xc9   : > { %v743_v58 = vpop.f32.mrf.mxu0 }
  0xca   : > { %v766_v59 = vpop.f32.mrf.mxu1  ;;  %v744_v60 = vadd.f32 %v743_v58, %v721_v55 }
  0xcc   : > { %v767_v63 = vadd.f32 %v766_v59, %v744_v60  ;;  %v1748_v60 = vld [vmem:[%s2517_s7] ss:$0 sm:$0xff] }
  0xce   : > { %v2240_v1 = vadd.f32 %v772_v61, %v767_v63 }
  0xd0   : > { %v779_v3 = vsel %vm778_vm0, %v2240_v1, 0.0 }
  0xd1   : > { %v746_v4 = vpop.f32.mrf.mxu0  ;;  %780 = vadd.xlane.f32.xlu0 %v779_v3 }
  0xd2   : > { %v769_v5 = vpop.f32.mrf.mxu1  ;;  %v747_v6 = vadd.f32 %v746_v4, %v724_v2 }
  0xd4   : > { %v770_v8 = vadd.f32 %v769_v5, %v747_v6 }
  0xd6   : > { %v2247_v9 = vadd.f32 %v773_v7, %v770_v8 }
  0xd8   : > { %v782_v10 = vsel %vm778_vm0, %v2247_v9, 0.0 }
  0xd9   : > { %783 = vadd.xlane.f32.xlu0 %v782_v10 }
 0x144   : > { %v781_v18 = vpop.xlane.xlu0 %780 }
 0x145   : > { %v792_v19 = vmul.f32 %v2251_v17, %v781_v18 }
 0x147   : > { %v794_v20 = vsub.f32 %v2240_v1, %v792_v19 }
 0x149   : > { %v796_v21 = vmul.f32 %v794_v20, %v794_v20 }
 0x14b   : > { %v798_v22 = vsel %vm778_vm0, %v796_v21, 0.0 }
 0x14c   : > { %799 = vadd.xlane.f32.xlu1 %v798_v22  ;;  %v784_v23 = vpop.xlane.xlu0 %783 }
 0x14d   : > { %v793_v24 = vmul.f32 %v2251_v17, %v784_v23 }
 0x14f   : > { %v795_v25 = vsub.f32 %v2247_v9, %v793_v24 }
 0x151   : > { %v797_v26 = vmul.f32 %v795_v25, %v795_v25 }
 0x153   : > { %v801_v27 = vsel %vm778_vm0, %v797_v26, 0.0 }
 0x154   : > { %802 = vadd.xlane.f32.xlu1 %v801_v27 }
 0x1bf   : > { %v800_v32 = vpop.xlane.xlu1 %799 }
 0x1c0   : > { %v804_v33 = vmul.f32 %v800_v32, %v2251_v17 }
 0x1c2   : > { %v806_v34 = vadd.f32 1e-06, %v804_v33 }
 0x1c4   : > { %1756 = vrsqrt.f32 %v806_v34  ;;  %vm814_vm3 = vweird.f32 %v806_v34 }
 0x1c7   : > { %v803_v35 = vpop.xlane.xlu1 %802 }
 0x1c8   : > { %v805_v36 = vmul.f32 %v803_v35, %v2251_v17 }
 0x1ca   : > { %v1757_v37 = vpop.eup %1756  ;;  %v807_v38 = vadd.f32 1e-06, %v805_v36 }
 0x1cb   : > { %v809_v39 = vmul.f32 %v1757_v37, %v806_v34  ;;  %vm815_vm2 = vweird.f32 %v1757_v37 }
 0x1cc   : > { %1758 = vrsqrt.f32 %v807_v38  ;;  %vm816_vm4 = vmor %vm814_vm3, %vm815_vm2  ;;  %vm824_vm6 = vweird.f32 %v807_v38 }
 0x1cd   : > { %v810_v40 = vmul.f32 %v1757_v37, %v809_v39 }
 0x1cf   : > { %v811_v41 = vmul.f32 0.5, %v810_v40 }
 0x1d1   : > { %v812_v42 = vsub.f32 1.5, %v811_v41 }
 0x1d2   : > { %v1759_v43 = vpop.eup %1758 }
 0x1d3   : > { %v813_v44 = vmul.f32 %v1757_v37, %v812_v42  ;;  %v819_v45 = vmul.f32 %v1759_v43, %v807_v38  ;;  %vm825_vm5 = vweird.f32 %v1759_v43 }
 0x1d4   : > { %vm826_vm7 = vmor %vm824_vm6, %vm825_vm5 }
 0x1d5   : > { %v817_v47 = vsel %vm816_vm4, %v1757_v37, %v813_v44  ;;  %v820_v48 = vmul.f32 %v1759_v43, %v819_v45 }
 0x1d6   : > { %v828_v49 = vmul.f32 %v817_v47, %v794_v20 }
 0x1d7   : > { %v821_v51 = vmul.f32 0.5, %v820_v48 }
 0x1d8   : > { %v833_v52 = vmul.f32 %v1746_v46, %v828_v49 }
 0x1d9   : > { %v822_v53 = vsub.f32 1.5, %v821_v51 }
 0x1da   : > { %v838_v54 = vadd.f32 %v1747_v50, %v833_v52 }
 0x1db   : > { %v823_v55 = vmul.f32 %v1759_v43, %v822_v53 }
 0x1dc   : > { %1666 = vmatmul.msk.f32.vlgmr.msrb.gmra.mxu2 %vm778_vm0, %v838_v54 }
 0x1dd   : > { %v827_v56 = vsel %vm826_vm7, %v1759_v43, %v823_v55 }
 0x1de   : > { %v829_v57 = vmul.f32 %v827_v56, %v795_v25 }
 0x1e0   : > { %v834_v58 = vmul.f32 %v1746_v46, %v829_v57 }
 0x1e2   : > { %v839_v59 = vadd.f32 %v1747_v50, %v834_v58 }
 0x1e4   : > { %1667 = vmatmul.msk.f32.gmra.mxu2 %vm778_vm0, %v839_v59 }
 0x25f   : > { %v871_v61 = vpop.f32.mrf.mxu2 }
 0x260   : > { %v2284_v62 = vadd.f32 %v1748_v60, %v871_v61 }
 0x262   : > { %879 = vrot.lane.b32.xlu2 %v2284_v62, %s1809_s24  ;;  %1005 = vrot.lane.b32.xlu1 %v2284_v62, %s1810_s27 }
 0x267   : > { %v874_v63 = vpop.f32.mrf.mxu2 }
 0x268   : > { %v2288_v0 = vadd.f32 %v1748_v60, %v874_v63 }
 0x26a   : > { %1253 = vrot.lane.b32.xlu1 %v2284_v62, %s1811_s28  ;;  %1007 = vrot.lane.b32.xlu0 %v2288_v0, %s1810_s27  ;;  %v2332_v42 = vpack.i.bf16 %v2284_v62, %v2288_v0 }
 0x26b   : > { %881 = vrot.lane.b32.xlu2 %v2288_v0, %s1809_s24  ;;  %s1822_s24 = smov 24  }
 0x272   : > { %1127 = vrot.lane.b32.xlu1 %v2288_v0, %s1812_s29  ;;  %1255 = vrot.lane.b32.xlu0 %v2288_v0, %s1811_s28 }
 0x273   : > { %1001 = vrot.lane.b32.xlu2 %v2284_v62, %s1813_s30 }
 0x27a   : > { %1125 = vrot.lane.b32.xlu0 %v2284_v62, %s1812_s29 }
 0x27b   : > { %1129 = vrot.lane.b32.xlu2 %v2284_v62, %s1814_s0 }
 0x282   : > { %1251 = vrot.lane.b32.xlu0 %v2288_v0, %s1815_s18 }
 0x283   : > { %1003 = vrot.lane.b32.xlu2 %v2288_v0, %s1813_s30 }
 0x28b   : > { %1131 = vrot.lane.b32.xlu2 %v2288_v0, %s1814_s0 }
 0x293   : > { %1249 = vrot.lane.b32.xlu2 %v2284_v62, %s1815_s18 }
 0x2bc   : > { %v880_v2 = vpop.permute.xlu2 %879 }
 0x2c5   : > { %v882_v3 = vpop.permute.xlu2 %881 }
 0x2c6   : > { %1668 = vmatpush.xpose.msk.msra.mxu0 %vm883_vm8, %v882_v3  ;;  %1699 = vmatpush.xpose.msk.msrb.mxu3 %vm883_vm8, %v882_v3 }
 0x2ca   : > { %1669 = vmatpush.xpose.msk.msra.mxu0 %vm883_vm8, %v880_v2  ;;  %1700 = vmatpush.xpose.msk.msrb.mxu3 %vm883_vm8, %v880_v2 }
 0x2cd   : > { %1670 = vmatmul.msk.f32.vlgmr.msra.gmra.mxu0 %vm883_vm8, %v2284_v62  ;;  %1671 = vmatmul.msk.f32.vlgmr.msrb.gmra.mxu3 %vm883_vm8, %v2288_v0  ;;  %v1002_v4 = vpop.permute.xlu2 %1001 }
 0x2d4   : > { %v1006_v8 = vpop.permute.xlu1 %1005 }
 0x2d5   : > { %v1130_v5 = vpop.permute.xlu2 %1129 }
 0x2dc   : > { %v1008_v6 = vpop.permute.xlu0 %1007  ;;  %v1254_v12 = vpop.permute.xlu1 %1253 }
 0x2dd   : > { %v1004_v7 = vpop.permute.xlu2 %1003  ;;  %1674 = vmatpush.xpose.msk.msra.mxu3 %vm883_vm8, %v1008_v6 }
 0x2e1   : > { %1675 = vmatpush.xpose.msk.msra.mxu3 %vm883_vm8, %v1006_v8 }
 0x2e4   : > { %v1256_v10 = vpop.permute.xlu0 %1255  ;;  %1676 = vmatmul.msk.f32.vlgmr.msra.gmra.mxu3 %vm883_vm8, %v1002_v4  ;;  %v1128_v15 = vpop.permute.xlu1 %1127 }
 0x2e5   : > { %v1132_v11 = vpop.permute.xlu2 %1131  ;;  %1686 = vmatpush.xpose.msk.msrb.mxu3 %vm883_vm8, %v1256_v10 }
 0x2e6   : > { %1680 = vmatpush.xpose.msk.msra.mxu1 %vm883_vm8, %v1132_v11 }
 0x2e9   : > { %1687 = vmatpush.xpose.msk.msrb.mxu3 %vm883_vm8, %v1254_v12 }
 0x2ea   : > { %1681 = vmatpush.xpose.msk.msra.mxu1 %vm883_vm8, %v1130_v5 }
 0x2ec   : > { %v1126_v13 = vpop.permute.xlu0 %1125  ;;  %1677 = vmatmul.msk.f32.gmra.mxu3 %vm883_vm8, %v1004_v7 }
 0x2ed   : > { %1682 = vmatmul.msk.f32.vlgmr.msra.gmra.mxu1 %vm883_vm8, %v1126_v13  ;;  %v1250_v14 = vpop.permute.xlu2 %1249 }
 0x2f4   : > { %1688 = vmatmul.msk.f32.vlgmr.msrb.gmra.mxu3 %vm883_vm8, %v1250_v14  ;;  %v1252_v16 = vpop.permute.xlu0 %1251 }
 0x2f5   : > { %1683 = vmatmul.msk.f32.gmra.mxu1 %vm883_vm8, %v1128_v15 }
 0x2fc   : > { %1689 = vmatmul.msk.f32.gmra.mxu3 %vm883_vm8, %v1252_v16 }
 0x34a   : > { %v909_v18 = vpop.f32.mrf.mxu0 }
 0x34b   : > { %v915_v19 = vmul.f32 0.35355338, %v909_v18 }
 0x34d   : > { %v918_v20 = vsel %vm917_vm9, %v915_v19, -inf }
 0x34e   : > { %919 = vmax.xlane.f32.xlu2 %v918_v20 }
 0x350   : > { %v912_v21 = vpop.f32.mrf.mxu3 }
 0x351   : > { %v916_v22 = vmul.f32 0.35355338, %v912_v21 }
 0x353   : > { %v921_v23 = vsel %vm917_vm9, %v916_v22, -inf }
 0x354   : > { %922 = vmax.xlane.f32.xlu0 %v921_v23 }
 0x367   : > { %v1034_v24 = vpop.f32.mrf.mxu3 }
 0x368   : > { %v1040_v30 = vmul.f32 0.35355338, %v1034_v24 }
 0x36a   : > { %v1158_v25 = vpop.f32.mrf.mxu1  ;;  %v1042_v33 = vsel %vm917_vm9, %v1040_v30, -inf }
 0x36b   : > { %v1164_v26 = vmul.f32 0.35355338, %v1158_v25 }
 0x36d   : > { %v1166_v27 = vsel %vm917_vm9, %v1164_v26, -inf }
 0x36e   : > { %1167 = vmax.xlane.f32.xlu1 %v1166_v27 }
 0x36f   : > { %v1037_v28 = vpop.f32.mrf.mxu3 }
 0x370   : > { %v1041_v29 = vmul.f32 0.35355338, %v1037_v28 }
 0x372   : > { %v1045_v31 = vsel %vm917_vm9, %v1041_v29, -inf  ;;  %v1161_v32 = vpop.f32.mrf.mxu1 }
 0x373   : > { %1046 = vmax.xlane.f32.xlu2 %v1045_v31  ;;  %v1165_v34 = vmul.f32 0.35355338, %v1161_v32 }
 0x375   : > { %v1169_v38 = vsel %vm917_vm9, %v1165_v34, -inf }
 0x376   : > { %1043 = vmax.xlane.f32.xlu1 %v1042_v33 }
 0x377   : > { %v1282_v35 = vpop.f32.mrf.mxu3 }
 0x378   : > { %v1288_v36 = vmul.f32 0.35355338, %v1282_v35 }
 0x37a   : > { %v1290_v37 = vsel %vm917_vm9, %v1288_v36, -inf }
 0x37b   : > { %1291 = vmax.xlane.f32.xlu0 %v1290_v37  ;;  %1170 = vmax.xlane.f32.xlu2 %v1169_v38 }
 0x37f   : > { %v1285_v39 = vpop.f32.mrf.mxu3 }
 0x380   : > { %v1289_v40 = vmul.f32 0.35355338, %v1285_v39 }
 0x382   : > { %v1293_v41 = vsel %vm917_vm9, %v1289_v40, -inf }
 0x383   : > { %1294 = vmax.xlane.f32.xlu1 %v1293_v41 }
 0x39c   : > { %1726 = vrot.lane.b32.xlu1 %v2332_v42, %s1816_s19  ;;  %s1698_s19 = sshll.u32 %s2531_s22, 4 }
 0x3c1   : > { %v920_v43 = vpop.xlane.xlu2 %919 }
 0x3c2   : > { %v924_v44 = vsub.f32 %v915_v19, %v920_v43 }
 0x3c4   : > { %v926_v45 = vmul.f32 1.442695, %v924_v44 }
 0x3c6   : > { %1760 = vpow2.f32 %v926_v45 }
 0x3c7   : > { %v923_v46 = vpop.xlane.xlu0 %922 }
 0x3c8   : > { %v925_v47 = vsub.f32 %v916_v22, %v923_v46 }
 0x3ca   : > { %v928_v48 = vmul.f32 1.442695, %v925_v47 }
 0x3cc   : > { %v2335_v49 = vpop.eup %1760  ;;  %1762 = vpow2.f32 %v928_v48 }
 0x3cd   : > { %v930_v50 = vsel %vm917_vm9, %v2335_v49, 0.0 }
 0x3ce   : > { %931 = vadd.xlane.f32.xlu0 %v930_v50 }
 0x3d2   : > { %v2339_v51 = vpop.eup %1762 }
 0x3d3   : > { %v933_v52 = vsel %vm917_vm9, %v2339_v51, 0.0 }
 0x3d4   : > { %934 = vadd.xlane.f32.xlu1 %v933_v52 }
 0x3e1   : > { %v1168_v53 = vpop.xlane.xlu1 %1167 }
 0x3e2   : > { %v1172_v54 = vsub.f32 %v1164_v26, %v1168_v53 }
 0x3e4   : > { %v1174_v55 = vmul.f32 1.442695, %v1172_v54 }
 0x3e6   : > { %1764 = vpow2.f32 %v1174_v55  ;;  %v1047_v56 = vpop.xlane.xlu2 %1046 }
 0x3e7   : > { %v1049_v2 = vsub.f32 %v1041_v29, %v1047_v56 }
 0x3e9   : > { %v1044_v57 = vpop.xlane.xlu1 %1043  ;;  %v1052_v5 = vmul.f32 1.442695, %v1049_v2 }
 0x3ea   : > { %v1048_v58 = vsub.f32 %v1040_v30, %v1044_v57 }
 0x3ec   : > { %v2343_v59 = vpop.eup %1764  ;;  %v1050_v60 = vmul.f32 1.442695, %v1048_v58 }
 0x3ed   : > { %1736 = vrot.lane.b32.xlu1 %v2332_v42, %s1817_s17  ;;  %v1178_v61 = vsel %vm917_vm9, %v2343_v59, 0.0 }
 0x3ee   : > { %1766 = vpow2.f32 %v1050_v60  ;;  %v1171_v62 = vpop.xlane.xlu2 %1170  ;;  %1179 = vadd.xlane.f32.xlu2 %v1178_v61  ;;  %v1292_v6 = vpop.xlane.xlu0 %1291 }
 0x3ef   : > { %v1173_v63 = vsub.f32 %v1165_v34, %v1171_v62  ;;  %v1296_v8 = vsub.f32 %v1288_v36, %v1292_v6 }
 0x3f1   : > { %v1176_v0 = vmul.f32 1.442695, %v1173_v63  ;;  %v1298_v11 = vmul.f32 1.442695, %v1296_v8 }
 0x3f3   : > { %1768 = vpow2.f32 %v1176_v0 }
 0x3f4   : > { %v2348_v3 = vpop.eup %1766  ;;  %1770 = vpow2.f32 %v1052_v5 }
 0x3f5   : > { %v1054_v4 = vsel %vm917_vm9, %v2348_v3, 0.0  ;;  %1772 = vpow2.f32 %v1298_v11 }
 0x3f6   : > { %1055 = vadd.xlane.f32.xlu2 %v1054_v4  ;;  %v1295_v12 = vpop.xlane.xlu1 %1294 }
 0x3f7   : > { %v1297_v14 = vsub.f32 %v1289_v40, %v1295_v12 }
 0x3f9   : > { %v2352_v7 = vpop.eup %1768  ;;  %v1300_v16 = vmul.f32 1.442695, %v1297_v14 }
 0x3fa   : > { %v1181_v10 = vsel %vm917_vm9, %v2352_v7, 0.0  ;;  %v2356_v13 = vpop.eup %1770 }
 0x3fb   : > { %1182 = vadd.xlane.f32.xlu0 %v1181_v10  ;;  %v1057_v15 = vsel %vm917_vm9, %v2356_v13, 0.0  ;;  %v2360_v18 = vpop.eup %1772  ;;  %1774 = vpow2.f32 %v1300_v16 }
 0x3fc   : > { %v1302_v19 = vsel %vm917_vm9, %v2360_v18, 0.0 }
 0x401   : > { %v2365_v22 = vpop.eup %1774 }
 0x402   : > { %v1305_v24 = vsel %vm917_vm9, %v2365_v22, 0.0 }
 0x403   : > { %1058 = vadd.xlane.f32.xlu0 %v1057_v15 }
 0x40b   : > { %1303 = vadd.xlane.f32.xlu0 %v1302_v19 }
 0x40e   : > { %1731 = vrot.lane.b32.xlu2 %v2332_v42, %s1818_s20  ;;  %v1727_v20 = vpop.permute.xlu1 %1726 }
 0x40f   : > { %v1728_v21 = vunpack.i.l.bf16 %v1727_v20  ;;  %v1729_v23 = vunpack.i.h.bf16 %v1727_v20 }
 0x411   : > { %992 = vmatpush.msra.mxu2 %v1728_v21 }
 0x413   : > { %993 = vmatpush.msra.mxu2 %v1729_v23  ;;  %1306 = vadd.xlane.f32.xlu0 %v1305_v24 }
 0x427   : > { %1741 = vrot.lane.b32.xlu0 %v2332_v42, %s1819_s23  ;;  %s521_s23 = scalar_lea.vmem %s2526_s16, %s1698_s19 }
 0x441   : > { %v932_v25 = vpop.xlane.xlu0 %931 }
 0x442   : > { %1776 = vrcp.f32 %v932_v25  ;;  %v947_v30 = vand.u32 2147483648, %v932_v25  ;;  %v945_v32 = vand.u32 2147483647, %v932_v25  ;;  %vm941_vm11 = vweird.f32 %v932_v25 }
 0x444   : > { %v948_v36 = vor.u32 1.1754944e-38, %v947_v30  ;;  %vm946_vm13 = vcmp.eq.f32.partialorder %v945_v32, 8.507059e+37 }
 0x447   : > { %v935_v26 = vpop.xlane.xlu1 %934 }
 0x448   : > { %v1777_v27 = vpop.eup %1776  ;;  %1778 = vrcp.f32 %v935_v26  ;;  %v962_v40 = vand.u32 2147483648, %v935_v26  ;;  %v960_v43 = vand.u32 2147483647, %v935_v26  ;;  %vm956_vm15 = vweird.f32 %v935_v26 }
 0x449   : > { %v937_v28 = vmul.f32 %v1777_v27, %v932_v25  ;;  %vm942_vm10 = vweird.f32 %v1777_v27 }
 0x44a   : > { %vm943_vm12 = vmor %vm941_vm11, %vm942_vm10  ;;  %v963_v45 = vor.u32 1.1754944e-38, %v962_v40  ;;  %vm961_vm2 = vcmp.eq.f32.partialorder %v960_v43, 8.507059e+37 }
 0x44b   : > { %v938_v29 = vsub.f32 1.0, %v937_v28 }
 0x44d   : > { %v939_v31 = vmul.f32 %v1777_v27, %v938_v29 }
 0x44e   : > { %v1779_v33 = vpop.eup %1778 }
 0x44f   : > { %v940_v34 = vadd.f32 %v1777_v27, %v939_v31  ;;  %v952_v35 = vmul.f32 %v1779_v33, %v935_v26  ;;  %vm957_vm14 = vweird.f32 %v1779_v33 }
 0x450   : > { %vm958_vm1 = vmor %vm956_vm15, %vm957_vm14 }
 0x451   : > { %v944_v37 = vsel %vm943_vm12, %v1777_v27, %v940_v34  ;;  %v953_v38 = vsub.f32 1.0, %v952_v35 }
 0x452   : > { %v949_v39 = vsel %vm946_vm13, %v948_v36, %v944_v37 }
 0x453   : > { %v954_v41 = vmul.f32 %v1779_v33, %v953_v38  ;;  %v950_v42 = vmul.f32 %v2335_v49, %v949_v39 }
 0x455   : > { %1672 = vmatmul.msk.f32.vlgmr.msra.gmra.mxu2 %vm917_vm9, %v950_v42  ;;  %v955_v44 = vadd.f32 %v1779_v33, %v954_v41 }
 0x457   : > { %v959_v46 = vsel %vm958_vm1, %v1779_v33, %v955_v44 }
 0x458   : > { %v964_v47 = vsel %vm961_vm2, %v963_v45, %v959_v46 }
 0x459   : > { %v965_v48 = vmul.f32 %v2339_v51, %v964_v47 }
 0x45d   : > { %1673 = vmatmul.msk.f32.gmra.mxu2 %vm917_vm9, %v965_v48 }
 0x45f   : > { %v1737_v50 = vpop.permute.xlu1 %1736 }
 0x460   : > { %v1738_v52 = vunpack.i.l.bf16 %v1737_v50  ;;  %v1739_v54 = vunpack.i.h.bf16 %v1737_v50 }
 0x461   : > { %v1180_v53 = vpop.xlane.xlu2 %1179 }
 0x462   : > { %1780 = vrcp.f32 %v1180_v53  ;;  %1240 = vmatpush.msrb.mxu2 %v1738_v52  ;;  %v1195_v58 = vand.u32 2147483648, %v1180_v53  ;;  %v1193_v61 = vand.u32 2147483647, %v1180_v53  ;;  %vm1189_vm4 = vweird.f32 %v1180_v53 }
 0x464   : > { %1241 = vmatpush.msrb.mxu2 %v1739_v54  ;;  %v1196_v0 = vor.u32 1.1754944e-38, %v1195_v58  ;;  %vm1194_vm6 = vcmp.eq.f32.partialorder %v1193_v61, 8.507059e+37 }
 0x468   : > { %v1781_v49 = vpop.eup %1780 }
 0x469   : > { %v1185_v55 = vmul.f32 %v1781_v49, %v1180_v53  ;;  %v1056_v56 = vpop.xlane.xlu2 %1055  ;;  %vm1190_vm3 = vweird.f32 %v1781_v49 }
 0x46a   : > { %1782 = vrcp.f32 %v1056_v56  ;;  %vm1191_vm5 = vmor %vm1189_vm4, %vm1190_vm3  ;;  %v1071_v12 = vand.u32 2147483648, %v1056_v56  ;;  %v1069_v16 = vand.u32 2147483647, %v1056_v56  ;;  %vm1065_vm10 = vweird.f32 %v1056_v56 }
 0x46b   : > { %v1186_v57 = vsub.f32 1.0, %v1185_v55 }
 0x46c   : > { %v1072_v24 = vor.u32 1.1754944e-38, %v1071_v12  ;;  %vm1070_vm12 = vcmp.eq.f32.partialorder %v1069_v16, 8.507059e+37 }
 0x46d   : > { %v1187_v60 = vmul.f32 %v1781_v49, %v1186_v57 }
 0x46e   : > { %v1183_v51 = vpop.xlane.xlu0 %1182 }
 0x46f   : > { %v1188_v62 = vadd.f32 %v1781_v49, %v1187_v60  ;;  %1784 = vrcp.f32 %v1183_v51  ;;  %v1210_v28 = vand.u32 2147483648, %v1183_v51  ;;  %v1208_v30 = vand.u32 2147483647, %v1183_v51 }
 0x470   : > { %v1783_v63 = vpop.eup %1782  ;;  %vm1204_vm14 = vweird.f32 %v1183_v51 }
 0x471   : > { %v1192_v2 = vsel %vm1191_vm5, %v1781_v49, %v1188_v62  ;;  %v1061_v4 = vmul.f32 %v1783_v63, %v1056_v56  ;;  %v1732_v5 = vpop.permute.xlu2 %1731  ;;  %vm1066_vm7 = vweird.f32 %v1783_v63  ;;  %v1211_v33 = vor.u32 1.1754944e-38, %v1210_v28 }
 0x472   : > { %v1197_v6 = vsel %vm1194_vm6, %v1196_v0, %v1192_v2  ;;  %v1733_v8 = vunpack.i.l.bf16 %v1732_v5  ;;  %v1734_v14 = vunpack.i.h.bf16 %v1732_v5  ;;  %vm1067_vm11 = vmor %vm1065_vm10, %vm1066_vm7  ;;  %vm1209_vm1 = vcmp.eq.f32.partialorder %v1208_v30, 8.507059e+37 }
 0x473   : > { %v1062_v10 = vsub.f32 1.0, %v1061_v4  ;;  %v1198_v11 = vmul.f32 %v2343_v59, %v1197_v6 }
 0x474   : > { %1116 = vmatpush.msrb.mxu0 %v1733_v8 }
 0x475   : > { %v1063_v15 = vmul.f32 %v1783_v63, %v1062_v10  ;;  %1684 = vmatmul.msk.f32.vlgmr.msrb.gmra.mxu2 %vm917_vm9, %v1198_v11  ;;  %v1785_v19 = vpop.eup %1784 }
 0x476   : > { %1117 = vmatpush.msrb.mxu0 %v1734_v14  ;;  %v1200_v21 = vmul.f32 %v1785_v19, %v1183_v51  ;;  %v1059_v23 = vpop.xlane.xlu0 %1058  ;;  %vm1205_vm13 = vweird.f32 %v1785_v19 }
 0x477   : > { %v1064_v20 = vadd.f32 %v1783_v63, %v1063_v15  ;;  %1786 = vrcp.f32 %v1059_v23  ;;  %vm1206_vm15 = vmor %vm1204_vm14, %vm1205_vm13  ;;  %v1086_v39 = vand.u32 2147483648, %v1059_v23  ;;  %v1084_v41 = vand.u32 2147483647, %v1059_v23 }
 0x478   : > { %v1201_v59 = vsub.f32 1.0, %v1200_v21  ;;  %vm1080_vm3 = vweird.f32 %v1059_v23 }
 0x479   : > { %v1068_v25 = vsel %vm1067_vm11, %v1783_v63, %v1064_v20  ;;  %v1087_v44 = vor.u32 1.1754944e-38, %v1086_v39  ;;  %vm1085_vm5 = vcmp.eq.f32.partialorder %v1084_v41, 8.507059e+37 }
 0x47a   : > { %v1073_v26 = vsel %vm1070_vm12, %v1072_v24, %v1068_v25  ;;  %v1202_v27 = vmul.f32 %v1785_v19, %v1201_v59  ;;  %v1405_v24 = vld [vmem:[%s2518_s8 + $0x8] sm:$0xff]  ;;  %v1404_v25 = vld [vmem:[%s2518_s8] sm:$0xff] }
 0x47b   : > { %v1074_v29 = vmul.f32 %v2348_v3, %v1073_v26 }
 0x47c   : > { %v1203_v31 = vadd.f32 %v1785_v19, %v1202_v27 }
 0x47d   : > { %1678 = vmatmul.msk.f32.vlgmr.msrb.gmra.mxu0 %vm917_vm9, %v1074_v29  ;;  %v1787_v32 = vpop.eup %1786 }
 0x47e   : > { %v1076_v34 = vmul.f32 %v1787_v32, %v1059_v23  ;;  %v1304_v35 = vpop.xlane.xlu0 %1303  ;;  %v1207_v36 = vsel %vm1206_vm15, %v1785_v19, %v1203_v31  ;;  %vm1081_vm2 = vweird.f32 %v1787_v32  ;;  %v1406_v23 = vld [vmem:[%s2518_s8 + $0x10] sm:$0xff] }
 0x47f   : > { %1788 = vrcp.f32 %v1304_v35  ;;  %v1212_v38 = vsel %vm1209_vm1, %v1211_v33, %v1207_v36  ;;  %vm1082_vm4 = vmor %vm1080_vm3, %vm1081_vm2  ;;  %v1319_v56 = vand.u32 2147483648, %v1304_v35  ;;  %vm1313_vm7 = vweird.f32 %v1304_v35 }
 0x480   : > { %v1077_v37 = vsub.f32 1.0, %v1076_v34  ;;  %v1213_v40 = vmul.f32 %v2352_v7, %v1212_v38  ;;  %v1317_v57 = vand.u32 2147483647, %v1304_v35  ;;  %vm1401_vm1 = vcmask 195584  }
 0x481   : > { %v1320_v61 = vor.u32 1.1754944e-38, %v1319_v56  ;;  %v1501_v56 = vld [vmem:[%s2522_s12] sm:$0xff] }
 0x482   : > { %v1078_v3 = vmul.f32 %v1787_v32, %v1077_v37  ;;  %1685 = vmatmul.msk.f32.gmra.mxu2 %vm917_vm9, %v1213_v40  ;;  %vm1318_vm11 = vcmp.eq.f32.partialorder %v1317_v57, 8.507059e+37  ;;  %v1749_v37 = vld [vmem:[%s2519_s9] ss:$0 sm:$0xff] }
 0x484   : > { %v1079_v42 = vadd.f32 %v1787_v32, %v1078_v3 }
 0x485   : > { %v1789_v43 = vpop.eup %1788 }
 0x486   : > { %v1307_v45 = vpop.xlane.xlu0 %1306  ;;  %v1083_v46 = vsel %vm1082_vm4, %v1787_v32, %v1079_v42  ;;  %v1309_v47 = vmul.f32 %v1789_v43, %v1304_v35  ;;  %vm1314_vm6 = vweird.f32 %v1789_v43 }
 0x487   : > { %1790 = vrcp.f32 %v1307_v45  ;;  %v1088_v48 = vsel %vm1085_vm5, %v1087_v44, %v1083_v46  ;;  %vm1315_vm10 = vmor %vm1313_vm7, %vm1314_vm6  ;;  %v1334_v0 = vand.u32 2147483648, %v1307_v45  ;;  %vm1328_vm13 = vweird.f32 %v1307_v45 }
 0x488   : > { %v1089_v50 = vmul.f32 %v2356_v13, %v1088_v48  ;;  %v1310_v7 = vsub.f32 1.0, %v1309_v47  ;;  %v1332_v5 = vand.u32 2147483647, %v1307_v45 }
 0x489   : > { %v1335_v8 = vor.u32 1.1754944e-38, %v1334_v0 }
 0x48a   : > { %1679 = vmatmul.msk.f32.gmra.mxu0 %vm917_vm9, %v1089_v50  ;;  %v1311_v53 = vmul.f32 %v1789_v43, %v1310_v7  ;;  %vm1333_vm15 = vcmp.eq.f32.partialorder %v1332_v5, 8.507059e+37 }
 0x48c   : > { %v1312_v49 = vadd.f32 %v1789_v43, %v1311_v53 }
 0x48d   : > { %v1791_v52 = vpop.eup %1790 }
 0x48e   : > { %v1324_v54 = vmul.f32 %v1791_v52, %v1307_v45  ;;  %v1316_v58 = vsel %vm1315_vm10, %v1789_v43, %v1312_v49  ;;  %vm1329_vm12 = vweird.f32 %v1791_v52  ;;  %v1503_v49 = vld [vmem:[%s2522_s12 + $0x10] sm:$0xff] }
 0x48f   : > { %v1321_v51 = vsel %vm1318_vm11, %v1320_v61, %v1316_v58  ;;  %vm1330_vm14 = vmor %vm1328_vm13, %vm1329_vm12 }
 0x490   : > { %v1325_v55 = vsub.f32 1.0, %v1324_v54  ;;  %v1322_v4 = vmul.f32 %v2360_v18, %v1321_v51  ;;  %v1504_v54 = vld [vmem:[%s2522_s12 + $0x18] sm:$0xff] }
 0x491   : > { %1527 = vmatpush.msra.mxu2 %v1504_v54 }
 0x492   : > { %v1326_v60 = vmul.f32 %v1791_v52, %v1325_v55  ;;  %v1502_v55 = vld [vmem:[%s2522_s12 + $0x8] sm:$0xff] }
 0x493   : > { %1528 = vmatpush.msra.mxu2 %v1503_v49 }
 0x494   : > { %v1327_v63 = vadd.f32 %v1791_v52, %v1326_v60 }
 0x495   : > { %1529 = vmatpush.msra.mxu2 %v1502_v55 }
 0x496   : > { %v1331_v6 = vsel %vm1330_vm14, %v1791_v52, %v1327_v63 }
 0x497   : > { %v1336_v10 = vsel %vm1333_vm15, %v1335_v8, %v1331_v6  ;;  %1530 = vmatpush.msra.mxu2 %v1501_v56  ;;  %v1751_v6 = vld [vmem:[%s2521_s11] ss:$0 sm:$0xff] }
 0x498   : > { %v1337_v11 = vmul.f32 %v2365_v22, %v1336_v10  ;;  %v1407_v22 = vld [vmem:[%s2518_s8 + $0x18] sm:$0xff] }
 0x499   : > { %v1742_v62 = vpop.permute.xlu0 %1741  ;;  %1426 = vmatpush.msrb.mxu1 %v1407_v22 }
 0x49a   : > { %v1743_v13 = vunpack.i.l.bf16 %v1742_v62  ;;  %v1744_v2 = vunpack.i.h.bf16 %v1742_v62 }
 0x49b   : > { %1427 = vmatpush.msrb.mxu1 %v1406_v23 }
 0x49c   : > { %1364 = vmatpush.msra.mxu0 %v1743_v13 }
 0x49d   : > { %1428 = vmatpush.msrb.mxu1 %v1405_v24 }
 0x49e   : > { %1365 = vmatpush.msra.mxu0 %v1744_v2  ;;  %v1750_v2 = vld [vmem:[%s2520_s10] ss:$0 sm:$0xff] }
 0x49f   : > { %1690 = vmatmul.msk.f32.vlgmr.msra.gmra.mxu0 %vm917_vm9, %v1322_v4  ;;  %1429 = vmatpush.msrb.mxu1 %v1404_v25 }
 0x4a7   : > { %1691 = vmatmul.msk.f32.gmra.mxu0 %vm917_vm9, %v1337_v11  ;;  %v1571_v11 = vld [vmem:[%s2524_s14 + $0x78] sm:$0xff] }
 0x4a8   : > { %1576 = vmatpush.msra.mxu3 %v1571_v11 }
 0x4d8   : > { %v995_v12 = vpop.f32.mrf.mxu2 }
 0x4e0   : > { %v998_v14 = vpop.f32.mrf.mxu2 }
 0x4f8   : > { %v1243_v15 = vpop.f32.mrf.mxu2 }
 0x4f9   : > { %1383 = vrot.lane.b32.xlu1 %v1243_v15, %s1820_s25 }
 0x4fa   : > { %v1119_v16 = vpop.f32.mrf.mxu0 }
 0x4fb   : > { %1375 = vrot.lane.b32.xlu2 %v1119_v16, %s1821_s26 }
 0x505   : > { %v1246_v20 = vpop.f32.mrf.mxu2 }
 0x507   : > { %v1122_v18 = vpop.f32.mrf.mxu0 }
 0x508   : > { %1377 = vrot.lane.b32.xlu1 %v1122_v18, %s1821_s26 }
 0x51c   : > { %v1367_v19 = vpop.f32.mrf.mxu0 }
 0x51d   : > { %1391 = vrot.lane.b32.xlu2 %v1367_v19, %s1822_s24 }
 0x524   : > { %v1370_v21 = vpop.f32.mrf.mxu0 }
 0x525   : > { %1393 = vrot.lane.b32.xlu0 %v1370_v21, %s1822_s24  ;;  %1385 = vrot.lane.b32.xlu2 %v1246_v20, %s1820_s25 }
 0x555   : > { %v1376_v59 = vpop.permute.xlu2 %1375 }
 0x556   : > { %v1397_v27 = vsel %vm883_vm8, %v995_v12, %v1376_v59  ;;  %v1570_v12 = vld [vmem:[%s2524_s14 + $0x70] sm:$0xff] }
 0x557   : > { %1577 = vmatpush.msra.mxu3 %v1570_v12 }
 0x56b   : > { %v1384_v26 = vpop.permute.xlu1 %1383 }
 0x56c   : > { %v1399_v28 = vsel %vm917_vm9, %v1397_v27, %v1384_v26 }
 0x577   : > { %v1392_v29 = vpop.permute.xlu2 %1391 }
 0x578   : > { %v1402_v30 = vsel %vm1401_vm1, %v1399_v28, %v1392_v29  ;;  %v1567_v28 = vld [vmem:[%s2524_s14 + $0x58] sm:$0xff]  ;;  %v1566_v29 = vld [vmem:[%s2524_s14 + $0x50] sm:$0xff] }
 0x579   : > { %1692 = vmatmul.msk.f32.vlgmr.msrb.gmra.mxu1 %vm778_vm0, %v1402_v30  ;;  %v1565_v30 = vld [vmem:[%s2524_s14 + $0x48] sm:$0xff] }
 0x57a   : > { %v1378_v31 = vpop.permute.xlu1 %1377 }
 0x57b   : > { %v1398_v33 = vsel %vm883_vm8, %v998_v14, %v1378_v31  ;;  %v1569_v14 = vld [vmem:[%s2524_s14 + $0x68] sm:$0xff]  ;;  %v1564_v31 = vld [vmem:[%s2524_s14 + $0x40] sm:$0xff] }
 0x57c   : > { %1578 = vmatpush.msra.mxu3 %v1569_v14 }
 0x57f   : > { %v1386_v32 = vpop.permute.xlu2 %1385 }
 0x580   : > { %v1400_v34 = vsel %vm917_vm9, %v1398_v33, %v1386_v32  ;;  %v1563_v32 = vld [vmem:[%s2524_s14 + $0x38] sm:$0xff]  ;;  %v1562_v33 = vld [vmem:[%s2524_s14 + $0x30] sm:$0xff] }
 0x597   : > { %v1394_v35 = vpop.permute.xlu0 %1393 }
 0x598   : > { %v1403_v36 = vsel %vm1401_vm1, %v1400_v34, %v1394_v35  ;;  %v1561_v34 = vld [vmem:[%s2524_s14 + $0x28] sm:$0xff]  ;;  %v1560_v35 = vld [vmem:[%s2524_s14 + $0x20] sm:$0xff] }
 0x599   : > { %1693 = vmatmul.msk.f32.gmra.mxu1 %vm778_vm0, %v1403_v36  ;;  %v1559_v36 = vld [vmem:[%s2524_s14 + $0x18] sm:$0xff] }
 0x5f6   : > { %v1431_v38 = vpop.f32.mrf.mxu1 }
 0x5f7   : > { %v1437_v39 = vadd.f32 %v1431_v38, %v2240_v1  ;;  %v1557_v38 = vld [vmem:[%s2524_s14 + $0x8] sm:$0xff] }
 0x5f9   : > { %v2408_v40 = vadd.f32 %v1749_v37, %v1437_v39  ;;  %v1556_v39 = vld [vmem:[%s2524_s14] sm:$0xff] }
 0x5fb   : > { %v1447_v3 = vsel %vm778_vm0, %v2408_v40, 0.0 }
 0x5fc   : > { %1448 = vadd.xlane.f32.xlu1 %v1447_v3  ;;  %v1752_v3 = vld [vmem:[%s2523_s13] ss:$0 sm:$0xff] }
 0x616   : > { %v1434_v41 = vpop.f32.mrf.mxu1 }
 0x617   : > { %v1438_v42 = vadd.f32 %v1434_v41, %v2247_v9 }
 0x619   : > { %v2413_v43 = vadd.f32 %v1749_v37, %v1438_v42  ;;  %v1558_v37 = vld [vmem:[%s2524_s14 + $0x10] sm:$0xff] }
 0x61b   : > { %v1450_v44 = vsel %vm778_vm0, %v2413_v43, 0.0 }
 0x61c   : > { %1451 = vadd.xlane.f32.xlu2 %v1450_v44 }
 0x66f   : > { %v1449_v45 = vpop.xlane.xlu1 %1448 }
 0x670   : > { %v1453_v46 = vmul.f32 %v1449_v45, %v2251_v17 }
 0x672   : > { %v1455_v1 = vsub.f32 %v2408_v40, %v1453_v46 }
 0x674   : > { %v1457_v47 = vmul.f32 %v1455_v1, %v1455_v1 }
 0x676   : > { %v1459_v48 = vsel %vm778_vm0, %v1457_v47, 0.0 }
 0x677   : > { %1460 = vadd.xlane.f32.xlu0 %v1459_v48 }
 0x68f   : > { %v1452_v50 = vpop.xlane.xlu2 %1451 }
 0x690   : > { %v1454_v7 = vmul.f32 %v1452_v50, %v2251_v17 }
 0x692   : > { %v1456_v9 = vsub.f32 %v2413_v43, %v1454_v7 }
 0x694   : > { %v1458_v52 = vmul.f32 %v1456_v9, %v1456_v9 }
 0x696   : > { %v1462_v53 = vsel %vm778_vm0, %v1458_v52, 0.0 }
 0x697   : > { %1463 = vadd.xlane.f32.xlu1 %v1462_v53 }
 0x6ea   : > { %v1461_v57 = vpop.xlane.xlu0 %1460 }
 0x6eb   : > { %v1465_v58 = vmul.f32 %v1461_v57, %v2251_v17 }
 0x6ed   : > { %v1467_v60 = vadd.f32 1e-06, %v1465_v58 }
 0x6ef   : > { %1792 = vrsqrt.f32 %v1467_v60  ;;  %vm1475_vm9 = vweird.f32 %v1467_v60 }
 0x6f5   : > { %v1793_v61 = vpop.eup %1792 }
 0x6f6   : > { %v1470_v62 = vmul.f32 %v1793_v61, %v1467_v60  ;;  %vm1476_vm8 = vweird.f32 %v1793_v61 }
 0x6f7   : > { %vm1477_vm2 = vmor %vm1475_vm9, %vm1476_vm8 }
 0x6f8   : > { %v1471_v51 = vmul.f32 %v1793_v61, %v1470_v62 }
 0x6fa   : > { %v1472_v13 = vmul.f32 0.5, %v1471_v51  ;;  %v1753_v51 = vld [vmem:[%s2525_s15] ss:$0 sm:$0xff] }
 0x6fc   : > { %v1473_v63 = vsub.f32 1.5, %v1472_v13 }
 0x6fe   : > { %v1474_v0 = vmul.f32 %v1793_v61, %v1473_v63 }
 0x700   : > { %v1478_v4 = vsel %vm1477_vm2, %v1793_v61, %v1474_v0 }
 0x701   : > { %v1489_v5 = vmul.f32 %v1478_v4, %v1455_v1 }
 0x703   : > { %v1494_v8 = vmul.f32 %v1750_v2, %v1489_v5 }
 0x705   : > { %v1499_v10 = vadd.f32 %v1751_v6, %v1494_v8 }
 0x707   : > { %1694 = vmatmul.msk.f32.vlgmr.msra.gmra.mxu2 %vm778_vm0, %v1499_v10 }
 0x70a   : > { %v1464_v15 = vpop.xlane.xlu1 %1463 }
 0x70b   : > { %v1466_v16 = vmul.f32 %v1464_v15, %v2251_v17  ;;  %v1568_v17 = vld [vmem:[%s2524_s14 + $0x60] sm:$0xff] }
 0x70c   : > { %1579 = vmatpush.msra.mxu3 %v1568_v17 }
 0x70d   : > { %v1468_v18 = vadd.f32 1e-06, %v1466_v16 }
 0x70e   : > { %1580 = vmatpush.msra.mxu3 %v1567_v28 }
 0x70f   : > { %1794 = vrsqrt.f32 %v1468_v18  ;;  %vm1485_vm4 = vweird.f32 %v1468_v18 }
 0x710   : > { %1581 = vmatpush.msra.mxu3 %v1566_v29 }
 0x712   : > { %1582 = vmatpush.msra.mxu3 %v1565_v30 }
 0x714   : > { %1583 = vmatpush.msra.mxu3 %v1564_v31 }
 0x715   : > { %v1795_v19 = vpop.eup %1794 }
 0x716   : > { %v1480_v20 = vmul.f32 %v1795_v19, %v1468_v18  ;;  %vm1486_vm3 = vweird.f32 %v1795_v19  ;;  %1584 = vmatpush.msra.mxu3 %v1563_v32 }
 0x717   : > { %vm1487_vm5 = vmor %vm1485_vm4, %vm1486_vm3 }
 0x718   : > { %v1481_v21 = vmul.f32 %v1795_v19, %v1480_v20  ;;  %1585 = vmatpush.msra.mxu3 %v1562_v33 }
 0x71a   : > { %v1482_v22 = vmul.f32 0.5, %v1481_v21  ;;  %1586 = vmatpush.msra.mxu3 %v1561_v34 }
 0x71c   : > { %v1483_v23 = vsub.f32 1.5, %v1482_v22  ;;  %1587 = vmatpush.msra.mxu3 %v1560_v35 }
 0x71e   : > { %v1484_v24 = vmul.f32 %v1795_v19, %v1483_v23  ;;  %1588 = vmatpush.msra.mxu3 %v1559_v36 }
 0x720   : > { %v1488_v25 = vsel %vm1487_vm5, %v1795_v19, %v1484_v24  ;;  %1589 = vmatpush.msra.mxu3 %v1558_v37 }
 0x721   : > { %v1490_v59 = vmul.f32 %v1488_v25, %v1456_v9 }
 0x722   : > { %1590 = vmatpush.msra.mxu3 %v1557_v38 }
 0x723   : > { %v1495_v26 = vmul.f32 %v1750_v2, %v1490_v59 }
 0x724   : > { %1591 = vmatpush.msra.mxu3 %v1556_v39 }
 0x725   : > { %v1500_v27 = vadd.f32 %v1751_v6, %v1495_v26 }
 0x727   : > { %1695 = vmatmul.msk.f32.gmra.mxu2 %vm778_vm0, %v1500_v27 }
 0x78a   : > { %v1532_v41 = vpop.f32.mrf.mxu2 }
 0x78b   : > { %v1533_v42 = vadd.f32 %v1752_v3, %v1532_v41 }
 0x78d   : > { %v1538_v44 = vmul.f32 %v1533_v42, %v1533_v42 }
 0x78f   : > { %v1540_v45 = vmul.f32 %v1538_v44, %v1533_v42 }
 0x791   : > { %v1542_v46 = vmul.f32 0.044715, %v1540_v45 }
 0x793   : > { %v1544_v1 = vadd.f32 %v1542_v46, %v1533_v42 }
 0x795   : > { %v1546_v47 = vmul.f32 0.7978846, %v1544_v1 }
 0x797   : > { %1796 = vtanh.f32 %v1546_v47 }
 0x79d   : > { %v1797_v48 = vpop.eup %1796 }
 0x79e   : > { %v1550_v50 = vadd.f32 1.0, %v1797_v48 }
 0x7a0   : > { %v1552_v7 = vmul.f32 0.5, %v1550_v50 }
 0x7a2   : > { %v1554_v9 = vmul.f32 %v1552_v7, %v1533_v42 }
 0x7a4   : > { %1592 = vmatmul.f32.vlgmr.msra.gmra.mxu3 %v1554_v9 }
 0x7aa   : > { %v1535_v52 = vpop.f32.mrf.mxu2 }
 0x7ab   : > { %v1536_v53 = vadd.f32 %v1752_v3, %v1535_v52 }
 0x7ad   : > { %v1539_v54 = vmul.f32 %v1536_v53, %v1536_v53 }
 0x7af   : > { %v1541_v49 = vmul.f32 %v1539_v54, %v1536_v53 }
 0x7b1   : > { %v1543_v55 = vmul.f32 0.044715, %v1541_v49 }
 0x7b3   : > { %v1545_v56 = vadd.f32 %v1543_v55, %v1536_v53 }
 0x7b5   : > { %v1547_v57 = vmul.f32 0.7978846, %v1545_v56 }
 0x7b7   : > { %1798 = vtanh.f32 %v1547_v57 }
 0x7bd   : > { %v1799_v58 = vpop.eup %1798 }
 0x7be   : > { %v1551_v60 = vadd.f32 1.0, %v1799_v58 }
 0x7c0   : > { %v1553_v61 = vmul.f32 0.5, %v1551_v60 }
 0x7c2   : > { %v1555_v62 = vmul.f32 %v1553_v61, %v1536_v53 }
 0x7c4   : > { %1595 = vmatmul.f32.gmra.mxu3 %v1555_v62 }
 0x827   : > { %v1593_v13 = vpop.f32.mrf.mxu3 }
 0x828   : > { %v1594_v63 = vadd.f32 %v1753_v51, %v1593_v13 }
 0x82a   : > { %v1599_v0 = vadd.f32 %v1594_v63, %v2408_v40 }
 0x82c   : > { %1601 = vst.msk [vmem:[%s521_s23] sm:$0xff] %vm778_vm0, %v1599_v0 }
 0x847   : > { %v1596_v2 = vpop.f32.mrf.mxu3 }
 0x848   : > { %v1597_v4 = vadd.f32 %v1753_v51, %v1596_v2 }
 0x84a   : > { %v1600_v5 = vadd.f32 %v1597_v4, %v2413_v43 }
 0x84c   : > { %1602 = vst.msk [vmem:[%s521_s23 + $0x8] sm:$0xff] %vm778_vm0, %v1600_v5 }
 0x84d PF: > { %s26_s21 = sadd.s32 1, %s1806_s21  }
 0x84e   : > { %p23_p4 = scmp.ge.s32.totalorder %s26_s21, 4  }
 0x850   :  { %25 = sbr.rel (!%p23_p4) target bundleno = 2 (0x2), region = 114 }

// kernel: tile.18
= control target key start
LH: loop header
LB: loop body
LE: loop exit
PB: predicated region body
PF: predicated region fallthrough
CT: control target
= control target key end

     0   :  { %s22_s0 = inlined_call_operand.vmem [shape: f32[32], index: 0, kind: input, shape index: {}]   ;;  %s23_s1 = inlined_call_operand.vmem [shape: f32[4,32], index: 1, kind: output, shape index: {}]  }
   0x1   :  { %v4_v0 = vld [vmem:[%s22_s0] ss:$0 sm:$0xff] }
   0x2   :  { %5 = vst [vmem:[%s23_s1] sm:$0xf] %v4_v0 }

// kernel: tile.19
= control target key start
LH: loop header
LB: loop body
LE: loop exit
PB: predicated region body
PF: predicated region fallthrough
CT: control target
= control target key end

     0   :  { %s37_s8 = smov 32   ;;  %s38_s9 = smov 64   ;;  %vm7_vm0 = vcmask 261120   ;;  %vm13_vm1 = vcmask 1048320   ;;  %vm19_vm2 = vcmask 785920   ;;  %vm25_vm3 = vcmask 523520   ;;  %s55_s0 = inlined_call_operand.vmem [shape: f32[4,32], index: 0, kind: input, shape index: {}]   ;;  %s56_s1 = inlined_call_operand.vmem [shape: f32[1,128], index: 1, kind: output, shape index: {}]  }
   0x1   :  { %v4_v0 = vld [vmem:[%s55_s0] sm:$0xf]  ;;  %s36_s0 = smov 96  }
   0x2   :  { %5 = vst [vmem:[#allocation1] sm:$0xf] %v4_v0 }
   0x9   :  { %v10_v1 = vld [vmem:[#allocation1 + $0x3] sm:$0x1]   ;;  %v22_v2 = vld [vmem:[#allocation1 + $0x1] sm:$0x1]   ;;  %v16_v3 = vld [vmem:[#allocation1 + $0x2] sm:$0x1]  }
   0xa   :  { %11 = vrot.lane.b32.xlu0 %v10_v1, %s36_s0  ;;  %23 = vrot.lane.b32.xlu1 %v22_v2, %s37_s8  ;;  %v6_v4 = vld [vmem:[#allocation1] sm:$0x1]  }
   0xb   :  { %8 = vst.msk [vmem:[#allocation0] sm:$0x1] %vm7_vm0, %v6_v4  }
  0x12   :  { %17 = vrot.lane.b32.xlu0 %v16_v3, %s38_s9 }
  0x7c   :  { %v12_v5 = vpop.permute.xlu0 %11   ;;  %v24_v6 = vpop.permute.xlu1 %23  }
  0x7d   :  { %14 = vst.msk [vmem:[#allocation0] sm:$0x1] %vm13_vm1, %v12_v5  }
  0x84   :  { %v18_v7 = vpop.permute.xlu0 %17  }
  0x85   :  { %20 = vst.msk [vmem:[#allocation0] sm:$0x1] %vm19_vm2, %v18_v7  }
  0x86   :  { %26 = vst.msk [vmem:[#allocation0] sm:$0x1] %vm25_vm3, %v24_v6  }
  0x8d   :  { %v29_v8 = vld [vmem:[#allocation0] sm:$0x1] }
  0x8e   :  { %32 = vst [vmem:[%s56_s1] sm:$0x1] %v29_v8 }

// kernel: tile.28
= control target key start
LH: loop header
LB: loop body
LE: loop exit
PB: predicated region body
PF: predicated region fallthrough
CT: control target
= control target key end

     0   :  { %s22_s0 = inlined_call_operand.vmem [shape: f32[17], index: 0, kind: input, shape index: {}]   ;;  %s23_s1 = inlined_call_operand.vmem [shape: f32[4,17], index: 1, kind: output, shape index: {}]  }
   0x1   :  { %v4_v0 = vld [vmem:[%s22_s0] ss:$0 sm:$0xff] }
   0x2   :  { %5 = vst [vmem:[%s23_s1] sm:$0xf] %v4_v0 }

// kernel: tile.29
= control target key start
LH: loop header
LB: loop body
LE: loop exit
PB: predicated region body
PF: predicated region fallthrough
CT: control target
= control target key end

     0   :  { %s37_s8 = smov 17   ;;  %s38_s9 = smov 34   ;;  %vm7_vm0 = vcmask 138240   ;;  %vm13_vm1 = vcmask 556440   ;;  %vm19_vm2 = vcmask 417040   ;;  %vm25_vm3 = vcmask 277640   ;;  %s55_s0 = inlined_call_operand.vmem [shape: f32[4,17], index: 0, kind: input, shape index: {}]   ;;  %s56_s1 = inlined_call_operand.vmem [shape: f32[68], index: 1, kind: output, shape index: {}]  }
   0x1   :  { %v4_v0 = vld [vmem:[%s55_s0] sm:$0xf]  ;;  %s36_s0 = smov 51  }
   0x2   :  { %5 = vst [vmem:[#allocation1] sm:$0xf] %v4_v0 }
   0x9   :  { %v10_v1 = vld [vmem:[#allocation1 + $0x3] sm:$0x1]   ;;  %v22_v2 = vld [vmem:[#allocation1 + $0x1] sm:$0x1]   ;;  %v16_v3 = vld [vmem:[#allocation1 + $0x2] sm:$0x1]  }
   0xa   :  { %11 = vrot.lane.b32.xlu0 %v10_v1, %s36_s0  ;;  %23 = vrot.lane.b32.xlu1 %v22_v2, %s37_s8  ;;  %v6_v4 = vld [vmem:[#allocation1] sm:$0x1]  }
   0xb   :  { %8 = vst.msk [vmem:[#allocation0] sm:$0x1] %vm7_vm0, %v6_v4  }
  0x12   :  { %17 = vrot.lane.b32.xlu0 %v16_v3, %s38_s9 }
  0x7c   :  { %v12_v5 = vpop.permute.xlu0 %11   ;;  %v24_v6 = vpop.permute.xlu1 %23  }
  0x7d   :  { %14 = vst.msk [vmem:[#allocation0] sm:$0x1] %vm13_vm1, %v12_v5  }
  0x84   :  { %v18_v7 = vpop.permute.xlu0 %17  }
  0x85   :  { %20 = vst.msk [vmem:[#allocation0] sm:$0x1] %vm19_vm2, %v18_v7  }
  0x86   :  { %26 = vst.msk [vmem:[#allocation0] sm:$0x1] %vm25_vm3, %v24_v6  }
  0x8d   :  { %v29_v8 = vld [vmem:[#allocation0] sm:$0x1] }
  0x8e   :  { %32 = vst [vmem:[%s56_s1] sm:$0x1] %v29_v8 }

// kernel: vitpose_wrapper_forward.6
= control target key start
LH: loop header
LB: loop body
LE: loop exit
PB: predicated region body
PF: predicated region fallthrough
CT: control target
= control target key end

     0   :  { %s740_s12 = smov 0   ;;  %s939_s0 = inlined_call_operand.vmem [shape: f32[2,16,32], index: 0, kind: input, shape index: {}]   ;;  %s940_s1 = inlined_call_operand.vmem [shape: f32[9,32,128], index: 1, kind: input, shape index: {}]   ;;  %s941_s2 = inlined_call_operand.vmem [shape: f32[1,128], index: 2, kind: input, shape index: {}]   ;;  %s942_s3 = inlined_call_operand.vmem [shape: f32[2,16,128], index: 3, kind: output, shape index: {}]  }
   0x1 LB: > { %s634_s13 = sadd.s32 4294967295, %s717_s12   ;;  %p638_p0 = scmp.ge.s32.totalorder %s717_s12, 1  ;;  %s717_s12 = sphi %s740_s12, %s13_s12  }
   0x2   : > { %p137_p1 = scmp.lt.s32.totalorder %s717_s12, 3 }
   0x4   : > { %p138_p2 = pnand %p638_p0, %p137_p1 }
   0x5   : > { %p161_p3 = scmp.lt.s32.totalorder (!%p138_p2), %s634_s13, 1 }
   0x6   : > { %141 = sbr.rel (%p138_p2) target bundleno = 198 (0xc6), region = 32 }
   0xb   : > { %v646_v0 = vld [vmem:[%s940_s1 + $0x38] sm:$0xff]  ;;  %v645_v1 = vld [vmem:[%s940_s1 + $0x30] sm:$0xff]  ;;  %vm171_vm0 = vcmask 261120   ;;  %v181_v2 = vlaneseq  ;;  %v719_v5 = vmov 0.0   ;;  %v644_v6 = vld [vmem:[%s940_s1 + $0x28] sm:$0xff]  ;;  %s952_s13 = smov (!%p161_p3, %s634_s13), 1 }
   0xc   : > { %697 = vmatpush.msra.mxu1 %v646_v0  ;;  %v654_v3 = vld [vmem:[%s940_s1 + $0x58] sm:$0xff]  ;;  %247 = vmatpush.msra.mxu0 %v646_v0  ;;  %v653_v4 = vld [vmem:[%s940_s1 + $0x50] sm:$0xff]  ;;  %172 = vst.msk [vmem:[#allocation2] sm:$0xff] %vm171_vm0, %v719_v5  ;;  %v652_v8 = vld [vmem:[%s940_s1 + $0x48] sm:$0xff]  ;;  %s695_s5 = sshll.u32 %s952_s13, 4  ;;  %vm175_vm1 = vcmask 254976  }
   0xd   : > { %320 = vmatpush.msra.mxu2 %v654_v3  ;;  %v660_v7 = vld [vmem:[%s940_s1 + $0x78] sm:$0xff]  ;;  %173 = vst.msk [vmem:[#allocation2 + $0x8] sm:$0xff] %vm171_vm0, %v719_v5  ;;  %v659_v9 = vld [vmem:[%s940_s1 + $0x70] sm:$0xff]  ;;  %v643_v10 = vld [vmem:[%s940_s1 + $0x20] sm:$0xff]  ;;  %v182_v12 = vshrl.u32 %v181_v2, 7  ;;  %s165_s10 = scalar_lea.vmem %s939_s0, %s695_s5  ;;  %s170_s21 = scalar_lea.vmem %s942_s3, %s695_s5 }
   0xe   : > { %698 = vmatpush.msra.mxu1 %v645_v1  ;;  %360 = vmatpush.msra.mxu3 %v660_v7  ;;  %174 = vst.msk [vmem:[#allocation2 + $0x10] sm:$0xff] %vm171_vm0, %v719_v5  ;;  %v658_v11 = vld [vmem:[%s940_s1 + $0x68] sm:$0xff]  ;;  %v221_v13 = vld [vmem:[%s940_s1 + $0x18] sm:$0xff]  ;;  %v651_v14 = vld [vmem:[%s940_s1 + $0x40] sm:$0xff] }
   0xf   : > { %321 = vmatpush.msra.mxu2 %v653_v4  ;;  %248 = vmatpush.msra.mxu0 %v645_v1  ;;  %v177_v15 = vld [vmem:[%s165_s10] sm:$0xff]  ;;  %v178_v16 = vld [vmem:[%s165_s10 + $0x8] sm:$0xff]  ;;  %v678_v17 = vld [vmem:[%s940_s1 + $0xd8] sm:$0xff]  ;;  %v188_v20 = vand.u32 3, %v182_v12  ;;  %176 = vst.msk [vmem:[#allocation2 + $0x18] sm:$0x3] %vm175_vm1, %v719_v5 }
  0x10   : > { %699 = vmatpush.msra.mxu1 %v644_v6  ;;  %361 = vmatpush.msra.mxu3 %v659_v9  ;;  %179 = vst.msk [vmem:[#allocation2 + $0x5] sm:$0xff] %vm171_vm0, %v177_v15  ;;  %v220_v18 = vld [vmem:[%s940_s1 + $0x10] sm:$0xff]  ;;  %v657_v19 = vld [vmem:[%s940_s1 + $0x60] sm:$0xff]  ;;  %v666_v21 = vld [vmem:[%s940_s1 + $0x98] sm:$0xff]  ;;  %v183_v27 = vadd.s32 8, %v182_v12 }
  0x11   : > { %322 = vmatpush.msra.mxu2 %v652_v8  ;;  %249 = vmatpush.msra.mxu0 %v644_v6  ;;  %180 = vst.msk [vmem:[#allocation2 + $0xd] sm:$0xff] %vm171_vm0, %v178_v16  ;;  %v684_v22 = vld [vmem:[%s940_s1 + $0xf8] sm:$0xff]  ;;  %v219_v23 = vld [vmem:[%s940_s1 + $0x8] sm:$0xff]  ;;  %v677_v24 = vld [vmem:[%s940_s1 + $0xd0] sm:$0xff]  ;;  %vm831_vm2 = vcmp.lt.s32.totalorder %v188_v20, 3  ;;  %vm835_vm3 = vcmp.gt.s32.totalorder %v188_v20, 0 }
  0x12   : > { %700 = vmatpush.msra.mxu1 %v643_v10  ;;  %362 = vmatpush.msra.mxu3 %v658_v11  ;;  %v665_v25 = vld [vmem:[%s940_s1 + $0x90] sm:$0xff]  ;;  %v218_v28 = vld [vmem:[%s940_s1] sm:$0xff]  ;;  %v676_v29 = vld [vmem:[%s940_s1 + $0xc8] sm:$0xff]  ;;  %v195_v37 = vand.u32 3, %v183_v27 }
  0x13   : > { %323 = vmatpush.msra.mxu2 %v651_v14  ;;  %250 = vmatpush.msra.mxu0 %v643_v10  ;;  %v683_v26 = vld [vmem:[%s940_s1 + $0xf0] sm:$0xff]  ;;  %v682_v32 = vld [vmem:[%s940_s1 + $0xe8] sm:$0xff]  ;;  %v672_v33 = vld [vmem:[%s940_s1 + $0xb8] sm:$0xff] }
  0x14   : > { %276 = vmatpush.msrb.mxu1 %v221_v13  ;;  %363 = vmatpush.msra.mxu3 %v657_v19  ;;  %v664_v41 = vld [vmem:[%s940_s1 + $0x88] sm:$0xff]  ;;  %v675_v42 = vld [vmem:[%s940_s1 + $0xc0] sm:$0xff]  ;;  %v671_v43 = vld [vmem:[%s940_s1 + $0xb0] sm:$0xff]  ;;  %vm871_vm4 = vcmp.lt.s32.totalorder %v195_v37, 3  ;;  %vm878_vm5 = vcmp.gt.s32.totalorder %v195_v37, 0 }
  0x15   : > { %478 = vmatpush.msrb.mxu2 %v678_v17  ;;  %398 = vmatpush.msrb.mxu0 %v666_v21  ;;  %v681_v44 = vld [vmem:[%s940_s1 + $0xe0] sm:$0xff]  ;;  %v690_v46 = vld [vmem:[%s940_s1 + $0x118] sm:$0xff]  ;;  %v670_v50 = vld [vmem:[%s940_s1 + $0xa8] sm:$0xff] }
  0x16   : > { %277 = vmatpush.msrb.mxu1 %v220_v18  ;;  %516 = vmatpush.msrb.mxu3 %v684_v22  ;;  %v663_v45 = vld [vmem:[%s940_s1 + $0x80] sm:$0xff]  ;;  %v689_v58 = vld [vmem:[%s940_s1 + $0x110] sm:$0xff]  ;;  %v688_v59 = vld [vmem:[%s940_s1 + $0x108] sm:$0xff] }
  0x17   : > { %479 = vmatpush.msrb.mxu2 %v677_v24  ;;  %399 = vmatpush.msrb.mxu0 %v665_v25  ;;  %v287_v34 = vld [vmem:[#allocation2 + $0x2] sm:$0xff] }
  0x18   : > { %278 = vmatpush.msrb.mxu1 %v219_v23  ;;  %517 = vmatpush.msrb.mxu3 %v683_v26  ;;  %v222_v35 = vld [vmem:[#allocation2 + $0x1] sm:$0xff]  ;;  %v223_v38 = vld [vmem:[#allocation2 + $0x9] sm:$0xff]  ;;  %v295_v39 = vsel %vm831_vm2, %v287_v34, 0.0  ;;  %v492_v6 = vld [vmem:[#allocation2 + $0x11] sm:$0xff] }
  0x19   : > { %v333_v36 = vld [vmem:[#allocation2 + $0x4] sm:$0xff]  ;;  %480 = vmatpush.msrb.mxu2 %v676_v29  ;;  %647 = vmatmul.msk.f32.vlgmr.msra.gmra.mxu0 %vm171_vm0, %v222_v35  ;;  %v334_v52 = vld [vmem:[#allocation2 + $0xc] sm:$0xff]  ;;  %v710_v35 = vld [vmem:[%s941_s2] ss:$0 sm:$0xff] }
  0x1a   : > { %279 = vmatpush.msrb.mxu1 %v218_v28  ;;  %v335_v40 = vsel %vm835_vm3, %v333_v36, 0.0  ;;  %518 = vmatpush.msrb.mxu3 %v682_v32  ;;  %v208_v47 = vld [vmem:[#allocation2] sm:$0xff]  ;;  %v288_v48 = vld [vmem:[#allocation2 + $0xa] sm:$0xff]  ;;  %v336_v57 = vsel %vm878_vm5, %v334_v52, 0.0  ;;  %v530_v7 = vld [vmem:[#allocation2 + $0x12] sm:$0xff] }
  0x1b   : > { %648 = vmatmul.msk.f32.vlgmr.msra.gmra.mxu1 %vm171_vm0, %v223_v38  ;;  %655 = vmatmul.msk.f32.vlgmr.msra.gmra.mxu2 %vm171_vm0, %v295_v39  ;;  %v373_v53 = vld [vmem:[#allocation2 + $0x5] sm:$0xff]  ;;  %v216_v55 = vsel %vm835_vm3, %v208_v47, 0.0  ;;  %v296_v56 = vsel %vm871_vm4, %v288_v48, 0.0  ;;  %v374_v62 = vld [vmem:[#allocation2 + $0xd] sm:$0xff]  ;;  %v531_v3 = vsel %vm831_vm2, %v288_v48, 0.0  ;;  %v532_v9 = vsel %vm871_vm4, %v530_v7, 0.0 }
  0x1c   : > { %661 = vmatmul.msk.f32.vlgmr.msra.gmra.mxu3 %vm171_vm0, %v335_v40  ;;  %438 = vmatpush.msra.mxu1 %v672_v33  ;;  %v669_v54 = vld [vmem:[%s940_s1 + $0xa0] sm:$0xff]  ;;  %v209_v60 = vld [vmem:[#allocation2 + $0x8] sm:$0xff]  ;;  %v452_v2 = vld [vmem:[#allocation2 + $0x10] sm:$0xff] }
  0x1d   : > { %400 = vmatpush.msrb.mxu0 %v664_v41  ;;  %481 = vmatpush.msrb.mxu2 %v675_v42  ;;  %v687_v61 = vld [vmem:[%s940_s1 + $0x100] sm:$0xff]  ;;  %v217_v63 = vsel %vm878_vm5, %v209_v60, 0.0  ;;  %v453_v0 = vsel %vm835_vm3, %v209_v60, 0.0  ;;  %v454_v5 = vsel %vm878_vm5, %v452_v2, 0.0  ;;  %v412_v8 = vld [vmem:[#allocation2 + $0xe] sm:$0xff] }
  0x1e   : > { %439 = vmatpush.msra.mxu1 %v671_v43  ;;  %519 = vmatpush.msrb.mxu3 %v681_v44  ;;  %v411_v1 = vld [vmem:[#allocation2 + $0x6] sm:$0xff]  ;;  %v414_v10 = vsel %vm871_vm4, %v412_v8, 0.0 }
  0x1f   : > { %401 = vmatpush.msrb.mxu0 %v663_v45  ;;  %v413_v4 = vsel %vm831_vm2, %v411_v1, 0.0 }
  0x20   : > { %440 = vmatpush.msra.mxu1 %v670_v50 }
  0x21   : > { %556 = vmatpush.msra.mxu0 %v690_v46 }
  0x22   : > { %667 = vmatmul.msk.f32.vlgmr.msrb.gmra.mxu0 %vm171_vm0, %v373_v53  ;;  %441 = vmatpush.msra.mxu1 %v669_v54 }
  0x23   : > { %649 = vmatmul.msk.f32.vlgmr.msrb.gmra.mxu1 %vm171_vm0, %v216_v55  ;;  %656 = vmatmul.msk.f32.gmra.mxu2 %vm171_vm0, %v296_v56 }
  0x24   : > { %662 = vmatmul.msk.f32.gmra.mxu3 %vm171_vm0, %v336_v57  ;;  %557 = vmatpush.msra.mxu0 %v689_v58 }
  0x26   : > { %558 = vmatpush.msra.mxu0 %v688_v59 }
  0x28   : > { %559 = vmatpush.msra.mxu0 %v687_v61 }
  0x2a   : > { %668 = vmatmul.msk.f32.gmra.mxu0 %vm171_vm0, %v374_v62 }
  0x2b   : > { %650 = vmatmul.msk.f32.gmra.mxu1 %vm171_vm0, %v217_v63  ;;  %679 = vmatmul.msk.f32.vlgmr.msrb.gmra.mxu2 %vm171_vm0, %v453_v0 }
  0x2c   : > { %685 = vmatmul.msk.f32.vlgmr.msrb.gmra.mxu3 %vm171_vm0, %v223_v38 }
  0x32   : > { %691 = vmatmul.msk.f32.vlgmr.msra.gmra.mxu0 %vm171_vm0, %v531_v3 }
  0x33   : > { %673 = vmatmul.msk.f32.vlgmr.msra.gmra.mxu1 %vm171_vm0, %v413_v4  ;;  %680 = vmatmul.msk.f32.gmra.mxu2 %vm171_vm0, %v454_v5 }
  0x34   : > { %686 = vmatmul.msk.f32.gmra.mxu3 %vm171_vm0, %v492_v6 }
  0x3a   : > { %692 = vmatmul.msk.f32.gmra.mxu0 %vm171_vm0, %v532_v9 }
  0x3b   : > { %674 = vmatmul.msk.f32.gmra.mxu1 %vm171_vm0, %v414_v10 }
  0x96   : > { %v252_v11 = vpop.f32.mrf.mxu0 }
  0x98   : > { %v255_v12 = vpop.f32.mrf.mxu1 }
  0x9e   : > { %v325_v13 = vpop.f32.mrf.mxu2 }
  0x9f   : > { %v365_v14 = vpop.f32.mrf.mxu3  ;;  %v403_v15 = vpop.f32.mrf.mxu0 }
  0xa0   : > { %v281_v16 = vpop.f32.mrf.mxu1 }
  0xa1   : > { %v282_v17 = vadd.f32 %v281_v16, %v252_v11 }
  0xa3   : > { %v331_v19 = vadd.f32 %v325_v13, %v282_v17 }
  0xa5   : > { %v371_v23 = vadd.f32 %v365_v14, %v331_v19 }
  0xa6   : > { %v328_v18 = vpop.f32.mrf.mxu2 }
  0xa7   : > { %v368_v20 = vpop.f32.mrf.mxu3  ;;  %v406_v22 = vpop.f32.mrf.mxu0  ;;  %v409_v26 = vadd.f32 %v403_v15, %v371_v23 }
  0xa8   : > { %v284_v21 = vpop.f32.mrf.mxu1 }
  0xa9   : > { %v285_v24 = vadd.f32 %v284_v21, %v255_v12 }
  0xab   : > { %v332_v27 = vadd.f32 %v328_v18, %v285_v24 }
  0xad   : > { %v372_v32 = vadd.f32 %v368_v20, %v332_v27 }
  0xae   : > { %v483_v25 = vpop.f32.mrf.mxu2 }
  0xaf   : > { %v521_v29 = vpop.f32.mrf.mxu3  ;;  %v561_v31 = vpop.f32.mrf.mxu0  ;;  %v410_v36 = vadd.f32 %v406_v22, %v372_v32 }
  0xb0   : > { %v443_v28 = vpop.f32.mrf.mxu1 }
  0xb1   : > { %v449_v30 = vadd.f32 %v443_v28, %v409_v26 }
  0xb3   : > { %v489_v33 = vadd.f32 %v483_v25, %v449_v30 }
  0xb5   : > { %v527_v34 = vadd.f32 %v521_v29, %v489_v33 }
  0xb6   : > { %v486_v39 = vpop.f32.mrf.mxu2 }
  0xb7   : > { %v567_v37 = vadd.f32 %v561_v31, %v527_v34  ;;  %v524_v42 = vpop.f32.mrf.mxu3  ;;  %v564_v45 = vpop.f32.mrf.mxu0 }
  0xb8   : > { %v446_v38 = vpop.f32.mrf.mxu1 }
  0xb9   : > { %v573_v40 = vadd.f32 %v710_v35, %v567_v37  ;;  %v450_v41 = vadd.f32 %v446_v38, %v410_v36 }
  0xbb   : > { %v575_v43 = vmax.f32 %v573_v40, 0.0  ;;  %v490_v44 = vadd.f32 %v486_v39, %v450_v41 }
  0xbd   : > { %577 = vst [vmem:[%s170_s21] sm:$0xff] %v575_v43  ;;  %v528_v46 = vadd.f32 %v524_v42, %v490_v44 }
  0xbf   : > { %v568_v47 = vadd.f32 %v564_v45, %v528_v46 }
  0xc1   : > { %v574_v48 = vadd.f32 %v710_v35, %v568_v47 }
  0xc3   : > { %v576_v49 = vmax.f32 %v574_v48, 0.0 }
  0xc5   : > { %578 = vst [vmem:[%s170_s21 + $0x8] sm:$0xff] %v576_v49 }
  0xc6 PF: > { %s13_s12 = sadd.s32 1, %s717_s12  }
  0xc7   : > { %p10_p4 = scmp.ge.s32.totalorder %s13_s12, 4  }
  0xc9   :  { %12 = sbr.rel (!%p10_p4) target bundleno = 1 (0x1), region = 70 }

// kernel: vitpose_wrapper_forward.7
= control target key start
LH: loop header
LB: loop body
LE: loop exit
PB: predicated region body
PF: predicated region fallthrough
CT: control target
= control target key end

     0   :  { %s1531_s18 = smov 0   ;;  %s2213_s0 = inlined_call_operand.vmem [shape: f32[2,64,32], index: 0, kind: input, shape index: {}]   ;;  %s2214_s1 = inlined_call_operand.vmem [shape: f32[9,32,128], index: 1, kind: input, shape index: {}]   ;;  %s2215_s2 = inlined_call_operand.vmem [shape: f32[1,128], index: 2, kind: input, shape index: {}]   ;;  %s2216_s3 = inlined_call_operand.vmem [shape: f32[128,128], index: 3, kind: input, shape index: {}]   ;;  %s2217_s4 = inlined_call_operand.vmem [shape: f32[1,128], index: 4, kind: input, shape index: {}]   ;;  %s2218_s5 = inlined_call_operand.vmem [shape: f32[2,64,128], index: 5, kind: output, shape index: {}]  }
   0x1 LB: > { %s1356_s19 = sadd.s32 4294967295, %s1498_s18   ;;  %p1360_p0 = scmp.ge.s32.totalorder %s1498_s18, 1  ;;  %s1498_s18 = sphi %s1531_s18, %s15_s18  }
   0x2   : > { %p187_p1 = scmp.lt.s32.totalorder %s1498_s18, 3 }
   0x4   : > { %p188_p2 = pnand %p1360_p0, %p187_p1 }
   0x5   : > { %p215_p3 = scmp.lt.s32.totalorder (!%p188_p2), %s1356_s19, 1 }
   0x6   : > { %191 = sbr.rel (%p188_p2) target bundleno = 453 (0x1c5), region = 40 }
   0xb   : > { %v1368_v0 = vld [vmem:[%s2214_s1 + $0x38] sm:$0xff]  ;;  %v1367_v2 = vld [vmem:[%s2214_s1 + $0x30] sm:$0xff]  ;;  %vm225_vm0 = vcmask 261120   ;;  %v254_v3 = vlaneseq  ;;  %v1500_v5 = vmov 0.0   ;;  %v1366_v6 = vld [vmem:[%s2214_s1 + $0x28] sm:$0xff]  ;;  %s2252_s19 = smov (!%p215_p3, %s1356_s19), 1 }
   0xc   : > { %v402_v1 = vld [vmem:[%s2214_s1 + $0x18] sm:$0xff]  ;;  %1473 = vmatpush.msra.mxu2 %v1368_v0  ;;  %v401_v4 = vld [vmem:[%s2214_s1 + $0x10] sm:$0xff]  ;;  %230 = vst.msk [vmem:[#allocation2 + $0x20] sm:$0xff] %vm225_vm0, %v1500_v5  ;;  %v400_v7 = vld [vmem:[%s2214_s1 + $0x8] sm:$0xff]  ;;  %452 = vmatpush.msra.mxu0 %v1368_v0  ;;  %s1471_s9 = sshll.u32 %s2252_s19, 6 }
   0xd   : > { %1477 = vmatpush.msra.mxu3 %v402_v1  ;;  %231 = vst.msk [vmem:[#allocation2 + $0x28] sm:$0xff] %vm225_vm0, %v1500_v5  ;;  %v1563_v8 = vshrl.u32 %v254_v3, 7  ;;  %517 = vmatpush.msra.mxu1 %v402_v1  ;;  %v1365_v9 = vld [vmem:[%s2214_s1 + $0x20] sm:$0xff]  ;;  %s1582_s14 = scalar_lea.vmem %s2213_s0, %s1471_s9  ;;  %v1388_v12 = vld [vmem:[%s2214_s1 + $0x58] sm:$0xff]  ;;  %v1387_v15 = vld [vmem:[%s2214_s1 + $0x50] sm:$0xff]  ;;  %s224_s25 = scalar_lea.vmem %s2218_s5, %s1471_s9 }
   0xe   : > { %1474 = vmatpush.msra.mxu2 %v1367_v2  ;;  %226 = vst.msk [vmem:[#allocation2] sm:$0xff] %vm225_vm0, %v1500_v5  ;;  %v399_v10 = vld [vmem:[%s2214_s1] sm:$0xff]  ;;  %453 = vmatpush.msra.mxu0 %v1367_v2  ;;  %v1400_v13 = vld [vmem:[%s2214_s1 + $0x78] sm:$0xff]  ;;  %v1399_v16 = vld [vmem:[%s2214_s1 + $0x70] sm:$0xff] }
   0xf   : > { %1478 = vmatpush.msra.mxu3 %v401_v4  ;;  %227 = vst.msk [vmem:[#allocation2 + $0x8] sm:$0xff] %vm225_vm0, %v1500_v5  ;;  %518 = vmatpush.msra.mxu1 %v401_v4  ;;  %v267_v11 = vand.u32 7, %v1563_v8  ;;  %v241_v14 = vld [vmem:[%s1582_s14 + $0x18] sm:$0xff]  ;;  %v1386_v19 = vld [vmem:[%s2214_s1 + $0x48] sm:$0xff]  ;;  %v240_v20 = vld [vmem:[%s1582_s14 + $0x10] sm:$0xff]  ;;  %v1620_v21 = vadd.s32 32, %v1563_v8 }
  0x10   : > { %1475 = vmatpush.msra.mxu2 %v1366_v6  ;;  %228 = vst.msk [vmem:[#allocation2 + $0x10] sm:$0xff] %vm225_vm0, %v1500_v5  ;;  %454 = vmatpush.msra.mxu0 %v1366_v6  ;;  %v1412_v18 = vld [vmem:[%s2214_s1 + $0x98] sm:$0xff]  ;;  %v1398_v22 = vld [vmem:[%s2214_s1 + $0x68] sm:$0xff]  ;;  %v1411_v23 = vld [vmem:[%s2214_s1 + $0x90] sm:$0xff]  ;;  %v1641_v30 = vadd.s32 8, %v1563_v8  ;;  %v1662_v38 = vadd.s32 40, %v1563_v8 }
  0x11   : > { %1479 = vmatpush.msra.mxu3 %v400_v7  ;;  %229 = vst.msk [vmem:[#allocation2 + $0x18] sm:$0xff] %vm225_vm0, %v1500_v5  ;;  %519 = vmatpush.msra.mxu1 %v400_v7  ;;  %vm1606_vm1 = vcmp.gt.s32.totalorder %v267_v11, 0  ;;  %v242_v24 = vld [vmem:[%s1582_s14 + $0x20] sm:$0xff]  ;;  %v243_v28 = vld [vmem:[%s1582_s14 + $0x28] sm:$0xff]  ;;  %v244_v31 = vld [vmem:[%s1582_s14 + $0x30] sm:$0xff]  ;;  %v295_v32 = vand.u32 7, %v1620_v21 }
  0x12   : > { %1476 = vmatpush.msra.mxu2 %v1365_v9  ;;  %249 = vst.msk [vmem:[#allocation2 + $0x21] sm:$0xff] %vm225_vm0, %v241_v14  ;;  %455 = vmatpush.msra.mxu0 %v1365_v9  ;;  %v238_v29 = vld [vmem:[%s1582_s14] sm:$0xff]  ;;  %v1410_v35 = vld [vmem:[%s2214_s1 + $0x88] sm:$0xff]  ;;  %v1436_v39 = vld [vmem:[%s2214_s1 + $0xd8] sm:$0xff]  ;;  %v274_v40 = vand.u32 7, %v1641_v30  ;;  %v1678_v42 = vadd.s32 16, %v1563_v8 }
  0x13   : > { %1480 = vmatpush.msra.mxu3 %v399_v10  ;;  %232 = vst.msk [vmem:[#allocation2 + $0x30] sm:$0xff] %vm225_vm0, %v1500_v5  ;;  %520 = vmatpush.msra.mxu1 %v399_v10  ;;  %v1385_v33 = vld [vmem:[%s2214_s1 + $0x40] sm:$0xff]  ;;  %v239_v37 = vld [vmem:[%s1582_s14 + $0x8] sm:$0xff]  ;;  %vm1672_vm2 = vcmp.gt.s32.totalorder %v295_v32, 0  ;;  %v302_v44 = vand.u32 7, %v1662_v38  ;;  %v1714_v54 = vadd.s32 48, %v1563_v8 }
  0x14   : > { %627 = vmatpush.msrb.mxu2 %v1388_v12  ;;  %233 = vst.msk [vmem:[#allocation2 + $0x38] sm:$0xff] %vm225_vm0, %v1500_v5  ;;  %807 = vmatpush.msrb.mxu0 %v1412_v18  ;;  %v1397_v34 = vld [vmem:[%s2214_s1 + $0x60] sm:$0xff]  ;;  %vm1690_vm3 = vcmp.gt.s32.totalorder %v274_v40, 0  ;;  %v281_v51 = vand.u32 7, %v1678_v42  ;;  %v1448_v56 = vld [vmem:[%s2214_s1 + $0xf8] sm:$0xff]  ;;  %v1423_v58 = vld [vmem:[%s2214_s1 + $0xb0] sm:$0xff] }
  0x15   : > { %721 = vmatpush.msrb.mxu3 %v1400_v13  ;;  %234 = vst.msk [vmem:[#allocation2 + $0x40] sm:$0xff] %vm225_vm0, %v1500_v5  ;;  %v359_v25 = vld [vmem:[#allocation2] sm:$0xff]  ;;  %vm1709_vm4 = vcmp.gt.s32.totalorder %v302_v44, 0  ;;  %v1424_v57 = vld [vmem:[%s2214_s1 + $0xb8] sm:$0xff]  ;;  %v1743_v62 = vadd.s32 24, %v1563_v8  ;;  %v309_v63 = vand.u32 7, %v1714_v54 }
  0x16   : > { %628 = vmatpush.msrb.mxu2 %v1387_v15  ;;  %235 = vst.msk [vmem:[#allocation2 + $0x48] sm:$0xff] %vm225_vm0, %v1500_v5  ;;  %v403_v26 = vld [vmem:[#allocation2 + $0x1] sm:$0xff]  ;;  %v391_v27 = vsel %vm1606_vm1, %v359_v25, 0.0  ;;  %808 = vmatpush.msrb.mxu0 %v1411_v23  ;;  %vm1738_vm5 = vcmp.gt.s32.totalorder %v281_v51, 0  ;;  %v1460_v4 = vld [vmem:[%s2214_s1 + $0x118] sm:$0xff]  ;;  %v1775_v12 = vadd.s32 56, %v1563_v8 }
  0x17   : > { %722 = vmatpush.msrb.mxu3 %v1399_v16  ;;  %248 = vst.msk [vmem:[#allocation2 + $0x19] sm:$0xff] %vm225_vm0, %v240_v20  ;;  %1369 = vmatmul.msk.f32.vlgmr.msra.gmra.mxu0 %vm225_vm0, %v403_v26  ;;  %v1409_v48 = vld [vmem:[%s2214_s1 + $0x80] sm:$0xff]  ;;  %v1422_v0 = vld [vmem:[%s2214_s1 + $0xa8] sm:$0xff]  ;;  %v288_v6 = vand.u32 7, %v1743_v62  ;;  %vm1770_vm6 = vcmp.gt.s32.totalorder %v309_v63, 0  ;;  %v1435_v13 = vld [vmem:[%s2214_s1 + $0xd0] sm:$0xff] }
  0x18   : > { %1377 = vmatmul.msk.f32.vlgmr.msra.gmra.mxu1 %vm225_vm0, %v391_v27  ;;  %250 = vst.msk [vmem:[#allocation2 + $0x29] sm:$0xff] %vm225_vm0, %v242_v24  ;;  %629 = vmatpush.msrb.mxu2 %v1386_v19  ;;  %v1421_v7 = vld [vmem:[%s2214_s1 + $0xa0] sm:$0xff]  ;;  %v316_v18 = vand.u32 7, %v1775_v12  ;;  %v1447_v23 = vld [vmem:[%s2214_s1 + $0xf0] sm:$0xff]  ;;  %vm1821_vm9 = vcmp.lt.s32.totalorder %v267_v11, 7  ;;  %v1434_v11 = vld [vmem:[%s2214_s1 + $0xc8] sm:$0xff] }
  0x19   : > { %723 = vmatpush.msrb.mxu3 %v1398_v22  ;;  %v1655_v36 = vld [vmem:[#allocation2 + $0x21] sm:$0xff]  ;;  %251 = vst.msk [vmem:[#allocation2 + $0x31] sm:$0xff] %vm225_vm0, %v243_v28  ;;  %809 = vmatpush.msrb.mxu0 %v1410_v35  ;;  %vm1790_vm7 = vcmp.gt.s32.totalorder %v288_v6, 0  ;;  %v1459_v8 = vld [vmem:[%s2214_s1 + $0x110] sm:$0xff]  ;;  %vm1845_vm10 = vcmp.lt.s32.totalorder %v274_v40, 7  ;;  %vm1869_vm11 = vcmp.lt.s32.totalorder %v281_v51, 7 }
  0x1a   : > { %1373 = vmatmul.msk.f32.vlgmr.msra.gmra.mxu2 %vm225_vm0, %v1655_v36  ;;  %246 = vst.msk [vmem:[#allocation2 + $0x9] sm:$0xff] %vm225_vm0, %v238_v29  ;;  %901 = vmatpush.msrb.mxu1 %v1424_v57  ;;  %vm1812_vm8 = vcmp.gt.s32.totalorder %v316_v18, 0  ;;  %v1446_v30 = vld [vmem:[%s2214_s1 + $0xe8] sm:$0xff]  ;;  %vm1897_vm12 = vcmp.lt.s32.totalorder %v288_v6, 7  ;;  %vm1924_vm13 = vcmp.lt.s32.totalorder %v295_v32, 7  ;;  %v1457_v21 = vld [vmem:[%s2214_s1 + $0x100] sm:$0xff] }
  0x1b   : > { %724 = vmatpush.msrb.mxu3 %v1397_v34  ;;  %252 = vst.msk [vmem:[#allocation2 + $0x39] sm:$0xff] %vm225_vm0, %v244_v31  ;;  %630 = vmatpush.msrb.mxu2 %v1385_v33  ;;  %v1458_v51 = vld [vmem:[%s2214_s1 + $0x108] sm:$0xff]  ;;  %vm1946_vm14 = vcmp.lt.s32.totalorder %v302_v44, 7  ;;  %vm1967_vm15 = vcmp.lt.s32.totalorder %v309_v63, 7  ;;  %v1247_v10 = vld [vmem:[%s2216_s3 + $0x78] sm:$0xff] }
  0x1c   : > { %247 = vst.msk [vmem:[#allocation2 + $0x11] sm:$0xff] %vm225_vm0, %v239_v37  ;;  %810 = vmatpush.msrb.mxu0 %v1409_v48  ;;  %902 = vmatpush.msrb.mxu1 %v1423_v58  ;;  %v245_v58 = vld [vmem:[%s1582_s14 + $0x38] sm:$0xff]  ;;  %v1245_v25 = vld [vmem:[%s2216_s3 + $0x68] sm:$0xff] }
  0x1d   : > { %995 = vmatpush.msra.mxu2 %v1436_v39  ;;  %253 = vst.msk [vmem:[#allocation2 + $0x41] sm:$0xff] %vm225_vm0, %v245_v58  ;;  %v1237_v54 = vld [vmem:[%s2216_s3 + $0x28] sm:$0xff] }
  0x1e   : > { %v1680_v43 = vld [vmem:[#allocation2 + $0x20] sm:$0xff]  ;;  %903 = vmatpush.msrb.mxu1 %v1422_v0  ;;  %1175 = vmatpush.msra.mxu0 %v1460_v4  ;;  %v1243_v4 = vld [vmem:[%s2216_s3 + $0x58] sm:$0xff] }
  0x1f   : > { %v395_v45 = vsel %vm1672_vm2, %v1680_v43, 0.0  ;;  %v1686_v46 = vld [vmem:[#allocation2 + $0x29] sm:$0xff]  ;;  %996 = vmatpush.msra.mxu2 %v1435_v13  ;;  %v1797_v20 = vld [vmem:[#allocation2 + $0x19] sm:$0xff]  ;;  %v675_v6 = vsel %vm1790_vm7, %v1680_v43, 0.0  ;;  %v948_v17 = vsel %vm1738_vm5, %v1680_v43, 0.0 }
  0x20   : > { %1381 = vmatmul.msk.f32.vlgmr.msra.gmra.mxu3 %vm225_vm0, %v395_v45  ;;  %v1705_v52 = vld [vmem:[#allocation2 + $0x28] sm:$0xff]  ;;  %v1749_v1 = vld [vmem:[#allocation2 + $0x31] sm:$0xff]  ;;  %904 = vmatpush.msrb.mxu1 %v1421_v7 }
  0x21   : > { %v1698_v49 = vld [vmem:[#allocation2 + $0x9] sm:$0xff]  ;;  %1081 = vmatpush.msra.mxu3 %v1448_v56  ;;  %v396_v59 = vsel %vm1709_vm4, %v1705_v52, 0.0  ;;  %1176 = vmatpush.msra.mxu0 %v1459_v8 }
  0x22   : > { %v1700_v50 = vld [vmem:[#allocation2 + $0x8] sm:$0xff]  ;;  %1374 = vmatmul.msk.f32.gmra.mxu2 %vm225_vm0, %v1686_v46  ;;  %1370 = vmatmul.msk.f32.gmra.mxu0 %vm225_vm0, %v1698_v49  ;;  %v1766_v9 = vld [vmem:[#allocation2 + $0x30] sm:$0xff]  ;;  %v1795_v19 = vld [vmem:[#allocation2 + $0x39] sm:$0xff] }
  0x23   : > { %v392_v55 = vsel %vm1690_vm3, %v1700_v50, 0.0  ;;  %v1734_v60 = vld [vmem:[#allocation2 + $0x10] sm:$0xff]  ;;  %v397_v14 = vsel %vm1770_vm6, %v1766_v9, 0.0  ;;  %v1786_v15 = vld [vmem:[#allocation2 + $0x18] sm:$0xff]  ;;  %1082 = vmatpush.msra.mxu3 %v1447_v23  ;;  %v546_v26 = vld [vmem:[#allocation2 + $0x2] sm:$0xff]  ;;  %997 = vmatpush.msra.mxu2 %v1434_v11  ;;  %v672_v35 = vsel %vm1606_vm1, %v1700_v50, 0.0 }
  0x24   : > { %1378 = vmatmul.msk.f32.gmra.mxu1 %vm225_vm0, %v392_v55  ;;  %v1751_v2 = vld [vmem:[#allocation2 + $0x11] sm:$0xff]  ;;  %v393_v3 = vsel %vm1738_vm5, %v1734_v60, 0.0  ;;  %v394_v22 = vsel %vm1790_vm7, %v1786_v15, 0.0  ;;  %v578_v29 = vsel %vm1821_vm9, %v546_v26, 0.0  ;;  %v673_v48 = vsel %vm1690_vm3, %v1734_v60, 0.0  ;;  %v1879_v50 = vld [vmem:[#allocation2 + $0x1a] sm:$0xff]  ;;  %1177 = vmatpush.msra.mxu0 %v1458_v51 }
  0x25   : > { %v1808_v24 = vld [vmem:[#allocation2 + $0x38] sm:$0xff]  ;;  %v547_v31 = vld [vmem:[#allocation2 + $0xa] sm:$0xff]  ;;  %1083 = vmatpush.msra.mxu3 %v1446_v30  ;;  %v854_v42 = vsel %vm1869_vm11, %v1879_v50, 0.0  ;;  %v1433_v55 = vld [vmem:[%s2214_s1 + $0xc0] sm:$0xff]  ;;  %v674_v57 = vsel %vm1738_vm5, %v1786_v15, 0.0  ;;  %v947_v38 = vsel %vm1690_vm3, %v1786_v15, 0.0  ;;  %1252 = vmatpush.msra.mxu1 %v1247_v10 }
  0x26   : > { %v398_v28 = vsel %vm1812_vm8, %v1808_v24, 0.0  ;;  %v852_v33 = vsel %vm1821_vm9, %v547_v31, 0.0  ;;  %v579_v37 = vsel %vm1845_vm10, %v547_v31, 0.0  ;;  %v1854_v39 = vld [vmem:[#allocation2 + $0x12] sm:$0xff]  ;;  %998 = vmatpush.msra.mxu2 %v1433_v55  ;;  %v1909_v0 = vld [vmem:[#allocation2 + $0x22] sm:$0xff]  ;;  %v551_v13 = vld [vmem:[#allocation2 + $0x2a] sm:$0xff]  ;;  %1178 = vmatpush.msra.mxu0 %v1457_v21 }
  0x27   : > { %v853_v45 = vsel %vm1845_vm10, %v1854_v39, 0.0  ;;  %v855_v62 = vsel %vm1897_vm12, %v1909_v0, 0.0  ;;  %v582_v7 = vsel %vm1924_vm13, %v1909_v0, 0.0  ;;  %v583_v23 = vsel %vm1946_vm14, %v551_v13, 0.0  ;;  %v552_v26 = vld [vmem:[#allocation2 + $0x32] sm:$0xff]  ;;  %v553_v15 = vld [vmem:[#allocation2 + $0x3a] sm:$0xff] }
  0x28   : > { %1382 = vmatmul.msk.f32.gmra.mxu3 %vm225_vm0, %v396_v59  ;;  %v581_v59 = vsel %vm1897_vm12, %v1879_v50, 0.0  ;;  %v584_v47 = vsel %vm1967_vm15, %v552_v26, 0.0  ;;  %v858_v31 = vsel %vm1967_vm15, %v553_v15, 0.0  ;;  %vm1985_vm3 = vcmp.lt.s32.totalorder %v316_v18, 7  ;;  %v765_v11 = vld [vmem:[#allocation2 + $0x41] sm:$0xff]  ;;  %v1246_v51 = vld [vmem:[%s2216_s3 + $0x70] sm:$0xff] }
  0x29   : > { %v678_v63 = vsel %vm1770_vm6, %v1808_v24, 0.0  ;;  %v585_v8 = vsel %vm1985_vm3, %v553_v15, 0.0  ;;  %v671_v12 = vld [vmem:[#allocation2 + $0x40] sm:$0xff]  ;;  %v1127_v30 = vsel %vm1845_vm10, %v1879_v50, 0.0  ;;  %v1129_v27 = vsel %vm1897_vm12, %v551_v13, 0.0  ;;  %v945_v40 = vld [vmem:[#allocation2 + $0x48] sm:$0xff]  ;;  %1253 = vmatpush.msra.mxu1 %v1246_v51 }
  0x2a   : > { %1375 = vmatmul.msk.f32.gmra.mxu2 %vm225_vm0, %v1749_v1  ;;  %1371 = vmatmul.msk.f32.gmra.mxu0 %vm225_vm0, %v1751_v2  ;;  %v679_v18 = vsel %vm1812_vm8, %v671_v12, 0.0  ;;  %v950_v61 = vsel %vm1672_vm2, %v1766_v9, 0.0  ;;  %v1131_v41 = vsel %vm1946_vm14, %v553_v15, 0.0  ;;  %v952_v53 = vsel %vm1770_vm6, %v671_v12, 0.0  ;;  %v1241_v21 = vld [vmem:[%s2216_s3 + $0x48] sm:$0xff]  ;;  %v1235_v12 = vld [vmem:[%s2216_s3 + $0x18] sm:$0xff] }
  0x2b   : > { %v953_v50 = vsel %vm1812_vm8, %v945_v40, 0.0  ;;  %1254 = vmatpush.msra.mxu1 %v1245_v25 }
  0x2c   : > { %1379 = vmatmul.msk.f32.gmra.mxu1 %vm225_vm0, %v393_v3  ;;  %v1445_v3 = vld [vmem:[%s2214_s1 + $0xe0] sm:$0xff] }
  0x2d   : > { %1084 = vmatpush.msra.mxu3 %v1445_v3 }
  0x30   : > { %1383 = vmatmul.msk.f32.gmra.mxu3 %vm225_vm0, %v397_v14  ;;  %v856_v14 = vsel %vm1924_vm13, %v551_v13, 0.0  ;;  %v1242_v13 = vld [vmem:[%s2216_s3 + $0x50] sm:$0xff] }
  0x32   : > { %1376 = vmatmul.msk.f32.gmra.mxu2 %vm225_vm0, %v1795_v19  ;;  %1372 = vmatmul.msk.f32.gmra.mxu0 %vm225_vm0, %v1797_v20 }
  0x34   : > { %1380 = vmatmul.msk.f32.gmra.mxu1 %vm225_vm0, %v394_v22  ;;  %v676_v22 = vsel %vm1672_vm2, %v1705_v52, 0.0 }
  0x38   : > { %1384 = vmatmul.msk.f32.gmra.mxu3 %vm225_vm0, %v398_v28  ;;  %v857_v28 = vsel %vm1946_vm14, %v552_v26, 0.0 }
  0x3a   : > { %1389 = vmatmul.msk.f32.vlgmr.msrb.gmra.mxu2 %vm225_vm0, %v578_v29  ;;  %1413 = vmatmul.msk.f32.vlgmr.msrb.gmra.mxu0 %vm225_vm0, %v1698_v49  ;;  %v580_v49 = vsel %vm1869_vm11, %v1854_v39, 0.0  ;;  %v677_v29 = vsel %vm1709_vm4, %v1766_v9, 0.0 }
  0x3c   : > { %1425 = vmatmul.msk.f32.vlgmr.msrb.gmra.mxu1 %vm225_vm0, %v852_v33  ;;  %v851_v33 = vld [vmem:[#allocation2 + $0x42] sm:$0xff] }
  0x3d   : > { %v1132_v34 = vsel %vm1967_vm15, %v851_v33, 0.0 }
  0x40   : > { %1401 = vmatmul.msk.f32.vlgmr.msrb.gmra.mxu3 %vm225_vm0, %v672_v35  ;;  %v859_v35 = vsel %vm1985_vm3, %v851_v33, 0.0 }
  0x42   : > { %1390 = vmatmul.msk.f32.gmra.mxu2 %vm225_vm0, %v579_v37  ;;  %1414 = vmatmul.msk.f32.gmra.mxu0 %vm225_vm0, %v1751_v2  ;;  %v946_v37 = vsel %vm1606_vm1, %v1734_v60, 0.0  ;;  %v1128_v60 = vsel %vm1869_vm11, %v1909_v0, 0.0  ;;  %vm236_vm1 = vcmask 254976   ;;  %v1244_v0 = vld [vmem:[%s2216_s3 + $0x60] sm:$0xff] }
  0x43   : > { %237 = vst.msk [vmem:[#allocation2 + $0x50] sm:$0x3] %vm236_vm1, %v1500_v5  ;;  %1255 = vmatpush.msra.mxu1 %v1244_v0 }
  0x44   : > { %1426 = vmatmul.msk.f32.gmra.mxu1 %vm225_vm0, %v853_v45  ;;  %v1126_v45 = vsel %vm1821_vm9, %v1854_v39, 0.0 }
  0x45   : > { %1256 = vmatpush.msra.mxu1 %v1243_v4 }
  0x47   : > { %1257 = vmatpush.msra.mxu1 %v1242_v13 }
  0x48   : > { %1402 = vmatmul.msk.f32.gmra.mxu3 %vm225_vm0, %v673_v48 }
  0x49   : > { %1258 = vmatpush.msra.mxu1 %v1241_v21 }
  0x4a   : > { %1391 = vmatmul.msk.f32.gmra.mxu2 %vm225_vm0, %v580_v49  ;;  %1415 = vmatmul.msk.f32.gmra.mxu0 %vm225_vm0, %v1797_v20  ;;  %v1125_v48 = vld [vmem:[#allocation2 + $0x4a] sm:$0xff] }
  0x4c   : > { %1427 = vmatmul.msk.f32.gmra.mxu1 %vm225_vm0, %v854_v42 }
  0x50   : > { %1403 = vmatmul.msk.f32.gmra.mxu3 %vm225_vm0, %v674_v57  ;;  %v1039_v57 = vld [vmem:[#allocation2 + $0x49] sm:$0xff] }
  0x52   : > { %1392 = vmatmul.msk.f32.gmra.mxu2 %vm225_vm0, %v581_v59  ;;  %1416 = vmatmul.msk.f32.gmra.mxu0 %vm225_vm0, %v1655_v36 }
  0x54   : > { %1428 = vmatmul.msk.f32.gmra.mxu1 %vm225_vm0, %v855_v62 }
  0x58   : > { %1404 = vmatmul.msk.f32.gmra.mxu3 %vm225_vm0, %v675_v6 }
  0x5a   : > { %1393 = vmatmul.msk.f32.gmra.mxu2 %vm225_vm0, %v582_v7  ;;  %1417 = vmatmul.msk.f32.gmra.mxu0 %vm225_vm0, %v1686_v46 }
  0x5c   : > { %1429 = vmatmul.msk.f32.gmra.mxu1 %vm225_vm0, %v856_v14 }
  0x60   : > { %1405 = vmatmul.msk.f32.gmra.mxu3 %vm225_vm0, %v676_v22 }
  0x62   : > { %1394 = vmatmul.msk.f32.gmra.mxu2 %vm225_vm0, %v583_v23  ;;  %1418 = vmatmul.msk.f32.gmra.mxu0 %vm225_vm0, %v1749_v1 }
  0x64   : > { %1430 = vmatmul.msk.f32.gmra.mxu1 %vm225_vm0, %v857_v28 }
  0x68   : > { %1406 = vmatmul.msk.f32.gmra.mxu3 %vm225_vm0, %v677_v29 }
  0x6a   : > { %1395 = vmatmul.msk.f32.gmra.mxu2 %vm225_vm0, %v584_v47  ;;  %1419 = vmatmul.msk.f32.gmra.mxu0 %vm225_vm0, %v1795_v19  ;;  %v1238_v47 = vld [vmem:[%s2216_s3 + $0x30] sm:$0xff] }
  0x6c   : > { %1431 = vmatmul.msk.f32.gmra.mxu1 %vm225_vm0, %v858_v31 }
  0x70   : > { %1407 = vmatmul.msk.f32.gmra.mxu3 %vm225_vm0, %v678_v63 }
  0x72   : > { %1396 = vmatmul.msk.f32.gmra.mxu2 %vm225_vm0, %v585_v8  ;;  %1420 = vmatmul.msk.f32.gmra.mxu0 %vm225_vm0, %v765_v11  ;;  %v1236_v8 = vld [vmem:[%s2216_s3 + $0x20] sm:$0xff] }
  0x74   : > { %1432 = vmatmul.msk.f32.gmra.mxu1 %vm225_vm0, %v859_v35 }
  0x78   : > { %1408 = vmatmul.msk.f32.gmra.mxu3 %vm225_vm0, %v679_v18 }
  0x7a   : > { %1437 = vmatmul.msk.f32.vlgmr.msra.gmra.mxu2 %vm225_vm0, %v946_v37  ;;  %1461 = vmatmul.msk.f32.vlgmr.msra.gmra.mxu0 %vm225_vm0, %v1126_v45  ;;  %v1234_v45 = vld [vmem:[%s2216_s3 + $0x10] sm:$0xff] }
  0x80   : > { %1449 = vmatmul.msk.f32.vlgmr.msra.gmra.mxu3 %vm225_vm0, %v1751_v2  ;;  %v949_v2 = vsel %vm1790_vm7, %v1705_v52, 0.0  ;;  %v1130_v52 = vsel %vm1924_vm13, %v552_v26, 0.0  ;;  %v1240_v26 = vld [vmem:[%s2216_s3 + $0x40] sm:$0xff] }
  0x81   : > { %1259 = vmatpush.msra.mxu1 %v1240_v26 }
  0x82   : > { %1438 = vmatmul.msk.f32.gmra.mxu2 %vm225_vm0, %v947_v38  ;;  %1462 = vmatmul.msk.f32.gmra.mxu0 %vm225_vm0, %v1127_v30  ;;  %v1239_v38 = vld [vmem:[%s2216_s3 + $0x38] sm:$0xff] }
  0x83   : > { %1260 = vmatpush.msra.mxu1 %v1239_v38 }
  0x85   : > { %1261 = vmatpush.msra.mxu1 %v1238_v47 }
  0x87   : > { %1262 = vmatpush.msra.mxu1 %v1237_v54 }
  0x88   : > { %1450 = vmatmul.msk.f32.gmra.mxu3 %vm225_vm0, %v1797_v20 }
  0x89   : > { %1263 = vmatpush.msra.mxu1 %v1236_v8 }
  0x8a   : > { %1439 = vmatmul.msk.f32.gmra.mxu2 %vm225_vm0, %v948_v17  ;;  %1463 = vmatmul.msk.f32.gmra.mxu0 %vm225_vm0, %v1128_v60  ;;  %v1233_v17 = vld [vmem:[%s2216_s3 + $0x8] sm:$0xff] }
  0x8b   : > { %1264 = vmatpush.msra.mxu1 %v1235_v12 }
  0x8d   : > { %1265 = vmatpush.msra.mxu1 %v1234_v45 }
  0x8f   : > { %1266 = vmatpush.msra.mxu1 %v1233_v17 }
  0x90   : > { %1451 = vmatmul.msk.f32.gmra.mxu3 %vm225_vm0, %v1655_v36  ;;  %v951_v36 = vsel %vm1709_vm4, %v1808_v24, 0.0 }
  0x92   : > { %1440 = vmatmul.msk.f32.gmra.mxu2 %vm225_vm0, %v949_v2  ;;  %1464 = vmatmul.msk.f32.gmra.mxu0 %vm225_vm0, %v1129_v27 }
  0x94   : > { %v2038_v43 = vpop.f32.mrf.mxu0 }
  0x95   : > { %v522_v22 = vpop.f32.mrf.mxu1 }
  0x98   : > { %1452 = vmatmul.msk.f32.gmra.mxu3 %vm225_vm0, %v1686_v46 }
  0x9a   : > { %1441 = vmatmul.msk.f32.gmra.mxu2 %vm225_vm0, %v950_v61  ;;  %1465 = vmatmul.msk.f32.gmra.mxu0 %vm225_vm0, %v1130_v52  ;;  %v1232_v61 = vld [vmem:[%s2216_s3] sm:$0xff] }
  0x9b   : > { %1267 = vmatpush.msra.mxu1 %v1232_v61 }
  0x9d   : > { %v469_v5 = vpop.f32.mrf.mxu2 }
  0x9f   : > { %v2052_v16 = vpop.f32.mrf.mxu0 }
  0xa0   : > { %1453 = vmatmul.msk.f32.gmra.mxu3 %vm225_vm0, %v1749_v1 }
  0xa1   : > { %v525_v15 = vpop.f32.mrf.mxu1 }
  0xa2   : > { %1442 = vmatmul.msk.f32.gmra.mxu2 %vm225_vm0, %v951_v36  ;;  %1466 = vmatmul.msk.f32.gmra.mxu0 %vm225_vm0, %v1131_v41  ;;  %v526_v10 = vadd.f32 %v525_v15, %v2052_v16  ;;  %v2174_v16 = vld [vmem:[%s2215_s2] ss:$0 sm:$0xff] }
  0xa3   : > { %v534_v46 = vpop.f32.mrf.mxu3 }
  0xa4   : > { %v2060_v9 = vadd.f32 %v534_v46, %v469_v5  ;;  %v523_v46 = vadd.f32 %v522_v22, %v2038_v43 }
  0xa5   : > { %v472_v20 = vpop.f32.mrf.mxu2 }
  0xa7   : > { %v2064_v24 = vpop.f32.mrf.mxu0 }
  0xa8   : > { %1454 = vmatmul.msk.f32.gmra.mxu3 %vm225_vm0, %v1795_v19  ;;  %v1133_v19 = vsel %vm1985_vm3, %v1125_v48, 0.0 }
  0xaa   : > { %1443 = vmatmul.msk.f32.gmra.mxu2 %vm225_vm0, %v952_v53  ;;  %1467 = vmatmul.msk.f32.gmra.mxu0 %vm225_vm0, %v1132_v34 }
  0xab   : > { %v537_v1 = vpop.f32.mrf.mxu3 }
  0xac   : > { %v2072_v39 = vadd.f32 %v537_v1, %v472_v20 }
  0xad   : > { %v475_v49 = vpop.f32.mrf.mxu2 }
  0xaf   : > { %v2079_v42 = vpop.f32.mrf.mxu0 }
  0xb0   : > { %1455 = vmatmul.msk.f32.gmra.mxu3 %vm225_vm0, %v765_v11  ;;  %v528_v11 = vpop.f32.mrf.mxu1 }
  0xb1   : > { %v529_v43 = vadd.f32 %v528_v11, %v2064_v24 }
  0xb2   : > { %1444 = vmatmul.msk.f32.gmra.mxu2 %vm225_vm0, %v953_v50  ;;  %1468 = vmatmul.msk.f32.gmra.mxu0 %vm225_vm0, %v1133_v19 }
  0xb3   : > { %v540_v55 = vpop.f32.mrf.mxu3 }
  0xb4   : > { %v2089_v56 = vadd.f32 %v540_v55, %v475_v49 }
  0xb5   : > { %v478_v58 = vpop.f32.mrf.mxu2 }
  0xb7   : > { %v2094_v59 = vpop.f32.mrf.mxu0 }
  0xb8   : > { %1456 = vmatmul.msk.f32.gmra.mxu3 %vm225_vm0, %v1039_v57  ;;  %v531_v60 = vpop.f32.mrf.mxu1 }
  0xb9   : > { %v532_v22 = vadd.f32 %v531_v60, %v2079_v42 }
  0xbb   : > { %v543_v62 = vpop.f32.mrf.mxu3 }
  0xbc   : > { %v2100_v3 = vadd.f32 %v543_v62, %v478_v58 }
  0xbd   : > { %v632_v6 = vpop.f32.mrf.mxu2 }
  0xbe   : > { %v656_v20 = vadd.f32 %v632_v6, %v523_v46 }
  0xbf   : > { %v2105_v7 = vpop.f32.mrf.mxu0 }
  0xc0   : > { %v906_v5 = vpop.f32.mrf.mxu1 }
  0xc3   : > { %v726_v14 = vpop.f32.mrf.mxu3 }
  0xc4   : > { %v750_v1 = vadd.f32 %v726_v14, %v656_v20 }
  0xc5   : > { %v635_v32 = vpop.f32.mrf.mxu2 }
  0xc6   : > { %v836_v49 = vadd.f32 %v2094_v59, %v750_v1  ;;  %v657_v50 = vadd.f32 %v635_v32, %v526_v10 }
  0xc7   : > { %v2113_v23 = vpop.f32.mrf.mxu0 }
  0xc8   : > { %v909_v40 = vpop.f32.mrf.mxu1  ;;  %v930_v55 = vadd.f32 %v906_v5, %v836_v49 }
  0xcb   : > { %v729_v28 = vpop.f32.mrf.mxu3 }
  0xcc   : > { %v751_v25 = vadd.f32 %v729_v28, %v657_v50 }
  0xcd   : > { %v638_v44 = vpop.f32.mrf.mxu2 }
  0xce   : > { %v837_v62 = vadd.f32 %v2105_v7, %v751_v25  ;;  %v658_v4 = vadd.f32 %v638_v44, %v529_v43 }
  0xcf   : > { %v2121_v29 = vpop.f32.mrf.mxu0 }
  0xd0   : > { %v912_v0 = vpop.f32.mrf.mxu1  ;;  %v931_v14 = vadd.f32 %v909_v40, %v837_v62 }
  0xd3   : > { %v732_v31 = vpop.f32.mrf.mxu3 }
  0xd4   : > { %v752_v21 = vadd.f32 %v732_v31, %v658_v4 }
  0xd5   : > { %v641_v63 = vpop.f32.mrf.mxu2 }
  0xd6   : > { %v838_v7 = vadd.f32 %v2113_v23, %v752_v21  ;;  %v659_v38 = vadd.f32 %v641_v63, %v532_v22 }
  0xd7   : > { %v2129_v33 = vpop.f32.mrf.mxu0 }
  0xd8   : > { %v915_v47 = vpop.f32.mrf.mxu1  ;;  %v932_v11 = vadd.f32 %v912_v0, %v838_v7 }
  0xdb   : > { %v735_v35 = vpop.f32.mrf.mxu3 }
  0xdc   : > { %v753_v12 = vadd.f32 %v735_v35, %v659_v38 }
  0xdd   : > { %v644_v18 = vpop.f32.mrf.mxu2 }
  0xde   : > { %v839_v42 = vadd.f32 %v2121_v29, %v753_v12  ;;  %v660_v60 = vadd.f32 %v644_v18, %v2060_v9 }
  0xdf   : > { %v2137_v37 = vpop.f32.mrf.mxu0 }
  0xe0   : > { %v918_v46 = vpop.f32.mrf.mxu1  ;;  %v933_v1 = vadd.f32 %v915_v47, %v839_v42 }
  0xe3   : > { %v2142_v30 = vpop.f32.mrf.mxu3 }
  0xe4   : > { %v754_v40 = vadd.f32 %v2142_v30, %v660_v60 }
  0xe5   : > { %v2147_v2 = vpop.f32.mrf.mxu2 }
  0xe6   : > { %v840_v49 = vadd.f32 %v2129_v33, %v754_v40  ;;  %v661_v29 = vadd.f32 %v2147_v2, %v2072_v39 }
  0xe7   : > { %v2149_v27 = vpop.f32.mrf.mxu0 }
  0xe8   : > { %v934_v25 = vadd.f32 %v918_v46, %v840_v49  ;;  %v921_v30 = vpop.f32.mrf.mxu1 }
  0xeb   : > { %v2154_v52 = vpop.f32.mrf.mxu3 }
  0xed   : > { %v2156_v36 = vpop.f32.mrf.mxu2 }
  0xee   : > { %v662_v33 = vadd.f32 %v2156_v36, %v2089_v56 }
  0xef   : > { %v2158_v41 = vpop.f32.mrf.mxu0 }
  0xf0   : > { %v924_v22 = vpop.f32.mrf.mxu1 }
  0xf3   : > { %v2161_v53 = vpop.f32.mrf.mxu3 }
  0xf5   : > { %v2163_v34 = vpop.f32.mrf.mxu2 }
  0xf7   : > { %v1180_v48 = vpop.f32.mrf.mxu0 }
  0xfb   : > { %v2167_v19 = vpop.f32.mrf.mxu3 }
  0xfd   : > { %v1000_v51 = vpop.f32.mrf.mxu2 }
  0xfe   : > { %v1024_v58 = vadd.f32 %v1000_v51, %v930_v55 }
  0xff   : > { %v1183_v57 = vpop.f32.mrf.mxu0 }
 0x103   : > { %v1086_v6 = vpop.f32.mrf.mxu3 }
 0x104   : > { %v1110_v13 = vadd.f32 %v1086_v6, %v1024_v58 }
 0x105   : > { %v1003_v59 = vpop.f32.mrf.mxu2 }
 0x106   : > { %v1204_v32 = vadd.f32 %v1180_v48, %v1110_v13  ;;  %v1025_v26 = vadd.f32 %v1003_v59, %v931_v14  ;;  %v756_v59 = vadd.f32 %v2161_v53, %v662_v33 }
 0x107   : > { %v1186_v28 = vpop.f32.mrf.mxu0 }
 0x108   : > { %v1216_v24 = vadd.f32 %v2174_v16, %v1204_v32 }
 0x10a   : > { %v1224_v44 = vmax.f32 %v1216_v24, 0.0  ;;  %v842_v24 = vadd.f32 %v2149_v27, %v756_v59  ;;  %v927_v27 = vpop.f32.mrf.mxu1 }
 0x10b   : > { %v1089_v15 = vpop.f32.mrf.mxu3 }
 0x10c   : > { %v1111_v54 = vadd.f32 %v1089_v15, %v1025_v26  ;;  %1268 = vmatmul.f32.vlgmr.msra.gmra.mxu1 %v1224_v44  ;;  %v936_v7 = vadd.f32 %v924_v22, %v842_v24 }
 0x10d   : > { %v1006_v8 = vpop.f32.mrf.mxu2 }
 0x10e   : > { %v1205_v45 = vadd.f32 %v1183_v57, %v1111_v54  ;;  %v1026_v31 = vadd.f32 %v1006_v8, %v932_v11  ;;  %v755_v57 = vadd.f32 %v2154_v52, %v661_v29 }
 0x10f   : > { %v1189_v23 = vpop.f32.mrf.mxu0 }
 0x110   : > { %v1217_v17 = vadd.f32 %v2174_v16, %v1205_v45  ;;  %v841_v62 = vadd.f32 %v2137_v37, %v755_v57  ;;  %v663_v37 = vadd.f32 %v2163_v34, %v2100_v3 }
 0x112   : > { %v1225_v61 = vmax.f32 %v1217_v17, 0.0  ;;  %v935_v13 = vadd.f32 %v921_v30, %v841_v62  ;;  %v757_v38 = vadd.f32 %v2167_v19, %v663_v37 }
 0x113   : > { %v1092_v5 = vpop.f32.mrf.mxu3 }
 0x114   : > { %v1112_v63 = vadd.f32 %v1092_v5, %v1026_v31  ;;  %1271 = vmatmul.f32.gmra.mxu1 %v1225_v61  ;;  %v843_v54 = vadd.f32 %v2158_v41, %v757_v38 }
 0x115   : > { %v1009_v20 = vpop.f32.mrf.mxu2 }
 0x116   : > { %v1206_v48 = vadd.f32 %v1186_v28, %v1112_v63  ;;  %v1027_v35 = vadd.f32 %v1009_v20, %v933_v1  ;;  %v937_v34 = vadd.f32 %v927_v27, %v843_v54  ;;  %v1491_v63 = vld [vmem:[%s2217_s4] ss:$0 sm:$0xff] }
 0x117   : > { %v1192_v55 = vpop.f32.mrf.mxu0 }
 0x118   : > { %v1218_v10 = vadd.f32 %v2174_v16, %v1206_v48 }
 0x11a   : > { %v1226_v9 = vmax.f32 %v1218_v10, 0.0 }
 0x11b   : > { %v1095_v18 = vpop.f32.mrf.mxu3 }
 0x11c   : > { %v1113_v50 = vadd.f32 %v1095_v18, %v1027_v35  ;;  %1274 = vmatmul.f32.gmra.mxu1 %v1226_v9 }
 0x11d   : > { %v1012_v51 = vpop.f32.mrf.mxu2 }
 0x11e   : > { %v1207_v43 = vadd.f32 %v1189_v23, %v1113_v50  ;;  %v1028_v58 = vadd.f32 %v1012_v51, %v934_v25 }
 0x11f   : > { %v1195_v52 = vpop.f32.mrf.mxu0 }
 0x120   : > { %v1219_v0 = vadd.f32 %v2174_v16, %v1207_v43 }
 0x122   : > { %v1227_v39 = vmax.f32 %v1219_v0, 0.0 }
 0x123   : > { %v1098_v2 = vpop.f32.mrf.mxu3 }
 0x124   : > { %v1114_v4 = vadd.f32 %v1098_v2, %v1028_v58  ;;  %1277 = vmatmul.f32.gmra.mxu1 %v1227_v39 }
 0x125   : > { %v1015_v6 = vpop.f32.mrf.mxu2 }
 0x126   : > { %v1208_v14 = vadd.f32 %v1192_v55, %v1114_v4  ;;  %v1029_v21 = vadd.f32 %v1015_v6, %v935_v13 }
 0x127   : > { %v1198_v15 = vpop.f32.mrf.mxu0 }
 0x128   : > { %v1220_v32 = vadd.f32 %v2174_v16, %v1208_v14 }
 0x12a   : > { %v1228_v56 = vmax.f32 %v1220_v32, 0.0 }
 0x12b   : > { %v1101_v36 = vpop.f32.mrf.mxu3 }
 0x12c   : > { %v1115_v26 = vadd.f32 %v1101_v36, %v1029_v21  ;;  %1280 = vmatmul.f32.gmra.mxu1 %v1228_v56 }
 0x12d   : > { %v1018_v28 = vpop.f32.mrf.mxu2 }
 0x12e   : > { %v1209_v53 = vadd.f32 %v1195_v52, %v1115_v26  ;;  %v1030_v44 = vadd.f32 %v1018_v28, %v936_v7 }
 0x12f   : > { %v1201_v60 = vpop.f32.mrf.mxu0 }
 0x130   : > { %v1221_v47 = vadd.f32 %v2174_v16, %v1209_v53 }
 0x132   : > { %v1229_v8 = vmax.f32 %v1221_v47, 0.0 }
 0x133   : > { %v1104_v11 = vpop.f32.mrf.mxu3 }
 0x134   : > { %v1116_v12 = vadd.f32 %v1104_v11, %v1030_v44  ;;  %1283 = vmatmul.f32.gmra.mxu1 %v1229_v8 }
 0x135   : > { %v1021_v3 = vpop.f32.mrf.mxu2 }
 0x136   : > { %v1210_v45 = vadd.f32 %v1198_v15, %v1116_v12  ;;  %v1031_v31 = vadd.f32 %v1021_v3, %v937_v34 }
 0x138   : > { %v1222_v17 = vadd.f32 %v2174_v16, %v1210_v45 }
 0x13a   : > { %v1230_v19 = vmax.f32 %v1222_v17, 0.0 }
 0x13b   : > { %v1107_v42 = vpop.f32.mrf.mxu3 }
 0x13c   : > { %v1117_v61 = vadd.f32 %v1107_v42, %v1031_v31  ;;  %1286 = vmatmul.f32.gmra.mxu1 %v1230_v19 }
 0x13e   : > { %v1211_v5 = vadd.f32 %v1201_v60, %v1117_v61 }
 0x140   : > { %v1223_v41 = vadd.f32 %v2174_v16, %v1211_v5 }
 0x142   : > { %v1231_v23 = vmax.f32 %v1223_v41, 0.0 }
 0x144   : > { %1289 = vmatmul.f32.gmra.mxu1 %v1231_v23 }
 0x189   : > { %v1269_v46 = vpop.f32.mrf.mxu1 }
 0x18a   : > { %v1270_v20 = vadd.f32 %v1491_v63, %v1269_v46 }
 0x18c   : > { %1293 = vst [vmem:[%s224_s25] sm:$0xff] %v1270_v20 }
 0x191   : > { %v1272_v1 = vpop.f32.mrf.mxu1 }
 0x192   : > { %v1273_v40 = vadd.f32 %v1491_v63, %v1272_v1 }
 0x194   : > { %1294 = vst [vmem:[%s224_s25 + $0x8] sm:$0xff] %v1273_v40 }
 0x199   : > { %v1275_v48 = vpop.f32.mrf.mxu1 }
 0x19a   : > { %v1276_v35 = vadd.f32 %v1491_v63, %v1275_v48 }
 0x19c   : > { %1295 = vst [vmem:[%s224_s25 + $0x10] sm:$0xff] %v1276_v35 }
 0x1a1   : > { %v1278_v16 = vpop.f32.mrf.mxu1 }
 0x1a2   : > { %v1279_v10 = vadd.f32 %v1491_v63, %v1278_v16 }
 0x1a4   : > { %1296 = vst [vmem:[%s224_s25 + $0x18] sm:$0xff] %v1279_v10 }
 0x1a9   : > { %v1281_v49 = vpop.f32.mrf.mxu1 }
 0x1aa   : > { %v1282_v29 = vadd.f32 %v1491_v63, %v1281_v49 }
 0x1ac   : > { %1297 = vst [vmem:[%s224_s25 + $0x20] sm:$0xff] %v1282_v29 }
 0x1b1   : > { %v1284_v9 = vpop.f32.mrf.mxu1 }
 0x1b2   : > { %v1285_v18 = vadd.f32 %v1491_v63, %v1284_v9 }
 0x1b4   : > { %1298 = vst [vmem:[%s224_s25 + $0x28] sm:$0xff] %v1285_v18 }
 0x1b9   : > { %v1287_v50 = vpop.f32.mrf.mxu1 }
 0x1ba   : > { %v1288_v51 = vadd.f32 %v1491_v63, %v1287_v50 }
 0x1bc   : > { %1299 = vst [vmem:[%s224_s25 + $0x30] sm:$0xff] %v1288_v51 }
 0x1c1   : > { %v1290_v55 = vpop.f32.mrf.mxu1 }
 0x1c2   : > { %v1291_v25 = vadd.f32 %v1491_v63, %v1290_v55 }
 0x1c4   : > { %1300 = vst [vmem:[%s224_s25 + $0x38] sm:$0xff] %v1291_v25 }
 0x1c5 PF: > { %s15_s18 = sadd.s32 1, %s1498_s18  }
 0x1c6   : > { %p12_p4 = scmp.ge.s32.totalorder %s15_s18, 4  }
 0x1c8   :  { %14 = sbr.rel (!%p12_p4) target bundleno = 1 (0x1), region = 78 }

</bundles_post_ra>
